<compile_context>
chip_gen: v7x
topology: tpu7x:2x2x1
jax: 0.10.0
libtpu: 0.0.40
codegen_flags: <defaults>
</compile_context>

<pallas_src>
import functools

import jax
import jax.numpy as jnp
import numpy as np
from jax import lax
from jax.experimental import pallas as pl
from jax.experimental.pallas import tpu as pltpu


# ----------------------------------------------------------------------------
# One-time capability probe for pl.Buffered(1) (single-buffered constant
# operands).  Runs a tiny pallas_call once; result is cached.
# ----------------------------------------------------------------------------
_BUFFERED_OK = None


def _buffered_ok():
    global _BUFFERED_OK
    if _BUFFERED_OK is None:
        try:
            def _k(x_ref, o_ref):
                o_ref[...] = x_ref[...] + 1.0

            x = jnp.zeros((8, 128), jnp.float32)
            out = pl.pallas_call(
                _k,
                out_shape=jax.ShapeDtypeStruct((16, 128), jnp.float32),
                grid=(2,),
                in_specs=[pl.BlockSpec((8, 128), lambda i: (0, 0),
                                       pipeline_mode=pl.Buffered(1))],
                out_specs=pl.BlockSpec((8, 128), lambda i: (i, 0)),
            )(x)
            jax.block_until_ready(out)
            _BUFFERED_OK = True
        except Exception:
            _BUFFERED_OK = False
    return _BUFFERED_OK


# ----------------------------------------------------------------------------
# Generic tiled matmul + bias:  (N, K) @ (K, M) + (1, M)  (used for FC layer)
# Bias is folded into the accumulator init at k == 0.
# ----------------------------------------------------------------------------
def matmul_bias_kernel(x_ref, w_ref, b_ref, o_ref, acc_ref):
    @pl.when(pl.program_id(2) == 0)
    def _():
        acc_ref[...] = jnp.broadcast_to(b_ref[...], acc_ref.shape).astype(
            jnp.float32)

    acc_ref[...] += jnp.dot(x_ref[...], w_ref[...],
                            preferred_element_type=jnp.float32)

    @pl.when(pl.program_id(2) == pl.num_programs(2) - 1)
    def _():
        o_ref[...] = acc_ref[...].astype(o_ref.dtype)


def _pick_tile(dim, candidates):
    for c in candidates:
        if c <= dim and dim % c == 0:
            return c
    return dim  # full extent (always legal as a block dim)


def matmul_bias(x, w, b):
    """x: (N, K), w: (K, M), b: (1, M) -> (N, M) fp32."""
    N, K = x.shape
    K2, M = w.shape
    assert K == K2 and b.shape == (1, M)
    tm = _pick_tile(N, (512, 256, 128, 64, 32, 16, 8))
    tn = _pick_tile(M, (512, 256, 128))
    tk = _pick_tile(K, (512, 256, 128))
    grid = (N // tm, M // tn, K // tk)
    return pl.pallas_call(
        matmul_bias_kernel,
        out_shape=jax.ShapeDtypeStruct((N, M), jnp.float32),
        grid_spec=pltpu.PrefetchScalarGridSpec(
            num_scalar_prefetch=0,
            grid=grid,
            in_specs=[
                pl.BlockSpec((tm, tk), lambda i, j, k: (i, k)),
                pl.BlockSpec((tk, tn), lambda i, j, k: (k, j)),
                pl.BlockSpec((1, tn), lambda i, j, k: (0, j)),
            ],
            out_specs=pl.BlockSpec((tm, tn), lambda i, j, k: (i, j)),
            scratch_shapes=[pltpu.VMEM((tm, tn), jnp.float32)],
        ),
        compiler_params=pltpu.CompilerParams(
            dimension_semantics=("parallel", "parallel", "arbitrary")),
    )(x, w, b)


# ----------------------------------------------------------------------------
# Fused LSTM layer kernel.
# Per time-chunk:
#   gx_chunk = reshape(x_chunk, (Tc*B, H)) @ Wx + (bx+bh)   (one MXU matmul)
# then the serial recurrence only adds h @ Wh per step.  h/c are carried in
# VMEM scratch across grid steps; (hT, cT) emitted on the last chunk.
# ----------------------------------------------------------------------------
def lstm_kernel(x_ref, wx_ref, wh_ref, b_ref, s0_ref,
                out_ref, sT_ref, gx_sc, h_sc, c_sc, *, Tc):
    tc = pl.program_id(0)

    @pl.when(tc == 0)
    def _():
        h_sc[...] = s0_ref[0]
        c_sc[...] = s0_ref[1]

    B, H = h_sc.shape

    # Hoisted (per-chunk) input projection: (Tc*B, H) @ (H, 4H) + b.
    gx_sc[...] = (jnp.dot(x_ref[...].reshape(Tc * B, H), wx_ref[...],
                          preferred_element_type=jnp.float32)
                  + b_ref[...]).reshape(Tc, B, 4 * H)

    def step(t, carry):
        h, c = carry
        # Read Wh through the ref each step (stream from VMEM; no 64-vreg
        # materialized weight value hoisted across the unrolled loop).
        gates = gx_sc[t] + jnp.dot(h, wh_ref[...],
                                   preferred_element_type=jnp.float32)
        i_g = jax.nn.sigmoid(gates[:, 0 * H:1 * H])
        f_g = jax.nn.sigmoid(gates[:, 1 * H:2 * H])
        o_g = jax.nn.sigmoid(gates[:, 2 * H:3 * H])
        n_g = jnp.tanh(gates[:, 3 * H:4 * H])
        c_new = f_g * c + i_g * n_g
        h_new = o_g * jnp.tanh(c_new)
        out_ref[t] = h_new
        return (h_new, c_new)

    h, c = lax.fori_loop(0, Tc, step, (h_sc[...], c_sc[...]), unroll=True)
    h_sc[...] = h
    c_sc[...] = c

    @pl.when(tc == pl.num_programs(0) - 1)
    def _():
        sT_ref[0] = h
        sT_ref[1] = c


def _make_lstm_call(T, B, H, Tc):
    const_kw = dict(pipeline_mode=pl.Buffered(1)) if _buffered_ok() else {}
    grid_spec = pltpu.PrefetchScalarGridSpec(
        num_scalar_prefetch=0,
        grid=(T // Tc,),
        in_specs=[
            pl.BlockSpec((Tc, B, H), lambda t: (t, 0, 0)),              # x chunk
            pl.BlockSpec((H, 4 * H), lambda t: (0, 0), **const_kw),     # Wx
            pl.BlockSpec((H, 4 * H), lambda t: (0, 0), **const_kw),     # Wh
            pl.BlockSpec((1, 4 * H), lambda t: (0, 0), **const_kw),     # bx+bh
            pl.BlockSpec((2, B, H), lambda t: (0, 0, 0), **const_kw),   # (h0,c0)
        ],
        out_specs=[
            pl.BlockSpec((Tc, B, H), lambda t: (t, 0, 0)),              # outputs
            pl.BlockSpec((2, B, H), lambda t: (0, 0, 0)),               # (hT,cT)
        ],
        scratch_shapes=[
            pltpu.VMEM((Tc, B, 4 * H), jnp.float32),                    # gx chunk
            pltpu.VMEM((B, H), jnp.float32),                            # h carry
            pltpu.VMEM((B, H), jnp.float32),                            # c carry
        ],
    )
    return pl.pallas_call(
        functools.partial(lstm_kernel, Tc=Tc),
        out_shape=(jax.ShapeDtypeStruct((T, B, H), jnp.float32),
                   jax.ShapeDtypeStruct((2, B, H), jnp.float32)),
        grid_spec=grid_spec,
        compiler_params=pltpu.CompilerParams(
            dimension_semantics=("arbitrary",)),                        # serial
    )


def _largest_divisor(n, cap):
    for c in range(min(cap, n), 0, -1):
        if n % c == 0:
            return c
    return 1


def _choose_tc(T, B, H, tc_max=32):
    tc = _largest_divisor(T, tc_max)
    # Awkward T (e.g. prime) degenerates to tiny chunks; if the whole sequence
    # comfortably fits in VMEM, run it as a single chunk instead.
    if tc < 4 and T * B * 4 * H * 4 <= (8 << 20):
        tc = T
    return tc


def lstm_layer(x, wx, wh, b, h0, c0):
    """x: (T, B, H); wx, wh: (H, 4H); b: (1, 4H) = bx + bh folded."""
    T, B, H = x.shape
    Tc = _choose_tc(T, B, H)
    s0 = jnp.stack([h0, c0], axis=0)                       # (2, B, H)
    out, sT = _make_lstm_call(T, B, H, Tc)(x, wx, wh, b, s0)
    return out, (sT[0], sT[1])


# ----------------------------------------------------------------------------
# Model wrapper (eval mode)
# ----------------------------------------------------------------------------
def init_params(key, vocab_size, hidden_size, layer_num, winit):
    H = hidden_size

    def u(k, shape):
        return jax.random.uniform(k, shape, jnp.float32, -winit, winit)

    keys = jax.random.split(key, 3 + layer_num)
    params = {
        "embed_W": u(keys[0], (vocab_size, H)),
        # FC weight stored pre-transposed (H, V): scores = x @ fc_W + fc_b.
        "fc_W": u(keys[1], (H, vocab_size)),
        "fc_b": u(keys[2], (1, vocab_size)),
        "layers": [],
    }
    for l in range(layer_num):
        lk = jax.random.split(keys[3 + l], 16)
        # gate order [i, f, o, n], matching the custom LSTM's lstm_step.
        wx = jnp.concatenate([u(lk[g], (H, H)) for g in range(4)], axis=1)
        wh = jnp.concatenate([u(lk[4 + g], (H, H)) for g in range(4)], axis=1)
        bx = jnp.concatenate([u(lk[8 + g], (H,)) for g in range(4)], axis=0)
        bh = jnp.concatenate([u(lk[12 + g], (H,)) for g in range(4)], axis=0)
        params["layers"].append({
            "wx": wx, "wh": wh,
            "b": (bx + bh).reshape(1, 4 * H),   # biases folded (eval semantics)
        })
    return params


def model_forward(params, tokens, states):
    """tokens: (T, B) int32; states: list of (h (B,H), c (B,H))."""
    T, B = tokens.shape
    H = params["embed_W"].shape[1]
    # Embedding gather stays in plain JAX inside the jitted graph (glue).
    # TODO(synk): a scalar-prefetch Pallas gather feeding the first layer's
    # fused gx matmul would avoid materializing x in HBM.
    x = jnp.take(params["embed_W"], tokens.reshape(-1), axis=0).reshape(T, B, H)
    # dropout_x: identity in eval mode.
    new_states = []
    for layer, (h0, c0) in zip(params["layers"], states):
        x, st = lstm_layer(x, layer["wx"], layer["wh"], layer["b"], h0, c0)
        new_states.append(st)
    # dropout_o: identity in eval mode.
    scores = matmul_bias(x.reshape(T * B, H), params["fc_W"], params["fc_b"])
    return scores, new_states


model_forward_jit = jax.jit(model_forward)


# ----------------------------------------------------------------------------
# Pure-JAX reference (fp32, HIGHEST precision) for correctness check
# ----------------------------------------------------------------------------
def lstm_layer_ref(x, wx, wh, b, h0, c0):
    H = h0.shape[-1]
    hp = lax.Precision.HIGHEST

    def step(carry, x_t):
        h, c = carry
        g = jnp.dot(x_t, wx, precision=hp) + jnp.dot(h, wh, precision=hp) + b
        i = jax.nn.sigmoid(g[:, 0:H])
        f = jax.nn.sigmoid(g[:, H:2 * H])
        o = jax.nn.sigmoid(g[:, 2 * H:3 * H])
        n = jnp.tanh(g[:, 3 * H:4 * H])
        c = f * c + i * n
        h = o * jnp.tanh(c)
        return (h, c), h

    (hT, cT), out = lax.scan(step, (h0, c0), x)
    return out, (hT, cT)


def model_forward_ref(params, tokens, states):
    T, B = tokens.shape
    H = params["embed_W"].shape[1]
    hp = lax.Precision.HIGHEST
    x = params["embed_W"][tokens.reshape(-1)].reshape(T, B, H)
    new_states = []
    for layer, (h0, c0) in zip(params["layers"], states):
        x, st = lstm_layer_ref(x, layer["wx"], layer["wh"], layer["b"], h0, c0)
        new_states.append(st)
    scores = (jnp.dot(x.reshape(T * B, H), params["fc_W"], precision=hp)
              + params["fc_b"])
    return scores, new_states


if __name__ == "__main__":
    # Small but layout-aligned shapes:
    #   B = 8 (sublane multiple), H = 128 / V = 256 (lane multiples), T = 16.
    vocab_size, hidden_size, layer_num = 256, 128, 2
    T, B = 16, 8
    winit = 0.1

    # Resolve Buffered(1) support once, outside the jitted hot path.
    _buffered_ok()

    key = jax.random.PRNGKey(0)
    kp, kt = jax.random.split(key)
    params = init_params(kp, vocab_size, hidden_size, layer_num, winit)
    tokens = jax.random.randint(kt, (T, B), 0, vocab_size, dtype=jnp.int32)
    states = [(jnp.zeros((B, hidden_size), jnp.float32),
               jnp.zeros((B, hidden_size), jnp.float32))
              for _ in range(layer_num)]

    scores, new_states = model_forward_jit(params, tokens, states)
    scores = jax.block_until_ready(scores)

    scores_ref, states_ref = model_forward_ref(params, tokens, states)
    np.testing.assert_allclose(np.asarray(scores), np.asarray(scores_ref),
                               rtol=1e-3, atol=1e-3)
    for (h, c), (hr, cr) in zip(new_states, states_ref):
        np.testing.assert_allclose(np.asarray(h), np.asarray(hr),
                                   rtol=1e-3, atol=1e-3)
        np.testing.assert_allclose(np.asarray(c), np.asarray(cr),
                                   rtol=1e-3, atol=1e-3)

    print("KERNEL_OK")
</pallas_src>

<mosaic_0001>
module attributes {stable_mosaic.version = 11 : i64} {
  func.func @_k(%arg0: i32, %arg1: memref<8x128xf32, #tpu.memory_space<vmem>>, %arg2: memref<8x128xf32, #tpu.memory_space<vmem>>) attributes {dimension_semantics = [#tpu.dimension_semantics<arbitrary>], iteration_bounds = array<i64: 2>, scalar_prefetch = 0 : i64, scratch_operands = 0 : i64, tpu.core_type = #tpu.core_type<tc>, window_params = [{pipeline_mode = #tpu.pipeline_mode<synchronous>, transform_indices = @transform_0, window_bounds = array<i64: 8, 128>}, {transform_indices = @transform_1, window_bounds = array<i64: 8, 128>}]} {
    %c0 = arith.constant 0 : index
    %c0_0 = arith.constant 0 : index
    %0 = vector.load %arg1[%c0, %c0_0] : memref<8x128xf32, #tpu.memory_space<vmem>>, vector<8x128xf32>
    %cst = arith.constant 1.000000e+00 : f32
    %1 = vector.broadcast %cst : f32 to vector<8x128xf32>
    %2 = arith.addf %0, %1 : vector<8x128xf32>
    %c0_1 = arith.constant 0 : index
    %c0_2 = arith.constant 0 : index
    %3 = vector.load %arg2[%c0_1, %c0_2] : memref<8x128xf32, #tpu.memory_space<vmem>>, vector<8x128xf32>
    tpu.vector_store %arg2[%c0_1, %c0_2], %2 {strides = array<i32>} : memref<8x128xf32, #tpu.memory_space<vmem>>, vector<8x128xf32>,
    return
  }
  func.func @transform_0(%arg0: i32) -> (i32, i32) {
    %c0_i32 = arith.constant 0 : i32
    %c0_i32_0 = arith.constant 0 : i32
    %c0_i32_1 = arith.constant 0 : i32
    return %c0_i32, %c0_i32_0 : i32, i32
  }
  func.func @transform_1(%arg0: i32) -> (i32, i32) {
    %c0_i32 = arith.constant 0 : i32
    %c0_i32_0 = arith.constant 0 : i32
    return %arg0, %c0_i32 : i32, i32
  }
}

module attributes {stable_mosaic.version = 11 : i64} {
  func.func @lstm_kernel(%arg0: i32, %arg1: memref<16x8x128xf32, #tpu.memory_space<vmem>>, %arg2: memref<128x512xf32, #tpu.memory_space<vmem>>, %arg3: memref<128x512xf32, #tpu.memory_space<vmem>>, %arg4: memref<1x512xf32, #tpu.memory_space<vmem>>, %arg5: memref<2x8x128xf32, #tpu.memory_space<vmem>>, %arg6: memref<16x8x128xf32, #tpu.memory_space<vmem>>, %arg7: memref<2x8x128xf32, #tpu.memory_space<vmem>>, %arg8: memref<16x8x512xf32, #tpu.memory_space<vmem>>, %arg9: memref<8x128xf32, #tpu.memory_space<vmem>>, %arg10: memref<8x128xf32, #tpu.memory_space<vmem>>) attributes {dimension_semantics = [#tpu.dimension_semantics<arbitrary>], iteration_bounds = array<i64: 1>, scalar_prefetch = 0 : i64, scratch_operands = 3 : i64, tpu.core_type = #tpu.core_type<tc>, window_params = [{transform_indices = @transform_0, window_bounds = array<i64: 16, 8, 128>}, {pipeline_mode = #tpu.pipeline_mode<synchronous>, transform_indices = @transform_1, window_bounds = array<i64: 128, 512>}, {pipeline_mode = #tpu.pipeline_mode<synchronous>, transform_indices = @transform_2, window_bounds = array<i64: 128, 512>}, {pipeline_mode = #tpu.pipeline_mode<synchronous>, transform_indices = @transform_3, window_bounds = array<i64: 1, 512>}, {pipeline_mode = #tpu.pipeline_mode<synchronous>, transform_indices = @transform_4, window_bounds = array<i64: 2, 8, 128>}, {transform_indices = @transform_5, window_bounds = array<i64: 16, 8, 128>}, {pipeline_mode = #tpu.pipeline_mode<synchronous>, transform_indices = @transform_6, window_bounds = array<i64: 2, 8, 128>}]} {
    %c0_i32 = arith.constant 0 : i32
    %0 = arith.cmpi eq, %arg0, %c0_i32 : i32
    %1 = arith.extui %0 : i1 to i32
    %c0_i32_0 = arith.constant 0 : i32
    %2 = arith.cmpi ne, %1, %c0_i32_0 : i32
    scf.if %2 {
      %c0_181 = arith.constant 0 : index
      %c0_182 = arith.constant 0 : index
      %c0_183 = arith.constant 0 : index
      %579 = vector.load %arg5[%c0_181, %c0_182, %c0_183] : memref<2x8x128xf32, #tpu.memory_space<vmem>>, vector<1x8x128xf32>
      %580 = vector.shape_cast %579 : vector<1x8x128xf32> to vector<8x128xf32>
      %c0_184 = arith.constant 0 : index
      %c0_185 = arith.constant 0 : index
      %581 = vector.load %arg9[%c0_184, %c0_185] : memref<8x128xf32, #tpu.memory_space<vmem>>, vector<8x128xf32>
      tpu.vector_store %arg9[%c0_184, %c0_185], %580 {strides = array<i32>} : memref<8x128xf32, #tpu.memory_space<vmem>>, vector<8x128xf32>,
      %c1 = arith.constant 1 : index
      %c0_186 = arith.constant 0 : index
      %c0_187 = arith.constant 0 : index
      %582 = vector.load %arg5[%c1, %c0_186, %c0_187] : memref<2x8x128xf32, #tpu.memory_space<vmem>>, vector<1x8x128xf32>
      %583 = vector.shape_cast %582 : vector<1x8x128xf32> to vector<8x128xf32>
      %c0_188 = arith.constant 0 : index
      %c0_189 = arith.constant 0 : index
      %584 = vector.load %arg10[%c0_188, %c0_189] : memref<8x128xf32, #tpu.memory_space<vmem>>, vector<8x128xf32>
      tpu.vector_store %arg10[%c0_188, %c0_189], %583 {strides = array<i32>} : memref<8x128xf32, #tpu.memory_space<vmem>>, vector<8x128xf32>,
    } else {
    }
    %c0 = arith.constant 0 : index
    %c0_1 = arith.constant 0 : index
    %c0_2 = arith.constant 0 : index
    %3 = vector.load %arg1[%c0, %c0_1, %c0_2] : memref<16x8x128xf32, #tpu.memory_space<vmem>>, vector<16x8x128xf32>
    %4 = vector.shape_cast %3 : vector<16x8x128xf32> to vector<128x128xf32>
    %c0_3 = arith.constant 0 : index
    %c0_4 = arith.constant 0 : index
    %5 = vector.load %arg2[%c0_3, %c0_4] : memref<128x512xf32, #tpu.memory_space<vmem>>, vector<128x512xf32>
    %cst = arith.constant dense<0.000000e+00> : vector<128x512xf32>
    %6 = tpu.matmul %4, %5, %cst {dimension_numbers = #tpu.dot_dimension_numbers<[1], [0], [0], [1], [0, 0, 1, 1], [], []>} : vector<128x128xf32>, vector<128x512xf32>, vector<128x512xf32> -> vector<128x512xf32>
    %c0_5 = arith.constant 0 : index
    %c0_6 = arith.constant 0 : index
    %7 = vector.load %arg4[%c0_5, %c0_6] : memref<1x512xf32, #tpu.memory_space<vmem>>, vector<1x512xf32>
    %8 = vector.broadcast %7 : vector<1x512xf32> to vector<128x512xf32>
    %9 = arith.addf %6, %8 : vector<128x512xf32>
    %10 = vector.shape_cast %9 : vector<128x512xf32> to vector<16x8x512xf32>
    %c0_7 = arith.constant 0 : index
    %c0_8 = arith.constant 0 : index
    %c0_9 = arith.constant 0 : index
    %11 = vector.load %arg8[%c0_7, %c0_8, %c0_9] : memref<16x8x512xf32, #tpu.memory_space<vmem>>, vector<16x8x512xf32>
    tpu.vector_store %arg8[%c0_7, %c0_8, %c0_9], %10 {strides = array<i32>} : memref<16x8x512xf32, #tpu.memory_space<vmem>>, vector<16x8x512xf32>,
    %c0_10 = arith.constant 0 : index
    %c0_11 = arith.constant 0 : index
    %12 = vector.load %arg9[%c0_10, %c0_11] : memref<8x128xf32, #tpu.memory_space<vmem>>, vector<8x128xf32>
    %c0_12 = arith.constant 0 : index
    %c0_13 = arith.constant 0 : index
    %13 = vector.load %arg10[%c0_12, %c0_13] : memref<8x128xf32, #tpu.memory_space<vmem>>, vector<8x128xf32>
    %c0_i32_14 = arith.constant 0 : i32
    %14 = arith.index_cast %c0_i32_14 : i32 to index
    %c0_15 = arith.constant 0 : index
    %c0_16 = arith.constant 0 : index
    %15 = vector.load %arg8[%14, %c0_15, %c0_16] : memref<16x8x512xf32, #tpu.memory_space<vmem>>, vector<1x8x512xf32>
    %16 = vector.shape_cast %15 : vector<1x8x512xf32> to vector<8x512xf32>
    %c0_17 = arith.constant 0 : index
    %c0_18 = arith.constant 0 : index
    %17 = vector.load %arg3[%c0_17, %c0_18] : memref<128x512xf32, #tpu.memory_space<vmem>>, vector<128x512xf32>
    %cst_19 = arith.constant dense<0.000000e+00> : vector<8x512xf32>
    %18 = tpu.matmul %12, %17, %cst_19 {dimension_numbers = #tpu.dot_dimension_numbers<[1], [0], [0], [1], [0, 0, 1, 1], [], []>} : vector<8x128xf32>, vector<128x512xf32>, vector<8x512xf32> -> vector<8x512xf32>
    %19 = arith.addf %16, %18 : vector<8x512xf32>
    %20 = vector.extract_strided_slice %19 {offsets = [0, 0], sizes = [8, 128], strides = [1, 1]} : vector<8x512xf32> to vector<8x128xf32>
    %21 = arith.negf %20 : vector<8x128xf32>
    %22 = math.exp %21 : vector<8x128xf32>
    %cst_20 = arith.constant 1.000000e+00 : f32
    %23 = vector.broadcast %cst_20 : f32 to vector<8x128xf32>
    %24 = arith.addf %23, %22 : vector<8x128xf32>
    %25 = arith.divf %23, %24 : vector<8x128xf32>
    %26 = vector.extract_strided_slice %19 {offsets = [0, 128], sizes = [8, 128], strides = [1, 1]} : vector<8x512xf32> to vector<8x128xf32>
    %27 = arith.negf %26 : vector<8x128xf32>
    %28 = math.exp %27 : vector<8x128xf32>
    %cst_21 = arith.constant 1.000000e+00 : f32
    %29 = vector.broadcast %cst_21 : f32 to vector<8x128xf32>
    %30 = arith.addf %29, %28 : vector<8x128xf32>
    %31 = arith.divf %29, %30 : vector<8x128xf32>
    %32 = vector.extract_strided_slice %19 {offsets = [0, 256], sizes = [8, 128], strides = [1, 1]} : vector<8x512xf32> to vector<8x128xf32>
    %33 = arith.negf %32 : vector<8x128xf32>
    %34 = math.exp %33 : vector<8x128xf32>
    %cst_22 = arith.constant 1.000000e+00 : f32
    %35 = vector.broadcast %cst_22 : f32 to vector<8x128xf32>
    %36 = arith.addf %35, %34 : vector<8x128xf32>
    %37 = arith.divf %35, %36 : vector<8x128xf32>
    %38 = vector.extract_strided_slice %19 {offsets = [0, 384], sizes = [8, 128], strides = [1, 1]} : vector<8x512xf32> to vector<8x128xf32>
    %39 = math.tanh %38 : vector<8x128xf32>
    %40 = arith.mulf %31, %13 : vector<8x128xf32>
    %41 = arith.mulf %25, %39 : vector<8x128xf32>
    %42 = arith.addf %40, %41 : vector<8x128xf32>
    %43 = math.tanh %42 : vector<8x128xf32>
    %44 = arith.mulf %37, %43 : vector<8x128xf32>
    %45 = arith.index_cast %c0_i32_14 : i32 to index
    %c0_23 = arith.constant 0 : index
    %c0_24 = arith.constant 0 : index
    %46 = vector.load %arg6[%45, %c0_23, %c0_24] : memref<16x8x128xf32, #tpu.memory_space<vmem>>, vector<1x8x128xf32>
    %47 = vector.shape_cast %46 : vector<1x8x128xf32> to vector<8x128xf32>
    %48 = vector.shape_cast %44 : vector<8x128xf32> to vector<1x8x128xf32>
    tpu.vector_store %arg6[%45, %c0_23, %c0_24], %48 {strides = array<i32>} : memref<16x8x128xf32, #tpu.memory_space<vmem>>, vector<1x8x128xf32>,
    %c1_i32 = arith.constant 1 : i32
    %49 = arith.index_cast %c1_i32 : i32 to index
    %c0_25 = arith.constant 0 : index
    %c0_26 = arith.constant 0 : index
    %50 = vector.load %arg8[%49, %c0_25, %c0_26] : memref<16x8x512xf32, #tpu.memory_space<vmem>>, vector<1x8x512xf32>
    %51 = vector.shape_cast %50 : vector<1x8x512xf32> to vector<8x512xf32>
    %c0_27 = arith.constant 0 : index
    %c0_28 = arith.constant 0 : index
    %52 = vector.load %arg3[%c0_27, %c0_28] : memref<128x512xf32, #tpu.memory_space<vmem>>, vector<128x512xf32>
    %cst_29 = arith.constant dense<0.000000e+00> : vector<8x512xf32>
    %53 = tpu.matmul %44, %52, %cst_29 {dimension_numbers = #tpu.dot_dimension_numbers<[1], [0], [0], [1], [0, 0, 1, 1], [], []>} : vector<8x128xf32>, vector<128x512xf32>, vector<8x512xf32> -> vector<8x512xf32>
    %54 = arith.addf %51, %53 : vector<8x512xf32>
    %55 = vector.extract_strided_slice %54 {offsets = [0, 0], sizes = [8, 128], strides = [1, 1]} : vector<8x512xf32> to vector<8x128xf32>
    %56 = arith.negf %55 : vector<8x128xf32>
    %57 = math.exp %56 : vector<8x128xf32>
    %cst_30 = arith.constant 1.000000e+00 : f32
    %58 = vector.broadcast %cst_30 : f32 to vector<8x128xf32>
    %59 = arith.addf %58, %57 : vector<8x128xf32>
    %60 = arith.divf %58, %59 : vector<8x128xf32>
    %61 = vector.extract_strided_slice %54 {offsets = [0, 128], sizes = [8, 128], strides = [1, 1]} : vector<8x512xf32> to vector<8x128xf32>
    %62 = arith.negf %61 : vector<8x128xf32>
    %63 = math.exp %62 : vector<8x128xf32>
    %cst_31 = arith.constant 1.000000e+00 : f32
    %64 = vector.broadcast %cst_31 : f32 to vector<8x128xf32>
    %65 = arith.addf %64, %63 : vector<8x128xf32>
    %66 = arith.divf %64, %65 : vector<8x128xf32>
    %67 = vector.extract_strided_slice %54 {offsets = [0, 256], sizes = [8, 128], strides = [1, 1]} : vector<8x512xf32> to vector<8x128xf32>
    %68 = arith.negf %67 : vector<8x128xf32>
    %69 = math.exp %68 : vector<8x128xf32>
    %cst_32 = arith.constant 1.000000e+00 : f32
    %70 = vector.broadcast %cst_32 : f32 to vector<8x128xf32>
    %71 = arith.addf %70, %69 : vector<8x128xf32>
    %72 = arith.divf %70, %71 : vector<8x128xf32>
    %73 = vector.extract_strided_slice %54 {offsets = [0, 384], sizes = [8, 128], strides = [1, 1]} : vector<8x512xf32> to vector<8x128xf32>
    %74 = math.tanh %73 : vector<8x128xf32>
    %75 = arith.mulf %66, %42 : vector<8x128xf32>
    %76 = arith.mulf %60, %74 : vector<8x128xf32>
    %77 = arith.addf %75, %76 : vector<8x128xf32>
    %78 = math.tanh %77 : vector<8x128xf32>
    %79 = arith.mulf %72, %78 : vector<8x128xf32>
    %80 = arith.index_cast %c1_i32 : i32 to index
    %c0_33 = arith.constant 0 : index
    %c0_34 = arith.constant 0 : index
    %81 = vector.load %arg6[%80, %c0_33, %c0_34] : memref<16x8x128xf32, #tpu.memory_space<vmem>>, vector<1x8x128xf32>
    %82 = vector.shape_cast %81 : vector<1x8x128xf32> to vector<8x128xf32>
    %83 = vector.shape_cast %79 : vector<8x128xf32> to vector<1x8x128xf32>
    tpu.vector_store %arg6[%80, %c0_33, %c0_34], %83 {strides = array<i32>} : memref<16x8x128xf32, #tpu.memory_space<vmem>>, vector<1x8x128xf32>,
    %c2_i32 = arith.constant 2 : i32
    %84 = arith.index_cast %c2_i32 : i32 to index
    %c0_35 = arith.constant 0 : index
    %c0_36 = arith.constant 0 : index
    %85 = vector.load %arg8[%84, %c0_35, %c0_36] : memref<16x8x512xf32, #tpu.memory_space<vmem>>, vector<1x8x512xf32>
    %86 = vector.shape_cast %85 : vector<1x8x512xf32> to vector<8x512xf32>
    %c0_37 = arith.constant 0 : index
    %c0_38 = arith.constant 0 : index
    %87 = vector.load %arg3[%c0_37, %c0_38] : memref<128x512xf32, #tpu.memory_space<vmem>>, vector<128x512xf32>
    %cst_39 = arith.constant dense<0.000000e+00> : vector<8x512xf32>
    %88 = tpu.matmul %79, %87, %cst_39 {dimension_numbers = #tpu.dot_dimension_numbers<[1], [0], [0], [1], [0, 0, 1, 1], [], []>} : vector<8x128xf32>, vector<128x512xf32>, vector<8x512xf32> -> vector<8x512xf32>
    %89 = arith.addf %86, %88 : vector<8x512xf32>
    %90 = vector.extract_strided_slice %89 {offsets = [0, 0], sizes = [8, 128], strides = [1, 1]} : vector<8x512xf32> to vector<8x128xf32>
    %91 = arith.negf %90 : vector<8x128xf32>
    %92 = math.exp %91 : vector<8x128xf32>
    %cst_40 = arith.constant 1.000000e+00 : f32
    %93 = vector.broadcast %cst_40 : f32 to vector<8x128xf32>
    %94 = arith.addf %93, %92 : vector<8x128xf32>
    %95 = arith.divf %93, %94 : vector<8x128xf32>
    %96 = vector.extract_strided_slice %89 {offsets = [0, 128], sizes = [8, 128], strides = [1, 1]} : vector<8x512xf32> to vector<8x128xf32>
    %97 = arith.negf %96 : vector<8x128xf32>
    %98 = math.exp %97 : vector<8x128xf32>
    %cst_41 = arith.constant 1.000000e+00 : f32
    %99 = vector.broadcast %cst_41 : f32 to vector<8x128xf32>
    %100 = arith.addf %99, %98 : vector<8x128xf32>
    %101 = arith.divf %99, %100 : vector<8x128xf32>
    %102 = vector.extract_strided_slice %89 {offsets = [0, 256], sizes = [8, 128], strides = [1, 1]} : vector<8x512xf32> to vector<8x128xf32>
    %103 = arith.negf %102 : vector<8x128xf32>
    %104 = math.exp %103 : vector<8x128xf32>
    %cst_42 = arith.constant 1.000000e+00 : f32
    %105 = vector.broadcast %cst_42 : f32 to vector<8x128xf32>
    %106 = arith.addf %105, %104 : vector<8x128xf32>
    %107 = arith.divf %105, %106 : vector<8x128xf32>
    %108 = vector.extract_strided_slice %89 {offsets = [0, 384], sizes = [8, 128], strides = [1, 1]} : vector<8x512xf32> to vector<8x128xf32>
    %109 = math.tanh %108 : vector<8x128xf32>
    %110 = arith.mulf %101, %77 : vector<8x128xf32>
    %111 = arith.mulf %95, %109 : vector<8x128xf32>
    %112 = arith.addf %110, %111 : vector<8x128xf32>
    %113 = math.tanh %112 : vector<8x128xf32>
    %114 = arith.mulf %107, %113 : vector<8x128xf32>
    %115 = arith.index_cast %c2_i32 : i32 to index
    %c0_43 = arith.constant 0 : index
    %c0_44 = arith.constant 0 : index
    %116 = vector.load %arg6[%115, %c0_43, %c0_44] : memref<16x8x128xf32, #tpu.memory_space<vmem>>, vector<1x8x128xf32>
    %117 = vector.shape_cast %116 : vector<1x8x128xf32> to vector<8x128xf32>
    %118 = vector.shape_cast %114 : vector<8x128xf32> to vector<1x8x128xf32>
    tpu.vector_store %arg6[%115, %c0_43, %c0_44], %118 {strides = array<i32>} : memref<16x8x128xf32, #tpu.memory_space<vmem>>, vector<1x8x128xf32>,
    %c3_i32 = arith.constant 3 : i32
    %119 = arith.index_cast %c3_i32 : i32 to index
    %c0_45 = arith.constant 0 : index
    %c0_46 = arith.constant 0 : index
    %120 = vector.load %arg8[%119, %c0_45, %c0_46] : memref<16x8x512xf32, #tpu.memory_space<vmem>>, vector<1x8x512xf32>
    %121 = vector.shape_cast %120 : vector<1x8x512xf32> to vector<8x512xf32>
    %c0_47 = arith.constant 0 : index
    %c0_48 = arith.constant 0 : index
    %122 = vector.load %arg3[%c0_47, %c0_48] : memref<128x512xf32, #tpu.memory_space<vmem>>, vector<128x512xf32>
    %cst_49 = arith.constant dense<0.000000e+00> : vector<8x512xf32>
    %123 = tpu.matmul %114, %122, %cst_49 {dimension_numbers = #tpu.dot_dimension_numbers<[1], [0], [0], [1], [0, 0, 1, 1], [], []>} : vector<8x128xf32>, vector<128x512xf32>, vector<8x512xf32> -> vector<8x512xf32>
    %124 = arith.addf %121, %123 : vector<8x512xf32>
    %125 = vector.extract_strided_slice %124 {offsets = [0, 0], sizes = [8, 128], strides = [1, 1]} : vector<8x512xf32> to vector<8x128xf32>
    %126 = arith.negf %125 : vector<8x128xf32>
    %127 = math.exp %126 : vector<8x128xf32>
    %cst_50 = arith.constant 1.000000e+00 : f32
    %128 = vector.broadcast %cst_50 : f32 to vector<8x128xf32>
    %129 = arith.addf %128, %127 : vector<8x128xf32>
    %130 = arith.divf %128, %129 : vector<8x128xf32>
    %131 = vector.extract_strided_slice %124 {offsets = [0, 128], sizes = [8, 128], strides = [1, 1]} : vector<8x512xf32> to vector<8x128xf32>
    %132 = arith.negf %131 : vector<8x128xf32>
    %133 = math.exp %132 : vector<8x128xf32>
    %cst_51 = arith.constant 1.000000e+00 : f32
    %134 = vector.broadcast %cst_51 : f32 to vector<8x128xf32>
    %135 = arith.addf %134, %133 : vector<8x128xf32>
    %136 = arith.divf %134, %135 : vector<8x128xf32>
    %137 = vector.extract_strided_slice %124 {offsets = [0, 256], sizes = [8, 128], strides = [1, 1]} : vector<8x512xf32> to vector<8x128xf32>
    %138 = arith.negf %137 : vector<8x128xf32>
    %139 = math.exp %138 : vector<8x128xf32>
    %cst_52 = arith.constant 1.000000e+00 : f32
    %140 = vector.broadcast %cst_52 : f32 to vector<8x128xf32>
    %141 = arith.addf %140, %139 : vector<8x128xf32>
    %142 = arith.divf %140, %141 : vector<8x128xf32>
    %143 = vector.extract_strided_slice %124 {offsets = [0, 384], sizes = [8, 128], strides = [1, 1]} : vector<8x512xf32> to vector<8x128xf32>
    %144 = math.tanh %143 : vector<8x128xf32>
    %145 = arith.mulf %136, %112 : vector<8x128xf32>
    %146 = arith.mulf %130, %144 : vector<8x128xf32>
    %147 = arith.addf %145, %146 : vector<8x128xf32>
    %148 = math.tanh %147 : vector<8x128xf32>
    %149 = arith.mulf %142, %148 : vector<8x128xf32>
    %150 = arith.index_cast %c3_i32 : i32 to index
    %c0_53 = arith.constant 0 : index
    %c0_54 = arith.constant 0 : index
    %151 = vector.load %arg6[%150, %c0_53, %c0_54] : memref<16x8x128xf32, #tpu.memory_space<vmem>>, vector<1x8x128xf32>
    %152 = vector.shape_cast %151 : vector<1x8x128xf32> to vector<8x128xf32>
    %153 = vector.shape_cast %149 : vector<8x128xf32> to vector<1x8x128xf32>
    tpu.vector_store %arg6[%150, %c0_53, %c0_54], %153 {strides = array<i32>} : memref<16x8x128xf32, #tpu.memory_space<vmem>>, vector<1x8x128xf32>,
    %c4_i32 = arith.constant 4 : i32
    %154 = arith.index_cast %c4_i32 : i32 to index
    %c0_55 = arith.constant 0 : index
    %c0_56 = arith.constant 0 : index
    %155 = vector.load %arg8[%154, %c0_55, %c0_56] : memref<16x8x512xf32, #tpu.memory_space<vmem>>, vector<1x8x512xf32>
    %156 = vector.shape_cast %155 : vector<1x8x512xf32> to vector<8x512xf32>
    %c0_57 = arith.constant 0 : index
    %c0_58 = arith.constant 0 : index
    %157 = vector.load %arg3[%c0_57, %c0_58] : memref<128x512xf32, #tpu.memory_space<vmem>>, vector<128x512xf32>
    %cst_59 = arith.constant dense<0.000000e+00> : vector<8x512xf32>
    %158 = tpu.matmul %149, %157, %cst_59 {dimension_numbers = #tpu.dot_dimension_numbers<[1], [0], [0], [1], [0, 0, 1, 1], [], []>} : vector<8x128xf32>, vector<128x512xf32>, vector<8x512xf32> -> vector<8x512xf32>
    %159 = arith.addf %156, %158 : vector<8x512xf32>
    %160 = vector.extract_strided_slice %159 {offsets = [0, 0], sizes = [8, 128], strides = [1, 1]} : vector<8x512xf32> to vector<8x128xf32>
    %161 = arith.negf %160 : vector<8x128xf32>
    %162 = math.exp %161 : vector<8x128xf32>
    %cst_60 = arith.constant 1.000000e+00 : f32
    %163 = vector.broadcast %cst_60 : f32 to vector<8x128xf32>
    %164 = arith.addf %163, %162 : vector<8x128xf32>
    %165 = arith.divf %163, %164 : vector<8x128xf32>
    %166 = vector.extract_strided_slice %159 {offsets = [0, 128], sizes = [8, 128], strides = [1, 1]} : vector<8x512xf32> to vector<8x128xf32>
    %167 = arith.negf %166 : vector<8x128xf32>
    %168 = math.exp %167 : vector<8x128xf32>
    %cst_61 = arith.constant 1.000000e+00 : f32
    %169 = vector.broadcast %cst_61 : f32 to vector<8x128xf32>
    %170 = arith.addf %169, %168 : vector<8x128xf32>
    %171 = arith.divf %169, %170 : vector<8x128xf32>
    %172 = vector.extract_strided_slice %159 {offsets = [0, 256], sizes = [8, 128], strides = [1, 1]} : vector<8x512xf32> to vector<8x128xf32>
    %173 = arith.negf %172 : vector<8x128xf32>
    %174 = math.exp %173 : vector<8x128xf32>
    %cst_62 = arith.constant 1.000000e+00 : f32
    %175 = vector.broadcast %cst_62 : f32 to vector<8x128xf32>
    %176 = arith.addf %175, %174 : vector<8x128xf32>
    %177 = arith.divf %175, %176 : vector<8x128xf32>
    %178 = vector.extract_strided_slice %159 {offsets = [0, 384], sizes = [8, 128], strides = [1, 1]} : vector<8x512xf32> to vector<8x128xf32>
    %179 = math.tanh %178 : vector<8x128xf32>
    %180 = arith.mulf %171, %147 : vector<8x128xf32>
    %181 = arith.mulf %165, %179 : vector<8x128xf32>
    %182 = arith.addf %180, %181 : vector<8x128xf32>
    %183 = math.tanh %182 : vector<8x128xf32>
    %184 = arith.mulf %177, %183 : vector<8x128xf32>
    %185 = arith.index_cast %c4_i32 : i32 to index
    %c0_63 = arith.constant 0 : index
    %c0_64 = arith.constant 0 : index
    %186 = vector.load %arg6[%185, %c0_63, %c0_64] : memref<16x8x128xf32, #tpu.memory_space<vmem>>, vector<1x8x128xf32>
    %187 = vector.shape_cast %186 : vector<1x8x128xf32> to vector<8x128xf32>
    %188 = vector.shape_cast %184 : vector<8x128xf32> to vector<1x8x128xf32>
    tpu.vector_store %arg6[%185, %c0_63, %c0_64], %188 {strides = array<i32>} : memref<16x8x128xf32, #tpu.memory_space<vmem>>, vector<1x8x128xf32>,
    %c5_i32 = arith.constant 5 : i32
    %189 = arith.index_cast %c5_i32 : i32 to index
    %c0_65 = arith.constant 0 : index
    %c0_66 = arith.constant 0 : index
    %190 = vector.load %arg8[%189, %c0_65, %c0_66] : memref<16x8x512xf32, #tpu.memory_space<vmem>>, vector<1x8x512xf32>
    %191 = vector.shape_cast %190 : vector<1x8x512xf32> to vector<8x512xf32>
    %c0_67 = arith.constant 0 : index
    %c0_68 = arith.constant 0 : index
    %192 = vector.load %arg3[%c0_67, %c0_68] : memref<128x512xf32, #tpu.memory_space<vmem>>, vector<128x512xf32>
    %cst_69 = arith.constant dense<0.000000e+00> : vector<8x512xf32>
    %193 = tpu.matmul %184, %192, %cst_69 {dimension_numbers = #tpu.dot_dimension_numbers<[1], [0], [0], [1], [0, 0, 1, 1], [], []>} : vector<8x128xf32>, vector<128x512xf32>, vector<8x512xf32> -> vector<8x512xf32>
    %194 = arith.addf %191, %193 : vector<8x512xf32>
    %195 = vector.extract_strided_slice %194 {offsets = [0, 0], sizes = [8, 128], strides = [1, 1]} : vector<8x512xf32> to vector<8x128xf32>
    %196 = arith.negf %195 : vector<8x128xf32>
    %197 = math.exp %196 : vector<8x128xf32>
    %cst_70 = arith.constant 1.000000e+00 : f32
    %198 = vector.broadcast %cst_70 : f32 to vector<8x128xf32>
    %199 = arith.addf %198, %197 : vector<8x128xf32>
    %200 = arith.divf %198, %199 : vector<8x128xf32>
    %201 = vector.extract_strided_slice %194 {offsets = [0, 128], sizes = [8, 128], strides = [1, 1]} : vector<8x512xf32> to vector<8x128xf32>
    %202 = arith.negf %201 : vector<8x128xf32>
    %203 = math.exp %202 : vector<8x128xf32>
    %cst_71 = arith.constant 1.000000e+00 : f32
    %204 = vector.broadcast %cst_71 : f32 to vector<8x128xf32>
    %205 = arith.addf %204, %203 : vector<8x128xf32>
    %206 = arith.divf %204, %205 : vector<8x128xf32>
    %207 = vector.extract_strided_slice %194 {offsets = [0, 256], sizes = [8, 128], strides = [1, 1]} : vector<8x512xf32> to vector<8x128xf32>
    %208 = arith.negf %207 : vector<8x128xf32>
    %209 = math.exp %208 : vector<8x128xf32>
    %cst_72 = arith.constant 1.000000e+00 : f32
    %210 = vector.broadcast %cst_72 : f32 to vector<8x128xf32>
    %211 = arith.addf %210, %209 : vector<8x128xf32>
    %212 = arith.divf %210, %211 : vector<8x128xf32>
    %213 = vector.extract_strided_slice %194 {offsets = [0, 384], sizes = [8, 128], strides = [1, 1]} : vector<8x512xf32> to vector<8x128xf32>
    %214 = math.tanh %213 : vector<8x128xf32>
    %215 = arith.mulf %206, %182 : vector<8x128xf32>
    %216 = arith.mulf %200, %214 : vector<8x128xf32>
    %217 = arith.addf %215, %216 : vector<8x128xf32>
    %218 = math.tanh %217 : vector<8x128xf32>
    %219 = arith.mulf %212, %218 : vector<8x128xf32>
    %220 = arith.index_cast %c5_i32 : i32 to index
    %c0_73 = arith.constant 0 : index
    %c0_74 = arith.constant 0 : index
    %221 = vector.load %arg6[%220, %c0_73, %c0_74] : memref<16x8x128xf32, #tpu.memory_space<vmem>>, vector<1x8x128xf32>
    %222 = vector.shape_cast %221 : vector<1x8x128xf32> to vector<8x128xf32>
    %223 = vector.shape_cast %219 : vector<8x128xf32> to vector<1x8x128xf32>
    tpu.vector_store %arg6[%220, %c0_73, %c0_74], %223 {strides = array<i32>} : memref<16x8x128xf32, #tpu.memory_space<vmem>>, vector<1x8x128xf32>,
    %c6_i32 = arith.constant 6 : i32
    %224 = arith.index_cast %c6_i32 : i32 to index
    %c0_75 = arith.constant 0 : index
    %c0_76 = arith.constant 0 : index
    %225 = vector.load %arg8[%224, %c0_75, %c0_76] : memref<16x8x512xf32, #tpu.memory_space<vmem>>, vector<1x8x512xf32>
    %226 = vector.shape_cast %225 : vector<1x8x512xf32> to vector<8x512xf32>
    %c0_77 = arith.constant 0 : index
    %c0_78 = arith.constant 0 : index
    %227 = vector.load %arg3[%c0_77, %c0_78] : memref<128x512xf32, #tpu.memory_space<vmem>>, vector<128x512xf32>
    %cst_79 = arith.constant dense<0.000000e+00> : vector<8x512xf32>
    %228 = tpu.matmul %219, %227, %cst_79 {dimension_numbers = #tpu.dot_dimension_numbers<[1], [0], [0], [1], [0, 0, 1, 1], [], []>} : vector<8x128xf32>, vector<128x512xf32>, vector<8x512xf32> -> vector<8x512xf32>
    %229 = arith.addf %226, %228 : vector<8x512xf32>
    %230 = vector.extract_strided_slice %229 {offsets = [0, 0], sizes = [8, 128], strides = [1, 1]} : vector<8x512xf32> to vector<8x128xf32>
    %231 = arith.negf %230 : vector<8x128xf32>
    %232 = math.exp %231 : vector<8x128xf32>
    %cst_80 = arith.constant 1.000000e+00 : f32
    %233 = vector.broadcast %cst_80 : f32 to vector<8x128xf32>
    %234 = arith.addf %233, %232 : vector<8x128xf32>
    %235 = arith.divf %233, %234 : vector<8x128xf32>
    %236 = vector.extract_strided_slice %229 {offsets = [0, 128], sizes = [8, 128], strides = [1, 1]} : vector<8x512xf32> to vector<8x128xf32>
    %237 = arith.negf %236 : vector<8x128xf32>
    %238 = math.exp %237 : vector<8x128xf32>
    %cst_81 = arith.constant 1.000000e+00 : f32
    %239 = vector.broadcast %cst_81 : f32 to vector<8x128xf32>
    %240 = arith.addf %239, %238 : vector<8x128xf32>
    %241 = arith.divf %239, %240 : vector<8x128xf32>
    %242 = vector.extract_strided_slice %229 {offsets = [0, 256], sizes = [8, 128], strides = [1, 1]} : vector<8x512xf32> to vector<8x128xf32>
    %243 = arith.negf %242 : vector<8x128xf32>
    %244 = math.exp %243 : vector<8x128xf32>
    %cst_82 = arith.constant 1.000000e+00 : f32
    %245 = vector.broadcast %cst_82 : f32 to vector<8x128xf32>
    %246 = arith.addf %245, %244 : vector<8x128xf32>
    %247 = arith.divf %245, %246 : vector<8x128xf32>
    %248 = vector.extract_strided_slice %229 {offsets = [0, 384], sizes = [8, 128], strides = [1, 1]} : vector<8x512xf32> to vector<8x128xf32>
    %249 = math.tanh %248 : vector<8x128xf32>
    %250 = arith.mulf %241, %217 : vector<8x128xf32>
    %251 = arith.mulf %235, %249 : vector<8x128xf32>
    %252 = arith.addf %250, %251 : vector<8x128xf32>
    %253 = math.tanh %252 : vector<8x128xf32>
    %254 = arith.mulf %247, %253 : vector<8x128xf32>
    %255 = arith.index_cast %c6_i32 : i32 to index
    %c0_83 = arith.constant 0 : index
    %c0_84 = arith.constant 0 : index
    %256 = vector.load %arg6[%255, %c0_83, %c0_84] : memref<16x8x128xf32, #tpu.memory_space<vmem>>, vector<1x8x128xf32>
    %257 = vector.shape_cast %256 : vector<1x8x128xf32> to vector<8x128xf32>
    %258 = vector.shape_cast %254 : vector<8x128xf32> to vector<1x8x128xf32>
    tpu.vector_store %arg6[%255, %c0_83, %c0_84], %258 {strides = array<i32>} : memref<16x8x128xf32, #tpu.memory_space<vmem>>, vector<1x8x128xf32>,
    %c7_i32 = arith.constant 7 : i32
    %259 = arith.index_cast %c7_i32 : i32 to index
    %c0_85 = arith.constant 0 : index
    %c0_86 = arith.constant 0 : index
    %260 = vector.load %arg8[%259, %c0_85, %c0_86] : memref<16x8x512xf32, #tpu.memory_space<vmem>>, vector<1x8x512xf32>
    %261 = vector.shape_cast %260 : vector<1x8x512xf32> to vector<8x512xf32>
    %c0_87 = arith.constant 0 : index
    %c0_88 = arith.constant 0 : index
    %262 = vector.load %arg3[%c0_87, %c0_88] : memref<128x512xf32, #tpu.memory_space<vmem>>, vector<128x512xf32>
    %cst_89 = arith.constant dense<0.000000e+00> : vector<8x512xf32>
    %263 = tpu.matmul %254, %262, %cst_89 {dimension_numbers = #tpu.dot_dimension_numbers<[1], [0], [0], [1], [0, 0, 1, 1], [], []>} : vector<8x128xf32>, vector<128x512xf32>, vector<8x512xf32> -> vector<8x512xf32>
    %264 = arith.addf %261, %263 : vector<8x512xf32>
    %265 = vector.extract_strided_slice %264 {offsets = [0, 0], sizes = [8, 128], strides = [1, 1]} : vector<8x512xf32> to vector<8x128xf32>
    %266 = arith.negf %265 : vector<8x128xf32>
    %267 = math.exp %266 : vector<8x128xf32>
    %cst_90 = arith.constant 1.000000e+00 : f32
    %268 = vector.broadcast %cst_90 : f32 to vector<8x128xf32>
    %269 = arith.addf %268, %267 : vector<8x128xf32>
    %270 = arith.divf %268, %269 : vector<8x128xf32>
    %271 = vector.extract_strided_slice %264 {offsets = [0, 128], sizes = [8, 128], strides = [1, 1]} : vector<8x512xf32> to vector<8x128xf32>
    %272 = arith.negf %271 : vector<8x128xf32>
    %273 = math.exp %272 : vector<8x128xf32>
    %cst_91 = arith.constant 1.000000e+00 : f32
    %274 = vector.broadcast %cst_91 : f32 to vector<8x128xf32>
    %275 = arith.addf %274, %273 : vector<8x128xf32>
    %276 = arith.divf %274, %275 : vector<8x128xf32>
    %277 = vector.extract_strided_slice %264 {offsets = [0, 256], sizes = [8, 128], strides = [1, 1]} : vector<8x512xf32> to vector<8x128xf32>
    %278 = arith.negf %277 : vector<8x128xf32>
    %279 = math.exp %278 : vector<8x128xf32>
    %cst_92 = arith.constant 1.000000e+00 : f32
    %280 = vector.broadcast %cst_92 : f32 to vector<8x128xf32>
    %281 = arith.addf %280, %279 : vector<8x128xf32>
    %282 = arith.divf %280, %281 : vector<8x128xf32>
    %283 = vector.extract_strided_slice %264 {offsets = [0, 384], sizes = [8, 128], strides = [1, 1]} : vector<8x512xf32> to vector<8x128xf32>
    %284 = math.tanh %283 : vector<8x128xf32>
    %285 = arith.mulf %276, %252 : vector<8x128xf32>
    %286 = arith.mulf %270, %284 : vector<8x128xf32>
    %287 = arith.addf %285, %286 : vector<8x128xf32>
    %288 = math.tanh %287 : vector<8x128xf32>
    %289 = arith.mulf %282, %288 : vector<8x128xf32>
    %290 = arith.index_cast %c7_i32 : i32 to index
    %c0_93 = arith.constant 0 : index
    %c0_94 = arith.constant 0 : index
    %291 = vector.load %arg6[%290, %c0_93, %c0_94] : memref<16x8x128xf32, #tpu.memory_space<vmem>>, vector<1x8x128xf32>
    %292 = vector.shape_cast %291 : vector<1x8x128xf32> to vector<8x128xf32>
    %293 = vector.shape_cast %289 : vector<8x128xf32> to vector<1x8x128xf32>
    tpu.vector_store %arg6[%290, %c0_93, %c0_94], %293 {strides = array<i32>} : memref<16x8x128xf32, #tpu.memory_space<vmem>>, vector<1x8x128xf32>,
    %c8_i32 = arith.constant 8 : i32
    %294 = arith.index_cast %c8_i32 : i32 to index
    %c0_95 = arith.constant 0 : index
    %c0_96 = arith.constant 0 : index
    %295 = vector.load %arg8[%294, %c0_95, %c0_96] : memref<16x8x512xf32, #tpu.memory_space<vmem>>, vector<1x8x512xf32>
    %296 = vector.shape_cast %295 : vector<1x8x512xf32> to vector<8x512xf32>
    %c0_97 = arith.constant 0 : index
    %c0_98 = arith.constant 0 : index
    %297 = vector.load %arg3[%c0_97, %c0_98] : memref<128x512xf32, #tpu.memory_space<vmem>>, vector<128x512xf32>
    %cst_99 = arith.constant dense<0.000000e+00> : vector<8x512xf32>
    %298 = tpu.matmul %289, %297, %cst_99 {dimension_numbers = #tpu.dot_dimension_numbers<[1], [0], [0], [1], [0, 0, 1, 1], [], []>} : vector<8x128xf32>, vector<128x512xf32>, vector<8x512xf32> -> vector<8x512xf32>
    %299 = arith.addf %296, %298 : vector<8x512xf32>
    %300 = vector.extract_strided_slice %299 {offsets = [0, 0], sizes = [8, 128], strides = [1, 1]} : vector<8x512xf32> to vector<8x128xf32>
    %301 = arith.negf %300 : vector<8x128xf32>
    %302 = math.exp %301 : vector<8x128xf32>
    %cst_100 = arith.constant 1.000000e+00 : f32
    %303 = vector.broadcast %cst_100 : f32 to vector<8x128xf32>
    %304 = arith.addf %303, %302 : vector<8x128xf32>
    %305 = arith.divf %303, %304 : vector<8x128xf32>
    %306 = vector.extract_strided_slice %299 {offsets = [0, 128], sizes = [8, 128], strides = [1, 1]} : vector<8x512xf32> to vector<8x128xf32>
    %307 = arith.negf %306 : vector<8x128xf32>
    %308 = math.exp %307 : vector<8x128xf32>
    %cst_101 = arith.constant 1.000000e+00 : f32
    %309 = vector.broadcast %cst_101 : f32 to vector<8x128xf32>
    %310 = arith.addf %309, %308 : vector<8x128xf32>
    %311 = arith.divf %309, %310 : vector<8x128xf32>
    %312 = vector.extract_strided_slice %299 {offsets = [0, 256], sizes = [8, 128], strides = [1, 1]} : vector<8x512xf32> to vector<8x128xf32>
    %313 = arith.negf %312 : vector<8x128xf32>
    %314 = math.exp %313 : vector<8x128xf32>
    %cst_102 = arith.constant 1.000000e+00 : f32
    %315 = vector.broadcast %cst_102 : f32 to vector<8x128xf32>
    %316 = arith.addf %315, %314 : vector<8x128xf32>
    %317 = arith.divf %315, %316 : vector<8x128xf32>
    %318 = vector.extract_strided_slice %299 {offsets = [0, 384], sizes = [8, 128], strides = [1, 1]} : vector<8x512xf32> to vector<8x128xf32>
    %319 = math.tanh %318 : vector<8x128xf32>
    %320 = arith.mulf %311, %287 : vector<8x128xf32>
    %321 = arith.mulf %305, %319 : vector<8x128xf32>
    %322 = arith.addf %320, %321 : vector<8x128xf32>
    %323 = math.tanh %322 : vector<8x128xf32>
    %324 = arith.mulf %317, %323 : vector<8x128xf32>
    %325 = arith.index_cast %c8_i32 : i32 to index
    %c0_103 = arith.constant 0 : index
    %c0_104 = arith.constant 0 : index
    %326 = vector.load %arg6[%325, %c0_103, %c0_104] : memref<16x8x128xf32, #tpu.memory_space<vmem>>, vector<1x8x128xf32>
    %327 = vector.shape_cast %326 : vector<1x8x128xf32> to vector<8x128xf32>
    %328 = vector.shape_cast %324 : vector<8x128xf32> to vector<1x8x128xf32>
    tpu.vector_store %arg6[%325, %c0_103, %c0_104], %328 {strides = array<i32>} : memref<16x8x128xf32, #tpu.memory_space<vmem>>, vector<1x8x128xf32>,
    %c9_i32 = arith.constant 9 : i32
    %329 = arith.index_cast %c9_i32 : i32 to index
    %c0_105 = arith.constant 0 : index
    %c0_106 = arith.constant 0 : index
    %330 = vector.load %arg8[%329, %c0_105, %c0_106] : memref<16x8x512xf32, #tpu.memory_space<vmem>>, vector<1x8x512xf32>
    %331 = vector.shape_cast %330 : vector<1x8x512xf32> to vector<8x512xf32>
    %c0_107 = arith.constant 0 : index
    %c0_108 = arith.constant 0 : index
    %332 = vector.load %arg3[%c0_107, %c0_108] : memref<128x512xf32, #tpu.memory_space<vmem>>, vector<128x512xf32>
    %cst_109 = arith.constant dense<0.000000e+00> : vector<8x512xf32>
    %333 = tpu.matmul %324, %332, %cst_109 {dimension_numbers = #tpu.dot_dimension_numbers<[1], [0], [0], [1], [0, 0, 1, 1], [], []>} : vector<8x128xf32>, vector<128x512xf32>, vector<8x512xf32> -> vector<8x512xf32>
    %334 = arith.addf %331, %333 : vector<8x512xf32>
    %335 = vector.extract_strided_slice %334 {offsets = [0, 0], sizes = [8, 128], strides = [1, 1]} : vector<8x512xf32> to vector<8x128xf32>
    %336 = arith.negf %335 : vector<8x128xf32>
    %337 = math.exp %336 : vector<8x128xf32>
    %cst_110 = arith.constant 1.000000e+00 : f32
    %338 = vector.broadcast %cst_110 : f32 to vector<8x128xf32>
    %339 = arith.addf %338, %337 : vector<8x128xf32>
    %340 = arith.divf %338, %339 : vector<8x128xf32>
    %341 = vector.extract_strided_slice %334 {offsets = [0, 128], sizes = [8, 128], strides = [1, 1]} : vector<8x512xf32> to vector<8x128xf32>
    %342 = arith.negf %341 : vector<8x128xf32>
    %343 = math.exp %342 : vector<8x128xf32>
    %cst_111 = arith.constant 1.000000e+00 : f32
    %344 = vector.broadcast %cst_111 : f32 to vector<8x128xf32>
    %345 = arith.addf %344, %343 : vector<8x128xf32>
    %346 = arith.divf %344, %345 : vector<8x128xf32>
    %347 = vector.extract_strided_slice %334 {offsets = [0, 256], sizes = [8, 128], strides = [1, 1]} : vector<8x512xf32> to vector<8x128xf32>
    %348 = arith.negf %347 : vector<8x128xf32>
    %349 = math.exp %348 : vector<8x128xf32>
    %cst_112 = arith.constant 1.000000e+00 : f32
    %350 = vector.broadcast %cst_112 : f32 to vector<8x128xf32>
    %351 = arith.addf %350, %349 : vector<8x128xf32>
    %352 = arith.divf %350, %351 : vector<8x128xf32>
    %353 = vector.extract_strided_slice %334 {offsets = [0, 384], sizes = [8, 128], strides = [1, 1]} : vector<8x512xf32> to vector<8x128xf32>
    %354 = math.tanh %353 : vector<8x128xf32>
    %355 = arith.mulf %346, %322 : vector<8x128xf32>
    %356 = arith.mulf %340, %354 : vector<8x128xf32>
    %357 = arith.addf %355, %356 : vector<8x128xf32>
    %358 = math.tanh %357 : vector<8x128xf32>
    %359 = arith.mulf %352, %358 : vector<8x128xf32>
    %360 = arith.index_cast %c9_i32 : i32 to index
    %c0_113 = arith.constant 0 : index
    %c0_114 = arith.constant 0 : index
    %361 = vector.load %arg6[%360, %c0_113, %c0_114] : memref<16x8x128xf32, #tpu.memory_space<vmem>>, vector<1x8x128xf32>
    %362 = vector.shape_cast %361 : vector<1x8x128xf32> to vector<8x128xf32>
    %363 = vector.shape_cast %359 : vector<8x128xf32> to vector<1x8x128xf32>
    tpu.vector_store %arg6[%360, %c0_113, %c0_114], %363 {strides = array<i32>} : memref<16x8x128xf32, #tpu.memory_space<vmem>>, vector<1x8x128xf32>,
    %c10_i32 = arith.constant 10 : i32
    %364 = arith.index_cast %c10_i32 : i32 to index
    %c0_115 = arith.constant 0 : index
    %c0_116 = arith.constant 0 : index
    %365 = vector.load %arg8[%364, %c0_115, %c0_116] : memref<16x8x512xf32, #tpu.memory_space<vmem>>, vector<1x8x512xf32>
    %366 = vector.shape_cast %365 : vector<1x8x512xf32> to vector<8x512xf32>
    %c0_117 = arith.constant 0 : index
    %c0_118 = arith.constant 0 : index
    %367 = vector.load %arg3[%c0_117, %c0_118] : memref<128x512xf32, #tpu.memory_space<vmem>>, vector<128x512xf32>
    %cst_119 = arith.constant dense<0.000000e+00> : vector<8x512xf32>
    %368 = tpu.matmul %359, %367, %cst_119 {dimension_numbers = #tpu.dot_dimension_numbers<[1], [0], [0], [1], [0, 0, 1, 1], [], []>} : vector<8x128xf32>, vector<128x512xf32>, vector<8x512xf32> -> vector<8x512xf32>
    %369 = arith.addf %366, %368 : vector<8x512xf32>
    %370 = vector.extract_strided_slice %369 {offsets = [0, 0], sizes = [8, 128], strides = [1, 1]} : vector<8x512xf32> to vector<8x128xf32>
    %371 = arith.negf %370 : vector<8x128xf32>
    %372 = math.exp %371 : vector<8x128xf32>
    %cst_120 = arith.constant 1.000000e+00 : f32
    %373 = vector.broadcast %cst_120 : f32 to vector<8x128xf32>
    %374 = arith.addf %373, %372 : vector<8x128xf32>
    %375 = arith.divf %373, %374 : vector<8x128xf32>
    %376 = vector.extract_strided_slice %369 {offsets = [0, 128], sizes = [8, 128], strides = [1, 1]} : vector<8x512xf32> to vector<8x128xf32>
    %377 = arith.negf %376 : vector<8x128xf32>
    %378 = math.exp %377 : vector<8x128xf32>
    %cst_121 = arith.constant 1.000000e+00 : f32
    %379 = vector.broadcast %cst_121 : f32 to vector<8x128xf32>
    %380 = arith.addf %379, %378 : vector<8x128xf32>
    %381 = arith.divf %379, %380 : vector<8x128xf32>
    %382 = vector.extract_strided_slice %369 {offsets = [0, 256], sizes = [8, 128], strides = [1, 1]} : vector<8x512xf32> to vector<8x128xf32>
    %383 = arith.negf %382 : vector<8x128xf32>
    %384 = math.exp %383 : vector<8x128xf32>
    %cst_122 = arith.constant 1.000000e+00 : f32
    %385 = vector.broadcast %cst_122 : f32 to vector<8x128xf32>
    %386 = arith.addf %385, %384 : vector<8x128xf32>
    %387 = arith.divf %385, %386 : vector<8x128xf32>
    %388 = vector.extract_strided_slice %369 {offsets = [0, 384], sizes = [8, 128], strides = [1, 1]} : vector<8x512xf32> to vector<8x128xf32>
    %389 = math.tanh %388 : vector<8x128xf32>
    %390 = arith.mulf %381, %357 : vector<8x128xf32>
    %391 = arith.mulf %375, %389 : vector<8x128xf32>
    %392 = arith.addf %390, %391 : vector<8x128xf32>
    %393 = math.tanh %392 : vector<8x128xf32>
    %394 = arith.mulf %387, %393 : vector<8x128xf32>
    %395 = arith.index_cast %c10_i32 : i32 to index
    %c0_123 = arith.constant 0 : index
    %c0_124 = arith.constant 0 : index
    %396 = vector.load %arg6[%395, %c0_123, %c0_124] : memref<16x8x128xf32, #tpu.memory_space<vmem>>, vector<1x8x128xf32>
    %397 = vector.shape_cast %396 : vector<1x8x128xf32> to vector<8x128xf32>
    %398 = vector.shape_cast %394 : vector<8x128xf32> to vector<1x8x128xf32>
    tpu.vector_store %arg6[%395, %c0_123, %c0_124], %398 {strides = array<i32>} : memref<16x8x128xf32, #tpu.memory_space<vmem>>, vector<1x8x128xf32>,
    %c11_i32 = arith.constant 11 : i32
    %399 = arith.index_cast %c11_i32 : i32 to index
    %c0_125 = arith.constant 0 : index
    %c0_126 = arith.constant 0 : index
    %400 = vector.load %arg8[%399, %c0_125, %c0_126] : memref<16x8x512xf32, #tpu.memory_space<vmem>>, vector<1x8x512xf32>
    %401 = vector.shape_cast %400 : vector<1x8x512xf32> to vector<8x512xf32>
    %c0_127 = arith.constant 0 : index
    %c0_128 = arith.constant 0 : index
    %402 = vector.load %arg3[%c0_127, %c0_128] : memref<128x512xf32, #tpu.memory_space<vmem>>, vector<128x512xf32>
    %cst_129 = arith.constant dense<0.000000e+00> : vector<8x512xf32>
    %403 = tpu.matmul %394, %402, %cst_129 {dimension_numbers = #tpu.dot_dimension_numbers<[1], [0], [0], [1], [0, 0, 1, 1], [], []>} : vector<8x128xf32>, vector<128x512xf32>, vector<8x512xf32> -> vector<8x512xf32>
    %404 = arith.addf %401, %403 : vector<8x512xf32>
    %405 = vector.extract_strided_slice %404 {offsets = [0, 0], sizes = [8, 128], strides = [1, 1]} : vector<8x512xf32> to vector<8x128xf32>
    %406 = arith.negf %405 : vector<8x128xf32>
    %407 = math.exp %406 : vector<8x128xf32>
    %cst_130 = arith.constant 1.000000e+00 : f32
    %408 = vector.broadcast %cst_130 : f32 to vector<8x128xf32>
    %409 = arith.addf %408, %407 : vector<8x128xf32>
    %410 = arith.divf %408, %409 : vector<8x128xf32>
    %411 = vector.extract_strided_slice %404 {offsets = [0, 128], sizes = [8, 128], strides = [1, 1]} : vector<8x512xf32> to vector<8x128xf32>
    %412 = arith.negf %411 : vector<8x128xf32>
    %413 = math.exp %412 : vector<8x128xf32>
    %cst_131 = arith.constant 1.000000e+00 : f32
    %414 = vector.broadcast %cst_131 : f32 to vector<8x128xf32>
    %415 = arith.addf %414, %413 : vector<8x128xf32>
    %416 = arith.divf %414, %415 : vector<8x128xf32>
    %417 = vector.extract_strided_slice %404 {offsets = [0, 256], sizes = [8, 128], strides = [1, 1]} : vector<8x512xf32> to vector<8x128xf32>
    %418 = arith.negf %417 : vector<8x128xf32>
    %419 = math.exp %418 : vector<8x128xf32>
    %cst_132 = arith.constant 1.000000e+00 : f32
    %420 = vector.broadcast %cst_132 : f32 to vector<8x128xf32>
    %421 = arith.addf %420, %419 : vector<8x128xf32>
    %422 = arith.divf %420, %421 : vector<8x128xf32>
    %423 = vector.extract_strided_slice %404 {offsets = [0, 384], sizes = [8, 128], strides = [1, 1]} : vector<8x512xf32> to vector<8x128xf32>
    %424 = math.tanh %423 : vector<8x128xf32>
    %425 = arith.mulf %416, %392 : vector<8x128xf32>
    %426 = arith.mulf %410, %424 : vector<8x128xf32>
    %427 = arith.addf %425, %426 : vector<8x128xf32>
    %428 = math.tanh %427 : vector<8x128xf32>
    %429 = arith.mulf %422, %428 : vector<8x128xf32>
    %430 = arith.index_cast %c11_i32 : i32 to index
    %c0_133 = arith.constant 0 : index
    %c0_134 = arith.constant 0 : index
    %431 = vector.load %arg6[%430, %c0_133, %c0_134] : memref<16x8x128xf32, #tpu.memory_space<vmem>>, vector<1x8x128xf32>
    %432 = vector.shape_cast %431 : vector<1x8x128xf32> to vector<8x128xf32>
    %433 = vector.shape_cast %429 : vector<8x128xf32> to vector<1x8x128xf32>
    tpu.vector_store %arg6[%430, %c0_133, %c0_134], %433 {strides = array<i32>} : memref<16x8x128xf32, #tpu.memory_space<vmem>>, vector<1x8x128xf32>,
    %c12_i32 = arith.constant 12 : i32
    %434 = arith.index_cast %c12_i32 : i32 to index
    %c0_135 = arith.constant 0 : index
    %c0_136 = arith.constant 0 : index
    %435 = vector.load %arg8[%434, %c0_135, %c0_136] : memref<16x8x512xf32, #tpu.memory_space<vmem>>, vector<1x8x512xf32>
    %436 = vector.shape_cast %435 : vector<1x8x512xf32> to vector<8x512xf32>
    %c0_137 = arith.constant 0 : index
    %c0_138 = arith.constant 0 : index
    %437 = vector.load %arg3[%c0_137, %c0_138] : memref<128x512xf32, #tpu.memory_space<vmem>>, vector<128x512xf32>
    %cst_139 = arith.constant dense<0.000000e+00> : vector<8x512xf32>
    %438 = tpu.matmul %429, %437, %cst_139 {dimension_numbers = #tpu.dot_dimension_numbers<[1], [0], [0], [1], [0, 0, 1, 1], [], []>} : vector<8x128xf32>, vector<128x512xf32>, vector<8x512xf32> -> vector<8x512xf32>
    %439 = arith.addf %436, %438 : vector<8x512xf32>
    %440 = vector.extract_strided_slice %439 {offsets = [0, 0], sizes = [8, 128], strides = [1, 1]} : vector<8x512xf32> to vector<8x128xf32>
    %441 = arith.negf %440 : vector<8x128xf32>
    %442 = math.exp %441 : vector<8x128xf32>
    %cst_140 = arith.constant 1.000000e+00 : f32
    %443 = vector.broadcast %cst_140 : f32 to vector<8x128xf32>
    %444 = arith.addf %443, %442 : vector<8x128xf32>
    %445 = arith.divf %443, %444 : vector<8x128xf32>
    %446 = vector.extract_strided_slice %439 {offsets = [0, 128], sizes = [8, 128], strides = [1, 1]} : vector<8x512xf32> to vector<8x128xf32>
    %447 = arith.negf %446 : vector<8x128xf32>
    %448 = math.exp %447 : vector<8x128xf32>
    %cst_141 = arith.constant 1.000000e+00 : f32
    %449 = vector.broadcast %cst_141 : f32 to vector<8x128xf32>
    %450 = arith.addf %449, %448 : vector<8x128xf32>
    %451 = arith.divf %449, %450 : vector<8x128xf32>
    %452 = vector.extract_strided_slice %439 {offsets = [0, 256], sizes = [8, 128], strides = [1, 1]} : vector<8x512xf32> to vector<8x128xf32>
    %453 = arith.negf %452 : vector<8x128xf32>
    %454 = math.exp %453 : vector<8x128xf32>
    %cst_142 = arith.constant 1.000000e+00 : f32
    %455 = vector.broadcast %cst_142 : f32 to vector<8x128xf32>
    %456 = arith.addf %455, %454 : vector<8x128xf32>
    %457 = arith.divf %455, %456 : vector<8x128xf32>
    %458 = vector.extract_strided_slice %439 {offsets = [0, 384], sizes = [8, 128], strides = [1, 1]} : vector<8x512xf32> to vector<8x128xf32>
    %459 = math.tanh %458 : vector<8x128xf32>
    %460 = arith.mulf %451, %427 : vector<8x128xf32>
    %461 = arith.mulf %445, %459 : vector<8x128xf32>
    %462 = arith.addf %460, %461 : vector<8x128xf32>
    %463 = math.tanh %462 : vector<8x128xf32>
    %464 = arith.mulf %457, %463 : vector<8x128xf32>
    %465 = arith.index_cast %c12_i32 : i32 to index
    %c0_143 = arith.constant 0 : index
    %c0_144 = arith.constant 0 : index
    %466 = vector.load %arg6[%465, %c0_143, %c0_144] : memref<16x8x128xf32, #tpu.memory_space<vmem>>, vector<1x8x128xf32>
    %467 = vector.shape_cast %466 : vector<1x8x128xf32> to vector<8x128xf32>
    %468 = vector.shape_cast %464 : vector<8x128xf32> to vector<1x8x128xf32>
    tpu.vector_store %arg6[%465, %c0_143, %c0_144], %468 {strides = array<i32>} : memref<16x8x128xf32, #tpu.memory_space<vmem>>, vector<1x8x128xf32>,
    %c13_i32 = arith.constant 13 : i32
    %469 = arith.index_cast %c13_i32 : i32 to index
    %c0_145 = arith.constant 0 : index
    %c0_146 = arith.constant 0 : index
    %470 = vector.load %arg8[%469, %c0_145, %c0_146] : memref<16x8x512xf32, #tpu.memory_space<vmem>>, vector<1x8x512xf32>
    %471 = vector.shape_cast %470 : vector<1x8x512xf32> to vector<8x512xf32>
    %c0_147 = arith.constant 0 : index
    %c0_148 = arith.constant 0 : index
    %472 = vector.load %arg3[%c0_147, %c0_148] : memref<128x512xf32, #tpu.memory_space<vmem>>, vector<128x512xf32>
    %cst_149 = arith.constant dense<0.000000e+00> : vector<8x512xf32>
    %473 = tpu.matmul %464, %472, %cst_149 {dimension_numbers = #tpu.dot_dimension_numbers<[1], [0], [0], [1], [0, 0, 1, 1], [], []>} : vector<8x128xf32>, vector<128x512xf32>, vector<8x512xf32> -> vector<8x512xf32>
    %474 = arith.addf %471, %473 : vector<8x512xf32>
    %475 = vector.extract_strided_slice %474 {offsets = [0, 0], sizes = [8, 128], strides = [1, 1]} : vector<8x512xf32> to vector<8x128xf32>
    %476 = arith.negf %475 : vector<8x128xf32>
    %477 = math.exp %476 : vector<8x128xf32>
    %cst_150 = arith.constant 1.000000e+00 : f32
    %478 = vector.broadcast %cst_150 : f32 to vector<8x128xf32>
    %479 = arith.addf %478, %477 : vector<8x128xf32>
    %480 = arith.divf %478, %479 : vector<8x128xf32>
    %481 = vector.extract_strided_slice %474 {offsets = [0, 128], sizes = [8, 128], strides = [1, 1]} : vector<8x512xf32> to vector<8x128xf32>
    %482 = arith.negf %481 : vector<8x128xf32>
    %483 = math.exp %482 : vector<8x128xf32>
    %cst_151 = arith.constant 1.000000e+00 : f32
    %484 = vector.broadcast %cst_151 : f32 to vector<8x128xf32>
    %485 = arith.addf %484, %483 : vector<8x128xf32>
    %486 = arith.divf %484, %485 : vector<8x128xf32>
    %487 = vector.extract_strided_slice %474 {offsets = [0, 256], sizes = [8, 128], strides = [1, 1]} : vector<8x512xf32> to vector<8x128xf32>
    %488 = arith.negf %487 : vector<8x128xf32>
    %489 = math.exp %488 : vector<8x128xf32>
    %cst_152 = arith.constant 1.000000e+00 : f32
    %490 = vector.broadcast %cst_152 : f32 to vector<8x128xf32>
    %491 = arith.addf %490, %489 : vector<8x128xf32>
    %492 = arith.divf %490, %491 : vector<8x128xf32>
    %493 = vector.extract_strided_slice %474 {offsets = [0, 384], sizes = [8, 128], strides = [1, 1]} : vector<8x512xf32> to vector<8x128xf32>
    %494 = math.tanh %493 : vector<8x128xf32>
    %495 = arith.mulf %486, %462 : vector<8x128xf32>
    %496 = arith.mulf %480, %494 : vector<8x128xf32>
    %497 = arith.addf %495, %496 : vector<8x128xf32>
    %498 = math.tanh %497 : vector<8x128xf32>
    %499 = arith.mulf %492, %498 : vector<8x128xf32>
    %500 = arith.index_cast %c13_i32 : i32 to index
    %c0_153 = arith.constant 0 : index
    %c0_154 = arith.constant 0 : index
    %501 = vector.load %arg6[%500, %c0_153, %c0_154] : memref<16x8x128xf32, #tpu.memory_space<vmem>>, vector<1x8x128xf32>
    %502 = vector.shape_cast %501 : vector<1x8x128xf32> to vector<8x128xf32>
    %503 = vector.shape_cast %499 : vector<8x128xf32> to vector<1x8x128xf32>
    tpu.vector_store %arg6[%500, %c0_153, %c0_154], %503 {strides = array<i32>} : memref<16x8x128xf32, #tpu.memory_space<vmem>>, vector<1x8x128xf32>,
    %c14_i32 = arith.constant 14 : i32
    %504 = arith.index_cast %c14_i32 : i32 to index
    %c0_155 = arith.constant 0 : index
    %c0_156 = arith.constant 0 : index
    %505 = vector.load %arg8[%504, %c0_155, %c0_156] : memref<16x8x512xf32, #tpu.memory_space<vmem>>, vector<1x8x512xf32>
    %506 = vector.shape_cast %505 : vector<1x8x512xf32> to vector<8x512xf32>
    %c0_157 = arith.constant 0 : index
    %c0_158 = arith.constant 0 : index
    %507 = vector.load %arg3[%c0_157, %c0_158] : memref<128x512xf32, #tpu.memory_space<vmem>>, vector<128x512xf32>
    %cst_159 = arith.constant dense<0.000000e+00> : vector<8x512xf32>
    %508 = tpu.matmul %499, %507, %cst_159 {dimension_numbers = #tpu.dot_dimension_numbers<[1], [0], [0], [1], [0, 0, 1, 1], [], []>} : vector<8x128xf32>, vector<128x512xf32>, vector<8x512xf32> -> vector<8x512xf32>
    %509 = arith.addf %506, %508 : vector<8x512xf32>
    %510 = vector.extract_strided_slice %509 {offsets = [0, 0], sizes = [8, 128], strides = [1, 1]} : vector<8x512xf32> to vector<8x128xf32>
    %511 = arith.negf %510 : vector<8x128xf32>
    %512 = math.exp %511 : vector<8x128xf32>
    %cst_160 = arith.constant 1.000000e+00 : f32
    %513 = vector.broadcast %cst_160 : f32 to vector<8x128xf32>
    %514 = arith.addf %513, %512 : vector<8x128xf32>
    %515 = arith.divf %513, %514 : vector<8x128xf32>
    %516 = vector.extract_strided_slice %509 {offsets = [0, 128], sizes = [8, 128], strides = [1, 1]} : vector<8x512xf32> to vector<8x128xf32>
    %517 = arith.negf %516 : vector<8x128xf32>
    %518 = math.exp %517 : vector<8x128xf32>
    %cst_161 = arith.constant 1.000000e+00 : f32
    %519 = vector.broadcast %cst_161 : f32 to vector<8x128xf32>
    %520 = arith.addf %519, %518 : vector<8x128xf32>
    %521 = arith.divf %519, %520 : vector<8x128xf32>
    %522 = vector.extract_strided_slice %509 {offsets = [0, 256], sizes = [8, 128], strides = [1, 1]} : vector<8x512xf32> to vector<8x128xf32>
    %523 = arith.negf %522 : vector<8x128xf32>
    %524 = math.exp %523 : vector<8x128xf32>
    %cst_162 = arith.constant 1.000000e+00 : f32
    %525 = vector.broadcast %cst_162 : f32 to vector<8x128xf32>
    %526 = arith.addf %525, %524 : vector<8x128xf32>
    %527 = arith.divf %525, %526 : vector<8x128xf32>
    %528 = vector.extract_strided_slice %509 {offsets = [0, 384], sizes = [8, 128], strides = [1, 1]} : vector<8x512xf32> to vector<8x128xf32>
    %529 = math.tanh %528 : vector<8x128xf32>
    %530 = arith.mulf %521, %497 : vector<8x128xf32>
    %531 = arith.mulf %515, %529 : vector<8x128xf32>
    %532 = arith.addf %530, %531 : vector<8x128xf32>
    %533 = math.tanh %532 : vector<8x128xf32>
    %534 = arith.mulf %527, %533 : vector<8x128xf32>
    %535 = arith.index_cast %c14_i32 : i32 to index
    %c0_163 = arith.constant 0 : index
    %c0_164 = arith.constant 0 : index
    %536 = vector.load %arg6[%535, %c0_163, %c0_164] : memref<16x8x128xf32, #tpu.memory_space<vmem>>, vector<1x8x128xf32>
    %537 = vector.shape_cast %536 : vector<1x8x128xf32> to vector<8x128xf32>
    %538 = vector.shape_cast %534 : vector<8x128xf32> to vector<1x8x128xf32>
    tpu.vector_store %arg6[%535, %c0_163, %c0_164], %538 {strides = array<i32>} : memref<16x8x128xf32, #tpu.memory_space<vmem>>, vector<1x8x128xf32>,
    %c15_i32 = arith.constant 15 : i32
    %539 = arith.index_cast %c15_i32 : i32 to index
    %c0_165 = arith.constant 0 : index
    %c0_166 = arith.constant 0 : index
    %540 = vector.load %arg8[%539, %c0_165, %c0_166] : memref<16x8x512xf32, #tpu.memory_space<vmem>>, vector<1x8x512xf32>
    %541 = vector.shape_cast %540 : vector<1x8x512xf32> to vector<8x512xf32>
    %c0_167 = arith.constant 0 : index
    %c0_168 = arith.constant 0 : index
    %542 = vector.load %arg3[%c0_167, %c0_168] : memref<128x512xf32, #tpu.memory_space<vmem>>, vector<128x512xf32>
    %cst_169 = arith.constant dense<0.000000e+00> : vector<8x512xf32>
    %543 = tpu.matmul %534, %542, %cst_169 {dimension_numbers = #tpu.dot_dimension_numbers<[1], [0], [0], [1], [0, 0, 1, 1], [], []>} : vector<8x128xf32>, vector<128x512xf32>, vector<8x512xf32> -> vector<8x512xf32>
    %544 = arith.addf %541, %543 : vector<8x512xf32>
    %545 = vector.extract_strided_slice %544 {offsets = [0, 0], sizes = [8, 128], strides = [1, 1]} : vector<8x512xf32> to vector<8x128xf32>
    %546 = arith.negf %545 : vector<8x128xf32>
    %547 = math.exp %546 : vector<8x128xf32>
    %cst_170 = arith.constant 1.000000e+00 : f32
    %548 = vector.broadcast %cst_170 : f32 to vector<8x128xf32>
    %549 = arith.addf %548, %547 : vector<8x128xf32>
    %550 = arith.divf %548, %549 : vector<8x128xf32>
    %551 = vector.extract_strided_slice %544 {offsets = [0, 128], sizes = [8, 128], strides = [1, 1]} : vector<8x512xf32> to vector<8x128xf32>
    %552 = arith.negf %551 : vector<8x128xf32>
    %553 = math.exp %552 : vector<8x128xf32>
    %cst_171 = arith.constant 1.000000e+00 : f32
    %554 = vector.broadcast %cst_171 : f32 to vector<8x128xf32>
    %555 = arith.addf %554, %553 : vector<8x128xf32>
    %556 = arith.divf %554, %555 : vector<8x128xf32>
    %557 = vector.extract_strided_slice %544 {offsets = [0, 256], sizes = [8, 128], strides = [1, 1]} : vector<8x512xf32> to vector<8x128xf32>
    %558 = arith.negf %557 : vector<8x128xf32>
    %559 = math.exp %558 : vector<8x128xf32>
    %cst_172 = arith.constant 1.000000e+00 : f32
    %560 = vector.broadcast %cst_172 : f32 to vector<8x128xf32>
    %561 = arith.addf %560, %559 : vector<8x128xf32>
    %562 = arith.divf %560, %561 : vector<8x128xf32>
    %563 = vector.extract_strided_slice %544 {offsets = [0, 384], sizes = [8, 128], strides = [1, 1]} : vector<8x512xf32> to vector<8x128xf32>
    %564 = math.tanh %563 : vector<8x128xf32>
    %565 = arith.mulf %556, %532 : vector<8x128xf32>
    %566 = arith.mulf %550, %564 : vector<8x128xf32>
    %567 = arith.addf %565, %566 : vector<8x128xf32>
    %568 = math.tanh %567 : vector<8x128xf32>
    %569 = arith.mulf %562, %568 : vector<8x128xf32>
    %570 = arith.index_cast %c15_i32 : i32 to index
    %c0_173 = arith.constant 0 : index
    %c0_174 = arith.constant 0 : index
    %571 = vector.load %arg6[%570, %c0_173, %c0_174] : memref<16x8x128xf32, #tpu.memory_space<vmem>>, vector<1x8x128xf32>
    %572 = vector.shape_cast %571 : vector<1x8x128xf32> to vector<8x128xf32>
    %573 = vector.shape_cast %569 : vector<8x128xf32> to vector<1x8x128xf32>
    tpu.vector_store %arg6[%570, %c0_173, %c0_174], %573 {strides = array<i32>} : memref<16x8x128xf32, #tpu.memory_space<vmem>>, vector<1x8x128xf32>,
    %c16_i32 = arith.constant 16 : i32
    %c0_175 = arith.constant 0 : index
    %c0_176 = arith.constant 0 : index
    %574 = vector.load %arg9[%c0_175, %c0_176] : memref<8x128xf32, #tpu.memory_space<vmem>>, vector<8x128xf32>
    tpu.vector_store %arg9[%c0_175, %c0_176], %569 {strides = array<i32>} : memref<8x128xf32, #tpu.memory_space<vmem>>, vector<8x128xf32>,
    %c0_177 = arith.constant 0 : index
    %c0_178 = arith.constant 0 : index
    %575 = vector.load %arg10[%c0_177, %c0_178] : memref<8x128xf32, #tpu.memory_space<vmem>>, vector<8x128xf32>
    tpu.vector_store %arg10[%c0_177, %c0_178], %567 {strides = array<i32>} : memref<8x128xf32, #tpu.memory_space<vmem>>, vector<8x128xf32>,
    %c0_i32_179 = arith.constant 0 : i32
    %576 = arith.cmpi eq, %arg0, %c0_i32_179 : i32
    %577 = arith.extui %576 : i1 to i32
    %c0_i32_180 = arith.constant 0 : i32
    %578 = arith.cmpi ne, %577, %c0_i32_180 : i32
    scf.if %578 {
      %c0_181 = arith.constant 0 : index
      %c0_182 = arith.constant 0 : index
      %c0_183 = arith.constant 0 : index
      %579 = vector.load %arg7[%c0_181, %c0_182, %c0_183] : memref<2x8x128xf32, #tpu.memory_space<vmem>>, vector<1x8x128xf32>
      %580 = vector.shape_cast %579 : vector<1x8x128xf32> to vector<8x128xf32>
      %581 = vector.shape_cast %569 : vector<8x128xf32> to vector<1x8x128xf32>
      tpu.vector_store %arg7[%c0_181, %c0_182, %c0_183], %581 {strides = array<i32>} : memref<2x8x128xf32, #tpu.memory_space<vmem>>, vector<1x8x128xf32>,
      %c1 = arith.constant 1 : index
      %c0_184 = arith.constant 0 : index
      %c0_185 = arith.constant 0 : index
      %582 = vector.load %arg7[%c1, %c0_184, %c0_185] : memref<2x8x128xf32, #tpu.memory_space<vmem>>, vector<1x8x128xf32>
      %583 = vector.shape_cast %582 : vector<1x8x128xf32> to vector<8x128xf32>
      %584 = vector.shape_cast %567 : vector<8x128xf32> to vector<1x8x128xf32>
      tpu.vector_store %arg7[%c1, %c0_184, %c0_185], %584 {strides = array<i32>} : memref<2x8x128xf32, #tpu.memory_space<vmem>>, vector<1x8x128xf32>,
    } else {
    }
    return
  }
  func.func @transform_0(%arg0: i32) -> (i32, i32, i32) {
    %c0_i32 = arith.constant 0 : i32
    %c0_i32_0 = arith.constant 0 : i32
    %c0_i32_1 = arith.constant 0 : i32
    return %arg0, %c0_i32, %c0_i32_0 : i32, i32, i32
  }
  func.func @transform_1(%arg0: i32) -> (i32, i32) {
    %c0_i32 = arith.constant 0 : i32
    %c0_i32_0 = arith.constant 0 : i32
    %c0_i32_1 = arith.constant 0 : i32
    return %c0_i32, %c0_i32_0 : i32, i32
  }
  func.func @transform_2(%arg0: i32) -> (i32, i32) {
    %c0_i32 = arith.constant 0 : i32
    %c0_i32_0 = arith.constant 0 : i32
    %c0_i32_1 = arith.constant 0 : i32
    return %c0_i32, %c0_i32_0 : i32, i32
  }
  func.func @transform_3(%arg0: i32) -> (i32, i32) {
    %c0_i32 = arith.constant 0 : i32
    %c0_i32_0 = arith.constant 0 : i32
    %c0_i32_1 = arith.constant 0 : i32
    return %c0_i32, %c0_i32_0 : i32, i32
  }
  func.func @transform_4(%arg0: i32) -> (i32, i32, i32) {
    %c0_i32 = arith.constant 0 : i32
    %c0_i32_0 = arith.constant 0 : i32
    %c0_i32_1 = arith.constant 0 : i32
    %c0_i32_2 = arith.constant 0 : i32
    return %c0_i32, %c0_i32_0, %c0_i32_1 : i32, i32, i32
  }
  func.func @transform_5(%arg0: i32) -> (i32, i32, i32) {
    %c0_i32 = arith.constant 0 : i32
    %c0_i32_0 = arith.constant 0 : i32
    %c0_i32_1 = arith.constant 0 : i32
    return %arg0, %c0_i32, %c0_i32_0 : i32, i32, i32
  }
  func.func @transform_6(%arg0: i32) -> (i32, i32, i32) {
    %c0_i32 = arith.constant 0 : i32
    %c0_i32_0 = arith.constant 0 : i32
    %c0_i32_1 = arith.constant 0 : i32
    %c0_i32_2 = arith.constant 0 : i32
    return %c0_i32, %c0_i32_0, %c0_i32_1 : i32, i32, i32
  }
}

module attributes {stable_mosaic.version = 11 : i64} {
  func.func @matmul_bias_kernel(%arg0: i32, %arg1: i32, %arg2: i32, %arg3: memref<128x128xf32, #tpu.memory_space<vmem>>, %arg4: memref<128x256xf32, #tpu.memory_space<vmem>>, %arg5: memref<1x256xf32, #tpu.memory_space<vmem>>, %arg6: memref<128x256xf32, #tpu.memory_space<vmem>>, %arg7: memref<128x256xf32, #tpu.memory_space<vmem>>) attributes {dimension_semantics = [#tpu.dimension_semantics<parallel>, #tpu.dimension_semantics<parallel>, #tpu.dimension_semantics<arbitrary>], iteration_bounds = array<i64: 1, 1, 1>, scalar_prefetch = 0 : i64, scratch_operands = 1 : i64, tpu.core_type = #tpu.core_type<tc>, window_params = [{transform_indices = @transform_0, window_bounds = array<i64: 128, 128>}, {transform_indices = @transform_1, window_bounds = array<i64: 128, 256>}, {transform_indices = @transform_2, window_bounds = array<i64: 1, 256>}, {transform_indices = @transform_3, window_bounds = array<i64: 128, 256>}]} {
    %c0_i32 = arith.constant 0 : i32
    %0 = arith.cmpi eq, %arg2, %c0_i32 : i32
    %1 = arith.extui %0 : i1 to i32
    %c0_i32_0 = arith.constant 0 : i32
    %2 = arith.cmpi ne, %1, %c0_i32_0 : i32
    scf.if %2 {
      %c0_10 = arith.constant 0 : index
      %c0_11 = arith.constant 0 : index
      %12 = vector.load %arg5[%c0_10, %c0_11] : memref<1x256xf32, #tpu.memory_space<vmem>>, vector<1x256xf32>
      %13 = vector.shape_cast %12 : vector<1x256xf32> to vector<1x256xf32>
      %14 = vector.broadcast %13 : vector<1x256xf32> to vector<128x256xf32>
      %c0_12 = arith.constant 0 : index
      %c0_13 = arith.constant 0 : index
      %15 = vector.load %arg7[%c0_12, %c0_13] : memref<128x256xf32, #tpu.memory_space<vmem>>, vector<128x256xf32>
      tpu.vector_store %arg7[%c0_12, %c0_13], %14 {strides = array<i32>} : memref<128x256xf32, #tpu.memory_space<vmem>>, vector<128x256xf32>,
    } else {
    }
    %c0 = arith.constant 0 : index
    %c0_1 = arith.constant 0 : index
    %3 = vector.load %arg7[%c0, %c0_1] : memref<128x256xf32, #tpu.memory_space<vmem>>, vector<128x256xf32>
    %c0_2 = arith.constant 0 : index
    %c0_3 = arith.constant 0 : index
    %4 = vector.load %arg3[%c0_2, %c0_3] : memref<128x128xf32, #tpu.memory_space<vmem>>, vector<128x128xf32>
    %c0_4 = arith.constant 0 : index
    %c0_5 = arith.constant 0 : index
    %5 = vector.load %arg4[%c0_4, %c0_5] : memref<128x256xf32, #tpu.memory_space<vmem>>, vector<128x256xf32>
    %cst = arith.constant dense<0.000000e+00> : vector<128x256xf32>
    %6 = tpu.matmul %4, %5, %cst {dimension_numbers = #tpu.dot_dimension_numbers<[1], [0], [0], [1], [0, 0, 1, 1], [], []>} : vector<128x128xf32>, vector<128x256xf32>, vector<128x256xf32> -> vector<128x256xf32>
    %7 = arith.addf %3, %6 : vector<128x256xf32>
    %c0_6 = arith.constant 0 : index
    %c0_7 = arith.constant 0 : index
    %8 = vector.load %arg7[%c0_6, %c0_7] : memref<128x256xf32, #tpu.memory_space<vmem>>, vector<128x256xf32>
    tpu.vector_store %arg7[%c0_6, %c0_7], %7 {strides = array<i32>} : memref<128x256xf32, #tpu.memory_space<vmem>>, vector<128x256xf32>,
    %c0_i32_8 = arith.constant 0 : i32
    %9 = arith.cmpi eq, %arg2, %c0_i32_8 : i32
    %10 = arith.extui %9 : i1 to i32
    %c0_i32_9 = arith.constant 0 : i32
    %11 = arith.cmpi ne, %10, %c0_i32_9 : i32
    scf.if %11 {
      %c0_10 = arith.constant 0 : index
      %c0_11 = arith.constant 0 : index
      %12 = vector.load %arg7[%c0_10, %c0_11] : memref<128x256xf32, #tpu.memory_space<vmem>>, vector<128x256xf32>
      %c0_12 = arith.constant 0 : index
      %c0_13 = arith.constant 0 : index
      %13 = vector.load %arg6[%c0_12, %c0_13] : memref<128x256xf32, #tpu.memory_space<vmem>>, vector<128x256xf32>
      tpu.vector_store %arg6[%c0_12, %c0_13], %12 {strides = array<i32>} : memref<128x256xf32, #tpu.memory_space<vmem>>, vector<128x256xf32>,
    } else {
    }
    return
  }
  func.func @transform_0(%arg0: i32, %arg1: i32, %arg2: i32) -> (i32, i32) {
    %c0_i32 = arith.constant 0 : i32
    return %arg0, %arg2 : i32, i32
  }
  func.func @transform_1(%arg0: i32, %arg1: i32, %arg2: i32) -> (i32, i32) {
    %c0_i32 = arith.constant 0 : i32
    return %arg2, %arg1 : i32, i32
  }
  func.func @transform_2(%arg0: i32, %arg1: i32, %arg2: i32) -> (i32, i32) {
    %c0_i32 = arith.constant 0 : i32
    %c0_i32_0 = arith.constant 0 : i32
    return %c0_i32, %arg1 : i32, i32
  }
  func.func @transform_3(%arg0: i32, %arg1: i32, %arg2: i32) -> (i32, i32) {
    %c0_i32 = arith.constant 0 : i32
    return %arg0, %arg1 : i32, i32
  }
}

</mosaic_0001>

<bundles_post_ra>
// kernel: tpu_custom_call.1
= control target key start
LH: loop header
LB: loop body
LE: loop exit
PB: predicated region body
PF: predicated region fallthrough
CT: control target
= control target key end

     0   :  { %6 = vsyncpa [#allocation3], 0  ;;  %s482_s0 = inlined_call_operand.hbm [shape: f32[8,128], index: 0, kind: input, shape index: {}]   ;;  %s483_s1 = inlined_call_operand.hbm [shape: f32[16,128], index: 1, kind: output, shape index: {}]  }
   0x1   :  { %7 = vsyncpa [#allocation4], 0 }
   0x2   :  { %9 = vsyncpa [#allocation4 + $0x1], 0  ;;  %s352_s6 = smov 0   ;;  %s354_s7 = smov 0  }
   0x3   :  { %s356_s8 = smov 0   ;;  %s358_s9 = smov 0  }
   0x4 LB: > { %s373_s10 = sadd.s32 4294967295, %s338_s9   ;;  %s184_s11 = sadd.s32 4294967294, %s338_s9   ;;  %s338_s9 = sphi %s358_s9, %s499_s9   ;;  %s334_s8 = sphi %s356_s8, %s498_s8   ;;  %s330_s7 = sphi %s354_s7, %s497_s7   ;;  %s326_s6 = sphi %s352_s6, %s496_s6  }
   0x5   : > { %s377_s12 = sadd.s32 1, %s338_s9   ;;  %s43_s13 = sadd.s32 1, %s334_s8 }
   0x6   : > { %s40_s14 = ssub.s32 %s338_s9, %s377_s12  ;;  %p53_p0 = scmp.ne.s32.totalorder %s334_s8, %s330_s7 }
   0x7   : > { %p41_p1 = scmp.eq.s32.totalorder %s40_s14, 0  ;;  %p54_p2 = scmp.eq.s32.totalorder %s373_s10, 1 }
   0x8   : > { %p59_p3 = scmp.ne.s32.totalorder %s330_s7, %s326_s6  ;;  %p60_p4 = scmp.eq.s32.totalorder %s184_s11, 1 }
   0x9   : > { %s388_s15 = scalar_select %p41_p1, %s334_s8, %s43_s13  }
   0xa   : > { %p390_p5 = por %p54_p2, %p53_p0  ;;  %p394_p6 = por %p60_p4, %p59_p3 }
   0xb   : > { %p185_p7 = scmp.ge.s32.totalorder %s338_s9, 1  ;;  %p67_p8 = scmp.lt.s32.totalorder %s338_s9, 3 }
   0xc   : > { %s487_s16 = scalar_select %p390_p5, 1, 0 }
   0xd   : > { %s488_s17 = scalar_select %p394_p6, 1, 0 }
   0xe   : > { %p484_p9 = scmp.eq.s32.totalorder %s373_s10, 0  ;;  %p401_p10 = pnand %p185_p7, %p67_p8 }
   0xf   : > { %s340_s19 = smov [#allocation2]   ;;  %s244_s24 = scalar_lea.hbm %s482_s0, 128 }
  0x10   : > { %s489_s18 = scalar_select %p401_p10, 1, 0 }
  0x11   : > { %s80_s20 = sshll.u32 %s340_s19, 4  ;;  %p200_p11 = pneg %p401_p10  ;;  %s81_s20 = int_to_ptr.vmem [resolvable:$true] %s80_s20 }
  0x12   : > { %p245_p13 = scmp.ne.s32.totalorder %s482_s0, %s244_s24  ;;  %p251_p3 = scmp.lt.u32.totalorder %s244_s24, %s482_s0 }
  0x13   : > { %p409_p12 = pnand %p484_p9, %p200_p11 }
  0x15   : > { %p246_p0 = pneg %p409_p12 }
  0x17   : > { %p247_p1 = pnand %p246_p0, %p245_p13 }
  0x19   : > { %p248_p2 = pneg %p247_p1 }
  0x1b   : > { %p253_p4 = pnand %p251_p3, %p248_p2 }
  0x1d   : > { %256 = shalt.err (!%p253_p4)
}
  0x1e   : > { %s257_s29 = scalar_lea.vmem %s81_s20, 128  ;;  %p265_p9 = scmp.lt.s32.totalorder %s81_s20, %s81_s20 }
  0x1f   : > { %p258_p7 = scmp.ne.s32.totalorder %s81_s20, %s257_s29  ;;  %p266_p6 = scmp.lt.s32.totalorder %s257_s29, %s257_s29 }
  0x21   : > { %p260_p8 = pnand %p258_p7, %p246_p0  ;;  %p267_p5 = por %p266_p6, %p265_p9 }
  0x23   : > { %p261_p11 = pneg %p260_p8 }
  0x25   : > { %p268_p10 = pnand %p267_p5, %p261_p11 }
  0x27   : > { %271 = shalt.err (!%p268_p10)
}
  0x28   : > { %203 = dma.hbm_to_vmem [thread:$0]  (!%p409_p12), %s482_s0, 128, %s81_s20, [#allocation3]  }
  0x29   : > { %p491_p13 = scmp.ne.s32.totalorder %s489_s18, 0 }
  0x2a   : > { %p492_p1 = scmp.eq.s32.totalorder (!%p491_p13), %s373_s10, 0 }
  0x2b   : > { %93 = sbr.rel (%p491_p13) target bundleno = 77 (0x4d), region = 24 }
  0x32   : > { %317 = dma.done.wait (%p492_p1), [#allocation3], 128   ;;  %p493_p0 = pmov %p492_p1 }
  0x33   : > { %s105_s3 = sand.u32 1, %s330_s7   ;;  %s191_s13 = sshll.u32 %s373_s10, 7  ;;  %v108_v0 = vld [vmem:[#allocation2] sm:$0xff] }
  0x34   : > { %319 = vsyncadd (%p493_p0), [#allocation3], 4294967168  ;;  %s189_s4 = sshll.u32 %s105_s3, 3  ;;  %v109_v1 = vadd.f32 1.0, %v108_v0  ;;  %s442_s19 = scalar_lea.hbm %s483_s1, %s191_s13 }
  0x35   : > { %s107_s5 = scalar_lea.vmem [#allocation5], %s189_s4  ;;  %s112_s20 = scalar_lea.sflag [#allocation4], %s105_s3 }
  0x36   : > { %s125_s11 = sshll.u32 %s107_s5, 4  ;;  %110 = vst [vmem:[%s107_s5] sm:$0xff] %v109_v1  ;;  %p494_p6 = scmp.ne.s32.totalorder %s487_s16, 0  ;;  %s437_s11 = int_to_ptr.vmem [resolvable:$true] %s125_s11 }
  0x37   : > { %s272_s21 = scalar_lea.vmem %s437_s11, 128  ;;  %s341_s10 = smov [#allocation5]  }
  0x38   : > { %p273_p5 = scmp.ne.s32.totalorder %s437_s11, %s272_s21  ;;  %s276_s22 = sshll.u32 %s341_s10, 4  ;;  %s277_s22 = int_to_ptr.vmem [resolvable:$false] %s276_s22 }
  0x39   : > { %s278_s23 = scalar_lea.vmem %s277_s22, 256  ;;  %p279_p12 = scmp.lt.s32.totalorder %s437_s11, %s277_s22 }
  0x3a   : > { %p274_p9 = pnand %p273_p5, %p494_p6  ;;  %p280_p2 = scmp.lt.s32.totalorder %s278_s23, %s272_s21 }
  0x3c   : > { %p275_p10 = pneg %p274_p9  ;;  %p281_p3 = por %p280_p2, %p279_p12 }
  0x3e   : > { %p282_p4 = pnand %p281_p3, %p275_p10 }
  0x40   : > { %285 = shalt.err (!%p282_p4)
}
  0x41   : > { %s286_s24 = scalar_lea.hbm %s442_s19, 128  ;;  %s290_s27 = scalar_lea.hbm %s483_s1, 256 }
  0x42   : > { %p287_p7 = scmp.ne.s32.totalorder %s442_s19, %s286_s24  ;;  %p291_p13 = scmp.lt.u32.totalorder %s442_s19, %s483_s1 }
  0x43   : > { %p292_p1 = scmp.lt.u32.totalorder %s290_s27, %s286_s24  ;;  %p294_p5 = scmp.lt.u32.totalorder %s286_s24, %s442_s19 }
  0x44   : > { %p288_p8 = pnand %p287_p7, %p494_p6 }
  0x45   : > { %p293_p0 = por %p292_p1, %p291_p13 }
  0x46   : > { %p289_p11 = pneg %p288_p8 }
  0x47   : > { %p295_p9 = por %p294_p5, %p293_p0 }
  0x49   : > { %p296_p10 = pnand %p295_p9, %p289_p11 }
  0x4b   : > { %299 = shalt.err (!%p296_p10)
}
  0x4c   : > { %198 = dma.vmem_to_hbm [thread:$0]  (%p494_p6), %s437_s11, 128, %s442_s19, %s112_s20  }
  0x4d PF: > { %p210_p12 = scmp.ge.s32.totalorder %s338_s9, 2  ;;  %s137_s30 = sand.u32 1, %s326_s6  }
  0x4e   : > { %p495_p2 = scmp.ne.s32.totalorder %s488_s17, 0  ;;  %s138_s2 = scalar_lea.sflag [#allocation4], %s137_s30 }
  0x50   : > { %p205_p3 = pnand %p210_p12, %p495_p2 }
  0x52   : > { %321 = dma.done.wait (!%p205_p3), %s138_s2, 128  }
  0x53   : > { %323 = vsyncadd (!%p205_p3), %s138_s2, 4294967168  ;;  %p12_p4 = scmp.ge.s32.totalorder %s377_s12, 4   ;;  %s496_s6 = smov %s330_s7 }
  0x54   : > { %s497_s7 = smov %s334_s8  ;;  %s498_s8 = smov %s388_s15 }
  0x55   : > { %s499_s9 = smov %s377_s12  ;;  %14 = sbr.rel (!%p12_p4) target bundleno = 4 (0x4), region = 61 }
  0x5c   :  { %143 = vsyncpa [#allocation3], 1 }
  0x5d   :  { %145 = vsyncpa [#allocation3 + $0x1], 1 }
  0x5e   :  { %146 = vsyncpa [#allocation4], 1 }
  0x5f   :  { %148 = vsyncpa [#allocation4 + $0x1], 1 }

// kernel: model_forward.5
= control target key start
LH: loop header
LB: loop body
LE: loop exit
PB: predicated region body
PF: predicated region fallthrough
CT: control target
= control target key end

     0   :  { %v527_v7 = vmov 0.0   ;;  %s762_s0 = inlined_call_operand.vmem [shape: f32[128,128], index: 0, kind: input, shape index: {}]   ;;  %s763_s1 = inlined_call_operand.vmem [shape: f32[128,256], index: 1, kind: input, shape index: {}]   ;;  %s764_s2 = inlined_call_operand.vmem [shape: f32[1,256], index: 2, kind: input, shape index: {}]   ;;  %s765_s3 = inlined_call_operand.hbm [shape: f32[128,256], index: 3, kind: output, shape index: {}]  }
   0x1   :  { %v112_v0 = vld [vmem:[%s763_s1 + $0x8] sm:$0xff]  ;;  %v114_v1 = vld [vmem:[%s763_s1 + $0x18] sm:$0xff]  ;;  %v111_v2 = vld [vmem:[%s763_s1] sm:$0xff]  ;;  %207 = vmatprep.mubr.f32.mxu0 %v527_v7  ;;  %255 = vmatprep.mubr.f32.mxu1 %v527_v7 }
   0x2   :  { %v451_v3 = vpack.c.bf16 %v114_v1, %v112_v0  ;;  %v113_v4 = vld [vmem:[%s763_s1 + $0x10] sm:$0xff]  ;;  %v116_v5 = vld [vmem:[%s763_s1 + $0x28] sm:$0xff]  ;;  %v118_v6 = vld [vmem:[%s763_s1 + $0x38] sm:$0xff] }
   0x3   :  { %v453_v8 = vpack.c.bf16 %v113_v4, %v111_v2  ;;  %v455_v9 = vpack.c.bf16 %v118_v6, %v116_v5  ;;  %v115_v10 = vld [vmem:[%s763_s1 + $0x20] sm:$0xff]  ;;  %v117_v11 = vld [vmem:[%s763_s1 + $0x30] sm:$0xff]  ;;  %v120_v12 = vld [vmem:[%s763_s1 + $0x48] sm:$0xff] }
   0x4   :  { %452 = vmatprep.subr.bf16.mxu0 %v451_v3  ;;  %483 = vmatprep.subr.bf16.mxu1 %v451_v3  ;;  %v122_v13 = vld [vmem:[%s763_s1 + $0x58] sm:$0xff]  ;;  %v457_v14 = vpack.c.bf16 %v117_v11, %v115_v10  ;;  %v119_v16 = vld [vmem:[%s763_s1 + $0x40] sm:$0xff]  ;;  %v121_v17 = vld [vmem:[%s763_s1 + $0x50] sm:$0xff] }
   0x5   :  { %454 = vmatpush1.bf16.msra.mxu0 %v453_v8  ;;  %491 = vmatpush1.bf16.msra.mxu1 %v453_v8  ;;  %v459_v15 = vpack.c.bf16 %v122_v13, %v120_v12  ;;  %v124_v18 = vld [vmem:[%s763_s1 + $0x68] sm:$0xff]  ;;  %v126_v19 = vld [vmem:[%s763_s1 + $0x78] sm:$0xff]  ;;  %v461_v20 = vpack.c.bf16 %v121_v17, %v119_v16  ;;  %v123_v22 = vld [vmem:[%s763_s1 + $0x60] sm:$0xff] }
   0x6   :  { %456 = vmatprep.subr.bf16.mxu0 %v455_v9  ;;  %484 = vmatprep.subr.bf16.mxu1 %v455_v9  ;;  %v463_v21 = vpack.c.bf16 %v126_v19, %v124_v18  ;;  %v125_v23 = vld [vmem:[%s763_s1 + $0x70] sm:$0xff]  ;;  %v128_v24 = vld [vmem:[%s763_s1 + $0x88] sm:$0xff]  ;;  %v130_v25 = vld [vmem:[%s763_s1 + $0x98] sm:$0xff] }
   0x7   :  { %v465_v26 = vpack.c.bf16 %v125_v23, %v123_v22  ;;  %v467_v27 = vpack.c.bf16 %v130_v25, %v128_v24  ;;  %v127_v28 = vld [vmem:[%s763_s1 + $0x80] sm:$0xff]  ;;  %v129_v29 = vld [vmem:[%s763_s1 + $0x90] sm:$0xff]  ;;  %v132_v30 = vld [vmem:[%s763_s1 + $0xa8] sm:$0xff] }
   0x8   :  { %v134_v31 = vld [vmem:[%s763_s1 + $0xb8] sm:$0xff]  ;;  %v469_v32 = vpack.c.bf16 %v129_v29, %v127_v28 }
   0x9   :  { %458 = vmatpush1.bf16.msra.mxu0 %v457_v14  ;;  %492 = vmatpush1.bf16.msra.mxu1 %v457_v14 }
   0xa   :  { %460 = vmatprep.subr.bf16.mxu0 %v459_v15  ;;  %485 = vmatprep.subr.bf16.mxu1 %v459_v15 }
   0xd   :  { %462 = vmatpush1.bf16.msra.mxu0 %v461_v20  ;;  %493 = vmatpush1.bf16.msra.mxu1 %v461_v20 }
   0xe   :  { %464 = vmatprep.subr.bf16.mxu0 %v463_v21  ;;  %486 = vmatprep.subr.bf16.mxu1 %v463_v21 }
  0x11   :  { %466 = vmatpush1.bf16.msra.mxu0 %v465_v26  ;;  %494 = vmatpush1.bf16.msra.mxu1 %v465_v26 }
  0x12   :  { %8 = vsyncpa [#allocation4], 0  ;;  %468 = vmatprep.subr.bf16.mxu0 %v467_v27  ;;  %487 = vmatprep.subr.bf16.mxu1 %v467_v27  ;;  %v471_v33 = vpack.c.bf16 %v134_v31, %v132_v30  ;;  %v131_v34 = vld [vmem:[%s763_s1 + $0xa0] sm:$0xff]  ;;  %v133_v35 = vld [vmem:[%s763_s1 + $0xb0] sm:$0xff]  ;;  %v21_v1 = vlaneseq }
  0x13   :  { %v136_v36 = vld [vmem:[%s763_s1 + $0xc8] sm:$0xff]  ;;  %v138_v37 = vld [vmem:[%s763_s1 + $0xd8] sm:$0xff]  ;;  %v473_v38 = vpack.c.bf16 %v133_v35, %v131_v34  ;;  %v135_v40 = vld [vmem:[%s763_s1 + $0xc0] sm:$0xff] }
  0x14   :  { %v475_v39 = vpack.c.bf16 %v138_v37, %v136_v36  ;;  %v137_v41 = vld [vmem:[%s763_s1 + $0xd0] sm:$0xff]  ;;  %v140_v42 = vld [vmem:[%s763_s1 + $0xe8] sm:$0xff]  ;;  %v142_v43 = vld [vmem:[%s763_s1 + $0xf8] sm:$0xff]  ;;  %v22_v2 = vshrl.u32 %v21_v1, 7 }
  0x15   :  { %470 = vmatpush1.bf16.msra.mxu0 %v469_v32  ;;  %495 = vmatpush1.bf16.msra.mxu1 %v469_v32  ;;  %v477_v44 = vpack.c.bf16 %v137_v41, %v135_v40  ;;  %v479_v45 = vpack.c.bf16 %v142_v43, %v140_v42  ;;  %v139_v46 = vld [vmem:[%s763_s1 + $0xe0] sm:$0xff]  ;;  %v141_v47 = vld [vmem:[%s763_s1 + $0xf0] sm:$0xff]  ;;  %v96_v51 = vld [vmem:[%s762_s0 + $0x8] sm:$0xff] }
  0x16   :  { %472 = vmatprep.subr.bf16.mxu0 %v471_v33  ;;  %488 = vmatprep.subr.bf16.mxu1 %v471_v33  ;;  %v481_v48 = vpack.c.bf16 %v141_v47, %v139_v46  ;;  %v95_v49 = vld [vmem:[%s762_s0] sm:$0xff]  ;;  %v104_v52 = vld [vmem:[%s762_s0 + $0x48] sm:$0xff]  ;;  %v97_v53 = vld [vmem:[%s762_s0 + $0x10] sm:$0xff]  ;;  %v23_v3 = vsub.s32 0, %v22_v2  ;;  %v27_v5 = vsub.s32 1, %v22_v2 }
  0x17   :  { %v103_v50 = vld [vmem:[%s762_s0 + $0x40] sm:$0xff]  ;;  %v105_v54 = vld [vmem:[%s762_s0 + $0x50] sm:$0xff]  ;;  %v98_v55 = vld [vmem:[%s762_s0 + $0x18] sm:$0xff] }
  0x18   :  { %v106_v56 = vld [vmem:[%s762_s0 + $0x58] sm:$0xff]  ;;  %v99_v57 = vld [vmem:[%s762_s0 + $0x20] sm:$0xff]  ;;  %v100_v59 = vld [vmem:[%s762_s0 + $0x28] sm:$0xff] }
  0x19   :  { %474 = vmatpush1.bf16.msra.mxu0 %v473_v38  ;;  %496 = vmatpush1.bf16.msra.mxu1 %v473_v38  ;;  %v107_v58 = vld [vmem:[%s762_s0 + $0x60] sm:$0xff]  ;;  %v108_v60 = vld [vmem:[%s762_s0 + $0x68] sm:$0xff]  ;;  %v101_v61 = vld [vmem:[%s762_s0 + $0x30] sm:$0xff] }
  0x1a   :  { %476 = vmatprep.subr.bf16.mxu0 %v475_v39  ;;  %489 = vmatprep.subr.bf16.mxu1 %v475_v39  ;;  %v109_v62 = vld [vmem:[%s762_s0 + $0x70] sm:$0xff]  ;;  %v102_v63 = vld [vmem:[%s762_s0 + $0x38] sm:$0xff]  ;;  %v19_v4 = vld [vmem:[%s764_s2] sm:$0x3] }
  0x1b   :  { %v110_v0 = vld [vmem:[%s762_s0 + $0x78] sm:$0xff]  ;;  %v714_v6 = vrot.slane %v19_v4, %v23_v3  ;;  %s528_s0 = smov [#allocation3]  }
  0x1c   :  { %s440_s2 = sshll.u32 %s528_s0, 4  ;;  %s441_s2 = int_to_ptr.vmem [resolvable:$true] %s440_s2 }
  0x1d   :  { %478 = vmatpush1.bf16.msra.mxu0 %v477_v44  ;;  %497 = vmatpush1.bf16.msra.mxu1 %v477_v44  ;;  %s503_s27 = scalar_lea.vmem %s441_s2, 4096  ;;  %p508_p1 = scmp.lt.s32.totalorder %s441_s2, %s441_s2 }
  0x1e   :  { %480 = vmatprep.subr.bf16.mxu0 %v479_v45  ;;  %490 = vmatprep.subr.bf16.mxu1 %v479_v45  ;;  %p504_p0 = scmp.ne.s32.totalorder %s441_s2, %s503_s27  ;;  %p509_p2 = scmp.lt.s32.totalorder %s503_s27, %s503_s27 }
  0x20   :  { %p510_p3 = por %p509_p2, %p508_p1 }
  0x21   :  { %482 = vmatpush1.bf16.msra.mxu0 %v481_v48  ;;  %498 = vmatpush1.bf16.msra.mxu1 %v481_v48 }
  0x22   :  { %p511_p4 = pnand %p510_p3, %p504_p0 }
  0x24   :  { %208 = vmatmul.mubr.f32.vlgmr.msra.gmra.mrb[0].mxu0 %v95_v49  ;;  %256 = vmatmul.mubr.f32.vlgmr.msra.gmra.mrb[0].mxu1 %v103_v50 }
  0x25   :  { %213 = vmatprep.mubr.f32.mxu0 %v527_v7  ;;  %261 = vmatprep.mubr.f32.mxu1 %v527_v7 }
  0x28   :  { %214 = vmatmul.mubr.f32.gmra.mrb[2].mxu0 %v96_v51  ;;  %262 = vmatmul.mubr.f32.gmra.mrb[2].mxu1 %v104_v52 }
  0x29   :  { %219 = vmatprep.mubr.f32.mxu0 %v527_v7  ;;  %267 = vmatprep.mubr.f32.mxu1 %v527_v7 }
  0x2c   :  { %220 = vmatmul.mubr.f32.gmra.mrb[4].mxu0 %v97_v53  ;;  %268 = vmatmul.mubr.f32.gmra.mrb[4].mxu1 %v105_v54 }
  0x2d   :  { %225 = vmatprep.mubr.f32.mxu0 %v527_v7  ;;  %273 = vmatprep.mubr.f32.mxu1 %v527_v7 }
  0x30   :  { %226 = vmatmul.mubr.f32.gmra.mrb[6].mxu0 %v98_v55  ;;  %274 = vmatmul.mubr.f32.gmra.mrb[6].mxu1 %v106_v56 }
  0x31   :  { %231 = vmatprep.mubr.f32.mxu0 %v527_v7  ;;  %279 = vmatprep.mubr.f32.mxu1 %v527_v7 }
  0x34   :  { %232 = vmatmul.mubr.f32.gmra.mrb[8].mxu0 %v99_v57  ;;  %280 = vmatmul.mubr.f32.gmra.mrb[8].mxu1 %v107_v58 }
  0x35   :  { %237 = vmatprep.mubr.f32.mxu0 %v527_v7  ;;  %285 = vmatprep.mubr.f32.mxu1 %v527_v7 }
  0x38   :  { %238 = vmatmul.mubr.f32.gmra.mrb[10].mxu0 %v100_v59  ;;  %286 = vmatmul.mubr.f32.gmra.mrb[10].mxu1 %v108_v60 }
  0x39   :  { %243 = vmatprep.mubr.f32.mxu0 %v527_v7  ;;  %291 = vmatprep.mubr.f32.mxu1 %v527_v7 }
  0x3c   :  { %244 = vmatmul.mubr.f32.gmra.mrb[12].mxu0 %v101_v61  ;;  %292 = vmatmul.mubr.f32.gmra.mrb[12].mxu1 %v109_v62 }
  0x3d   :  { %249 = vmatprep.mubr.f32.mxu0 %v527_v7  ;;  %297 = vmatprep.mubr.f32.mxu1 %v527_v7  ;;  %v716_v7 = vrot.slane %v19_v4, %v27_v5 }
  0x40   :  { %250 = vmatmul.mubr.f32.gmra.mrb[14].mxu0 %v102_v63  ;;  %298 = vmatmul.mubr.f32.gmra.mrb[14].mxu1 %v110_v0 }
  0xf7   :  { %v209_v8 = vpop.f32.mrb[0].mxu0  ;;  %v257_v9 = vpop.f32.mrb[0].mxu1 }
  0xf8   :  { %v304_v10 = vadd.f32 %v209_v8, %v714_v6  ;;  %v320_v11 = vadd.f32 %v257_v9, %v714_v6  ;;  %v211_v12 = vpop.f32.mrb[1].mxu0  ;;  %v259_v13 = vpop.f32.mrb[1].mxu1 }
  0xf9   :  { %v305_v14 = vadd.f32 %v211_v12, %v716_v7  ;;  %v321_v15 = vadd.f32 %v259_v13, %v716_v7 }
  0xfa   :  { %403 = vst [vmem:[#allocation3] sm:$0xff] %v304_v10  ;;  %419 = vst [vmem:[#allocation3 + $0x80] sm:$0xff] %v320_v11 }
  0xfb   :  { %404 = vst [vmem:[#allocation3 + $0x8] sm:$0xff] %v305_v14  ;;  %420 = vst [vmem:[#allocation3 + $0x88] sm:$0xff] %v321_v15  ;;  %v215_v16 = vpop.f32.mrb[2].mxu0  ;;  %v263_v17 = vpop.f32.mrb[2].mxu1 }
  0xfc   :  { %v306_v18 = vadd.f32 %v215_v16, %v714_v6  ;;  %v322_v19 = vadd.f32 %v263_v17, %v714_v6  ;;  %v217_v20 = vpop.f32.mrb[3].mxu0  ;;  %v265_v21 = vpop.f32.mrb[3].mxu1 }
  0xfd   :  { %v307_v22 = vadd.f32 %v217_v20, %v716_v7  ;;  %v323_v23 = vadd.f32 %v265_v21, %v716_v7 }
  0xfe   :  { %405 = vst [vmem:[#allocation3 + $0x10] sm:$0xff] %v306_v18  ;;  %421 = vst [vmem:[#allocation3 + $0x90] sm:$0xff] %v322_v19 }
  0xff   :  { %406 = vst [vmem:[#allocation3 + $0x18] sm:$0xff] %v307_v22  ;;  %422 = vst [vmem:[#allocation3 + $0x98] sm:$0xff] %v323_v23  ;;  %v221_v24 = vpop.f32.mrb[4].mxu0  ;;  %v269_v25 = vpop.f32.mrb[4].mxu1 }
 0x100   :  { %v308_v26 = vadd.f32 %v221_v24, %v714_v6  ;;  %v324_v27 = vadd.f32 %v269_v25, %v714_v6  ;;  %v223_v28 = vpop.f32.mrb[5].mxu0  ;;  %v271_v29 = vpop.f32.mrb[5].mxu1 }
 0x101   :  { %v309_v30 = vadd.f32 %v223_v28, %v716_v7  ;;  %v325_v31 = vadd.f32 %v271_v29, %v716_v7 }
 0x102   :  { %407 = vst [vmem:[#allocation3 + $0x20] sm:$0xff] %v308_v26  ;;  %423 = vst [vmem:[#allocation3 + $0xa0] sm:$0xff] %v324_v27 }
 0x103   :  { %408 = vst [vmem:[#allocation3 + $0x28] sm:$0xff] %v309_v30  ;;  %424 = vst [vmem:[#allocation3 + $0xa8] sm:$0xff] %v325_v31  ;;  %v227_v32 = vpop.f32.mrb[6].mxu0  ;;  %v275_v33 = vpop.f32.mrb[6].mxu1 }
 0x104   :  { %v310_v34 = vadd.f32 %v227_v32, %v714_v6  ;;  %v326_v35 = vadd.f32 %v275_v33, %v714_v6  ;;  %v229_v36 = vpop.f32.mrb[7].mxu0  ;;  %v277_v37 = vpop.f32.mrb[7].mxu1 }
 0x105   :  { %v311_v38 = vadd.f32 %v229_v36, %v716_v7  ;;  %v327_v39 = vadd.f32 %v277_v37, %v716_v7 }
 0x106   :  { %409 = vst [vmem:[#allocation3 + $0x30] sm:$0xff] %v310_v34  ;;  %425 = vst [vmem:[#allocation3 + $0xb0] sm:$0xff] %v326_v35 }
 0x107   :  { %410 = vst [vmem:[#allocation3 + $0x38] sm:$0xff] %v311_v38  ;;  %426 = vst [vmem:[#allocation3 + $0xb8] sm:$0xff] %v327_v39  ;;  %v233_v40 = vpop.f32.mrb[8].mxu0  ;;  %v281_v41 = vpop.f32.mrb[8].mxu1 }
 0x108   :  { %v312_v42 = vadd.f32 %v233_v40, %v714_v6  ;;  %v328_v43 = vadd.f32 %v281_v41, %v714_v6  ;;  %v235_v44 = vpop.f32.mrb[9].mxu0  ;;  %v283_v45 = vpop.f32.mrb[9].mxu1 }
 0x109   :  { %v313_v46 = vadd.f32 %v235_v44, %v716_v7  ;;  %v329_v47 = vadd.f32 %v283_v45, %v716_v7 }
 0x10a   :  { %411 = vst [vmem:[#allocation3 + $0x40] sm:$0xff] %v312_v42  ;;  %427 = vst [vmem:[#allocation3 + $0xc0] sm:$0xff] %v328_v43 }
 0x10b   :  { %412 = vst [vmem:[#allocation3 + $0x48] sm:$0xff] %v313_v46  ;;  %428 = vst [vmem:[#allocation3 + $0xc8] sm:$0xff] %v329_v47  ;;  %v239_v48 = vpop.f32.mrb[10].mxu0  ;;  %v287_v49 = vpop.f32.mrb[10].mxu1 }
 0x10c   :  { %v314_v50 = vadd.f32 %v239_v48, %v714_v6  ;;  %v330_v51 = vadd.f32 %v287_v49, %v714_v6  ;;  %v241_v52 = vpop.f32.mrb[11].mxu0  ;;  %v289_v53 = vpop.f32.mrb[11].mxu1 }
 0x10d   :  { %v315_v54 = vadd.f32 %v241_v52, %v716_v7  ;;  %v331_v55 = vadd.f32 %v289_v53, %v716_v7 }
 0x10e   :  { %413 = vst [vmem:[#allocation3 + $0x50] sm:$0xff] %v314_v50  ;;  %429 = vst [vmem:[#allocation3 + $0xd0] sm:$0xff] %v330_v51 }
 0x10f   :  { %414 = vst [vmem:[#allocation3 + $0x58] sm:$0xff] %v315_v54  ;;  %430 = vst [vmem:[#allocation3 + $0xd8] sm:$0xff] %v331_v55  ;;  %v245_v56 = vpop.f32.mrb[12].mxu0  ;;  %v293_v57 = vpop.f32.mrb[12].mxu1 }
 0x110   :  { %v316_v58 = vadd.f32 %v245_v56, %v714_v6  ;;  %v332_v59 = vadd.f32 %v293_v57, %v714_v6  ;;  %v247_v60 = vpop.f32.mrb[13].mxu0  ;;  %v295_v61 = vpop.f32.mrb[13].mxu1 }
 0x111   :  { %v317_v62 = vadd.f32 %v247_v60, %v716_v7  ;;  %v333_v63 = vadd.f32 %v295_v61, %v716_v7 }
 0x112   :  { %415 = vst [vmem:[#allocation3 + $0x60] sm:$0xff] %v316_v58  ;;  %431 = vst [vmem:[#allocation3 + $0xe0] sm:$0xff] %v332_v59 }
 0x113   :  { %416 = vst [vmem:[#allocation3 + $0x68] sm:$0xff] %v317_v62  ;;  %432 = vst [vmem:[#allocation3 + $0xe8] sm:$0xff] %v333_v63  ;;  %v251_v0 = vpop.f32.mrb[14].mxu0  ;;  %v299_v1 = vpop.f32.mrb[14].mxu1 }
 0x114   :  { %v318_v2 = vadd.f32 %v251_v0, %v714_v6  ;;  %v334_v3 = vadd.f32 %v299_v1, %v714_v6  ;;  %v253_v4 = vpop.f32.mrb[15].mxu0  ;;  %v301_v5 = vpop.f32.mrb[15].mxu1 }
 0x115   :  { %v319_v8 = vadd.f32 %v253_v4, %v716_v7  ;;  %v335_v9 = vadd.f32 %v301_v5, %v716_v7 }
 0x116   :  { %417 = vst [vmem:[#allocation3 + $0x70] sm:$0xff] %v318_v2  ;;  %433 = vst [vmem:[#allocation3 + $0xf0] sm:$0xff] %v334_v3 }
 0x117   :  { %418 = vst [vmem:[#allocation3 + $0x78] sm:$0xff] %v319_v8  ;;  %434 = vst [vmem:[#allocation3 + $0xf8] sm:$0xff] %v335_v9 }
 0x118   :  { %514 = shalt.err (!%p511_p4)
}
 0x119   :  { %s515_s30 = scalar_lea.hbm %s765_s3, 4096 }
 0x11a   :  { %p516_p5 = scmp.ne.s32.totalorder %s765_s3, %s515_s30  ;;  %p519_p6 = scmp.lt.u32.totalorder %s515_s30, %s765_s3 }
 0x11c   :  { %p521_p7 = pnand %p519_p6, %p516_p5 }
 0x11e   :  { %524 = shalt.err (!%p521_p7)
}
 0x11f   :  { %s529_s8 = smov 256   ;;  %s530_s9 = smov 16  }
 0x120   :  { %446 = dma.vmem_to_hbm [thread:$0]  %s441_s2, 4096, %s765_s3, [#allocation4], %s529_s8, %s529_s8, %s530_s9  }
 0x121   :  { %525 = dma.done.wait [#allocation4], 4096  }
 0x122   :  { %526 = vsyncadd [#allocation4], 4294963200 }
 0x123   :  { %450 = vsyncpa [#allocation4], 1 }

// kernel: model_forward.3
= control target key start
LH: loop header
LB: loop body
LE: loop exit
PB: predicated region body
PF: predicated region fallthrough
CT: control target
= control target key end

     0   :  { %v5929_v3 = vmov 0.0   ;;  %s8096_s1 = inlined_call_operand.vmem [shape: f32[128,512], index: 1, kind: input, shape index: {}]   ;;  %s8097_s2 = inlined_call_operand.vmem [shape: f32[128,512], index: 2, kind: input, shape index: {}]   ;;  %s8098_s0 = inlined_call_operand.vmem [shape: f32[16,8,128], index: 0, kind: input, shape index: {}]   ;;  %s8099_s4 = inlined_call_operand.vmem [shape: f32[2,8,128], index: 4, kind: input, shape index: {}]   ;;  %s8100_s3 = inlined_call_operand.vmem [shape: f32[1,512], index: 3, kind: input, shape index: {}]   ;;  %s8101_s5 = inlined_call_operand.vmem [shape: f32[16,8,128], index: 5, kind: output, shape index: {0}]   ;;  %s8102_s6 = inlined_call_operand.vmem [shape: f32[2,8,128], index: 6, kind: output, shape index: {1}]  }
   0x1   :  { %v48_v0 = vld [vmem:[%s8096_s1 + $0x8] sm:$0xff]  ;;  %v50_v2 = vld [vmem:[%s8096_s1 + $0x18] sm:$0xff]  ;;  %197 = vmatprep.mubr.f32.mxu0 %v5929_v3  ;;  %358 = vmatprep.mubr.f32.mxu1 %v5929_v3  ;;  %v47_v6 = vld [vmem:[%s8096_s1] sm:$0xff] }
   0x2   :  { %v52_v1 = vld [vmem:[%s8096_s1 + $0x28] sm:$0xff]  ;;  %v54_v5 = vld [vmem:[%s8096_s1 + $0x38] sm:$0xff]  ;;  %v51_v7 = vld [vmem:[%s8096_s1 + $0x20] sm:$0xff] }
   0x3   :  { %v4456_v4 = vpack.c.bf16 %v52_v1, %v48_v0  ;;  %v4488_v8 = vpack.c.bf16 %v54_v5, %v50_v2  ;;  %v4458_v9 = vpack.c.bf16 %v51_v7, %v47_v6  ;;  %v49_v10 = vld [vmem:[%s8096_s1 + $0x10] sm:$0xff]  ;;  %v56_v12 = vld [vmem:[%s8096_s1 + $0x48] sm:$0xff]  ;;  %v58_v15 = vld [vmem:[%s8096_s1 + $0x58] sm:$0xff] }
   0x4   :  { %v53_v11 = vld [vmem:[%s8096_s1 + $0x30] sm:$0xff]  ;;  %v60_v14 = vld [vmem:[%s8096_s1 + $0x68] sm:$0xff]  ;;  %v62_v16 = vld [vmem:[%s8096_s1 + $0x78] sm:$0xff] }
   0x5   :  { %4457 = vmatprep.subr.bf16.mxu0 %v4456_v4  ;;  %v4490_v13 = vpack.c.bf16 %v53_v11, %v49_v10  ;;  %4489 = vmatprep.subr.bf16.mxu1 %v4488_v8  ;;  %v4460_v17 = vpack.c.bf16 %v60_v14, %v56_v12  ;;  %v4492_v18 = vpack.c.bf16 %v62_v16, %v58_v15  ;;  %v55_v19 = vld [vmem:[%s8096_s1 + $0x40] sm:$0xff]  ;;  %v57_v21 = vld [vmem:[%s8096_s1 + $0x50] sm:$0xff]  ;;  %v64_v24 = vld [vmem:[%s8096_s1 + $0x88] sm:$0xff] }
   0x6   :  { %4459 = vmatpush1.bf16.msra.mxu0 %v4458_v9  ;;  %v59_v20 = vld [vmem:[%s8096_s1 + $0x60] sm:$0xff]  ;;  %v61_v23 = vld [vmem:[%s8096_s1 + $0x70] sm:$0xff]  ;;  %v68_v25 = vld [vmem:[%s8096_s1 + $0xa8] sm:$0xff] }
   0x7   :  { %4491 = vmatpush1.bf16.msra.mxu1 %v4490_v13  ;;  %v4462_v22 = vpack.c.bf16 %v59_v20, %v55_v19  ;;  %4461 = vmatprep.subr.bf16.mxu0 %v4460_v17  ;;  %v4494_v26 = vpack.c.bf16 %v61_v23, %v57_v21  ;;  %v4464_v27 = vpack.c.bf16 %v68_v25, %v64_v24  ;;  %v66_v28 = vld [vmem:[%s8096_s1 + $0x98] sm:$0xff]  ;;  %v63_v30 = vld [vmem:[%s8096_s1 + $0x80] sm:$0xff]  ;;  %v65_v33 = vld [vmem:[%s8096_s1 + $0x90] sm:$0xff] }
   0x8   :  { %4493 = vmatprep.subr.bf16.mxu1 %v4492_v18  ;;  %v70_v29 = vld [vmem:[%s8096_s1 + $0xb8] sm:$0xff]  ;;  %v67_v32 = vld [vmem:[%s8096_s1 + $0xa0] sm:$0xff]  ;;  %v69_v34 = vld [vmem:[%s8096_s1 + $0xb0] sm:$0xff] }
   0x9   :  { %v4496_v31 = vpack.c.bf16 %v70_v29, %v66_v28  ;;  %v4466_v35 = vpack.c.bf16 %v67_v32, %v63_v30  ;;  %v72_v36 = vld [vmem:[%s8096_s1 + $0xc8] sm:$0xff]  ;;  %v74_v38 = vld [vmem:[%s8096_s1 + $0xd8] sm:$0xff]  ;;  %v4498_v39 = vpack.c.bf16 %v69_v34, %v65_v33  ;;  %v71_v42 = vld [vmem:[%s8096_s1 + $0xc0] sm:$0xff] }
   0xa   :  { %4463 = vmatpush1.bf16.msra.mxu0 %v4462_v22  ;;  %v76_v37 = vld [vmem:[%s8096_s1 + $0xe8] sm:$0xff]  ;;  %v78_v41 = vld [vmem:[%s8096_s1 + $0xf8] sm:$0xff]  ;;  %v75_v43 = vld [vmem:[%s8096_s1 + $0xe0] sm:$0xff] }
   0xb   :  { %4495 = vmatpush1.bf16.msra.mxu1 %v4494_v26  ;;  %4465 = vmatprep.subr.bf16.mxu0 %v4464_v27  ;;  %v4468_v40 = vpack.c.bf16 %v76_v37, %v72_v36  ;;  %v4500_v44 = vpack.c.bf16 %v78_v41, %v74_v38  ;;  %v73_v45 = vld [vmem:[%s8096_s1 + $0xd0] sm:$0xff]  ;;  %v80_v47 = vld [vmem:[%s8096_s1 + $0x108] sm:$0xff]  ;;  %v82_v49 = vld [vmem:[%s8096_s1 + $0x118] sm:$0xff]  ;;  %v4470_v51 = vpack.c.bf16 %v75_v43, %v71_v42 }
   0xc   :  { %4497 = vmatprep.subr.bf16.mxu1 %v4496_v31  ;;  %v77_v46 = vld [vmem:[%s8096_s1 + $0xf0] sm:$0xff]  ;;  %v84_v48 = vld [vmem:[%s8096_s1 + $0x128] sm:$0xff]  ;;  %v86_v50 = vld [vmem:[%s8096_s1 + $0x138] sm:$0xff] }
   0xd   :  { %v4502_v52 = vpack.c.bf16 %v77_v46, %v73_v45  ;;  %v4472_v53 = vpack.c.bf16 %v84_v48, %v80_v47  ;;  %v79_v54 = vld [vmem:[%s8096_s1 + $0x100] sm:$0xff]  ;;  %v81_v56 = vld [vmem:[%s8096_s1 + $0x110] sm:$0xff]  ;;  %v4504_v57 = vpack.c.bf16 %v86_v50, %v82_v49  ;;  %v88_v59 = vld [vmem:[%s8096_s1 + $0x148] sm:$0xff] }
   0xe   :  { %4467 = vmatpush1.bf16.msra.mxu0 %v4466_v35  ;;  %v83_v55 = vld [vmem:[%s8096_s1 + $0x120] sm:$0xff]  ;;  %v85_v58 = vld [vmem:[%s8096_s1 + $0x130] sm:$0xff]  ;;  %v92_v60 = vld [vmem:[%s8096_s1 + $0x168] sm:$0xff] }
   0xf   :  { %4499 = vmatpush1.bf16.msra.mxu1 %v4498_v39  ;;  %4469 = vmatprep.subr.bf16.mxu0 %v4468_v40  ;;  %v90_v61 = vld [vmem:[%s8096_s1 + $0x158] sm:$0xff]  ;;  %v4474_v63 = vpack.c.bf16 %v83_v55, %v79_v54  ;;  %v4506_v0 = vpack.c.bf16 %v85_v58, %v81_v56  ;;  %v4476_v1 = vpack.c.bf16 %v92_v60, %v88_v59  ;;  %v87_v2 = vld [vmem:[%s8096_s1 + $0x140] sm:$0xff]  ;;  %v89_v5 = vld [vmem:[%s8096_s1 + $0x150] sm:$0xff] }
  0x10   :  { %4501 = vmatprep.subr.bf16.mxu1 %v4500_v44  ;;  %v94_v62 = vld [vmem:[%s8096_s1 + $0x178] sm:$0xff]  ;;  %v91_v4 = vld [vmem:[%s8096_s1 + $0x160] sm:$0xff]  ;;  %v93_v7 = vld [vmem:[%s8096_s1 + $0x170] sm:$0xff] }
  0x11   :  { %v4508_v6 = vpack.c.bf16 %v94_v62, %v90_v61  ;;  %v96_v8 = vld [vmem:[%s8096_s1 + $0x188] sm:$0xff]  ;;  %v98_v10 = vld [vmem:[%s8096_s1 + $0x198] sm:$0xff]  ;;  %v4478_v12 = vpack.c.bf16 %v91_v4, %v87_v2  ;;  %v4510_v13 = vpack.c.bf16 %v93_v7, %v89_v5  ;;  %v95_v15 = vld [vmem:[%s8096_s1 + $0x180] sm:$0xff] }
  0x12   :  { %4471 = vmatpush1.bf16.msra.mxu0 %v4470_v51  ;;  %v100_v9 = vld [vmem:[%s8096_s1 + $0x1a8] sm:$0xff]  ;;  %v102_v11 = vld [vmem:[%s8096_s1 + $0x1b8] sm:$0xff]  ;;  %v99_v16 = vld [vmem:[%s8096_s1 + $0x1a0] sm:$0xff] }
  0x13   :  { %4503 = vmatpush1.bf16.msra.mxu1 %v4502_v52  ;;  %4473 = vmatprep.subr.bf16.mxu0 %v4472_v53  ;;  %v4480_v14 = vpack.c.bf16 %v100_v9, %v96_v8  ;;  %v97_v17 = vld [vmem:[%s8096_s1 + $0x190] sm:$0xff]  ;;  %v4512_v18 = vpack.c.bf16 %v102_v11, %v98_v10  ;;  %v104_v20 = vld [vmem:[%s8096_s1 + $0x1c8] sm:$0xff]  ;;  %v106_v22 = vld [vmem:[%s8096_s1 + $0x1d8] sm:$0xff]  ;;  %v4482_v24 = vpack.c.bf16 %v99_v16, %v95_v15 }
  0x14   :  { %4505 = vmatprep.subr.bf16.mxu1 %v4504_v57  ;;  %v101_v19 = vld [vmem:[%s8096_s1 + $0x1b0] sm:$0xff]  ;;  %v108_v21 = vld [vmem:[%s8096_s1 + $0x1e8] sm:$0xff]  ;;  %v110_v23 = vld [vmem:[%s8096_s1 + $0x1f8] sm:$0xff] }
  0x15   :  { %v4514_v25 = vpack.c.bf16 %v101_v19, %v97_v17  ;;  %v4484_v26 = vpack.c.bf16 %v108_v21, %v104_v20  ;;  %v103_v27 = vld [vmem:[%s8096_s1 + $0x1c0] sm:$0xff]  ;;  %v105_v29 = vld [vmem:[%s8096_s1 + $0x1d0] sm:$0xff]  ;;  %v4516_v30 = vpack.c.bf16 %v110_v23, %v106_v22  ;;  %v526_v32 = vld [vmem:[%s8097_s2 + $0x8] sm:$0xff] }
  0x16   :  { %4475 = vmatpush1.bf16.msra.mxu0 %v4474_v63  ;;  %v107_v28 = vld [vmem:[%s8096_s1 + $0x1e0] sm:$0xff]  ;;  %v109_v31 = vld [vmem:[%s8096_s1 + $0x1f0] sm:$0xff]  ;;  %v530_v33 = vld [vmem:[%s8097_s2 + $0x28] sm:$0xff] }
  0x17   :  { %4507 = vmatpush1.bf16.msra.mxu1 %v4506_v0  ;;  %4477 = vmatprep.subr.bf16.mxu0 %v4476_v1  ;;  %v528_v34 = vld [vmem:[%s8097_s2 + $0x18] sm:$0xff]  ;;  %v4486_v36 = vpack.c.bf16 %v107_v28, %v103_v27  ;;  %v4518_v37 = vpack.c.bf16 %v109_v31, %v105_v29  ;;  %v6171_v38 = vpack.c.bf16 %v530_v33, %v526_v32  ;;  %v525_v39 = vld [vmem:[%s8097_s2] sm:$0xff]  ;;  %v534_v41 = vld [vmem:[%s8097_s2 + $0x48] sm:$0xff] }
  0x18   :  { %4509 = vmatprep.subr.bf16.mxu1 %v4508_v6  ;;  %v532_v35 = vld [vmem:[%s8097_s2 + $0x38] sm:$0xff]  ;;  %v529_v40 = vld [vmem:[%s8097_s2 + $0x20] sm:$0xff]  ;;  %v538_v43 = vld [vmem:[%s8097_s2 + $0x68] sm:$0xff] }
  0x19   :  { %v6182_v42 = vpack.c.bf16 %v532_v35, %v528_v34  ;;  %v527_v44 = vld [vmem:[%s8097_s2 + $0x10] sm:$0xff]  ;;  %v31_v46 = vld [vmem:[%s8098_s0] sm:$0xff]  ;;  %v6196_v47 = vpack.c.bf16 %v529_v40, %v525_v39  ;;  %v536_v48 = vld [vmem:[%s8097_s2 + $0x58] sm:$0xff]  ;;  %v6205_v50 = vpack.c.bf16 %v538_v43, %v534_v41 }
  0x1a   :  { %4479 = vmatpush1.bf16.msra.mxu0 %v4478_v12  ;;  %v531_v45 = vld [vmem:[%s8097_s2 + $0x30] sm:$0xff]  ;;  %v540_v49 = vld [vmem:[%s8097_s2 + $0x78] sm:$0xff]  ;;  %v533_v51 = vld [vmem:[%s8097_s2 + $0x40] sm:$0xff] }
  0x1b   :  { %4511 = vmatpush1.bf16.msra.mxu1 %v4510_v13  ;;  %4481 = vmatprep.subr.bf16.mxu0 %v4480_v14  ;;  %v537_v52 = vld [vmem:[%s8097_s2 + $0x60] sm:$0xff]  ;;  %v542_v53 = vld [vmem:[%s8097_s2 + $0x88] sm:$0xff]  ;;  %v6217_v54 = vpack.c.bf16 %v531_v45, %v527_v44  ;;  %v6222_v56 = vpack.c.bf16 %v540_v49, %v536_v48  ;;  %v535_v57 = vld [vmem:[%s8097_s2 + $0x50] sm:$0xff] }
  0x1c   :  { %4513 = vmatprep.subr.bf16.mxu1 %v4512_v18  ;;  %v546_v55 = vld [vmem:[%s8097_s2 + $0xa8] sm:$0xff]  ;;  %v539_v58 = vld [vmem:[%s8097_s2 + $0x70] sm:$0xff]  ;;  %v544_v60 = vld [vmem:[%s8097_s2 + $0x98] sm:$0xff]  ;;  %v6242_v62 = vpack.c.bf16 %v537_v52, %v533_v51 }
  0x1d   :  { %v32_v59 = vld [vmem:[%s8098_s0 + $0x8] sm:$0xff]  ;;  %v548_v61 = vld [vmem:[%s8097_s2 + $0xb8] sm:$0xff]  ;;  %v6245_v63 = vpack.c.bf16 %v546_v55, %v542_v53  ;;  %v541_v0 = vld [vmem:[%s8097_s2 + $0x80] sm:$0xff]  ;;  %v6257_v4 = vpack.c.bf16 %v539_v58, %v535_v57 }
  0x1e   :  { %4483 = vmatpush1.bf16.msra.mxu0 %v4482_v24  ;;  %v545_v1 = vld [vmem:[%s8097_s2 + $0xa0] sm:$0xff]  ;;  %v550_v2 = vld [vmem:[%s8097_s2 + $0xc8] sm:$0xff]  ;;  %v6263_v6 = vpack.c.bf16 %v548_v61, %v544_v60  ;;  %v543_v7 = vld [vmem:[%s8097_s2 + $0x90] sm:$0xff] }
  0x1f   :  { %4515 = vmatpush1.bf16.msra.mxu1 %v4514_v25  ;;  %4485 = vmatprep.subr.bf16.mxu0 %v4484_v26  ;;  %v554_v5 = vld [vmem:[%s8097_s2 + $0xe8] sm:$0xff]  ;;  %v547_v8 = vld [vmem:[%s8097_s2 + $0xb0] sm:$0xff]  ;;  %v552_v10 = vld [vmem:[%s8097_s2 + $0xd8] sm:$0xff]  ;;  %v6283_v12 = vpack.c.bf16 %v545_v1, %v541_v0 }
  0x20   :  { %4517 = vmatprep.subr.bf16.mxu1 %v4516_v30  ;;  %v33_v9 = vld [vmem:[%s8098_s0 + $0x10] sm:$0xff]  ;;  %v556_v11 = vld [vmem:[%s8097_s2 + $0xf8] sm:$0xff]  ;;  %v6286_v13 = vpack.c.bf16 %v554_v5, %v550_v2  ;;  %v549_v14 = vld [vmem:[%s8097_s2 + $0xc0] sm:$0xff]  ;;  %v6298_v17 = vpack.c.bf16 %v547_v8, %v543_v7 }
  0x21   :  { %v553_v15 = vld [vmem:[%s8097_s2 + $0xe0] sm:$0xff]  ;;  %v558_v16 = vld [vmem:[%s8097_s2 + $0x108] sm:$0xff]  ;;  %v6304_v19 = vpack.c.bf16 %v556_v11, %v552_v10  ;;  %v551_v20 = vld [vmem:[%s8097_s2 + $0xd0] sm:$0xff] }
  0x22   :  { %4487 = vmatpush1.bf16.msra.mxu0 %v4486_v36  ;;  %v562_v18 = vld [vmem:[%s8097_s2 + $0x128] sm:$0xff]  ;;  %v555_v21 = vld [vmem:[%s8097_s2 + $0xf0] sm:$0xff]  ;;  %v34_v22 = vld [vmem:[%s8098_s0 + $0x18] sm:$0xff]  ;;  %v6324_v25 = vpack.c.bf16 %v553_v15, %v549_v14 }
  0x23   :  { %4519 = vmatpush1.bf16.msra.mxu1 %v4518_v37  ;;  %4521 = vmatprep.subr.bf16.mxu0 %v6171_v38  ;;  %v560_v23 = vld [vmem:[%s8097_s2 + $0x118] sm:$0xff]  ;;  %v6327_v26 = vpack.c.bf16 %v562_v18, %v558_v16  ;;  %v557_v27 = vld [vmem:[%s8097_s2 + $0x100] sm:$0xff]  ;;  %v566_v29 = vld [vmem:[%s8097_s2 + $0x148] sm:$0xff]  ;;  %v6339_v30 = vpack.c.bf16 %v555_v21, %v551_v20 }
  0x24   :  { %4553 = vmatprep.subr.bf16.mxu1 %v6182_v42  ;;  %v564_v24 = vld [vmem:[%s8097_s2 + $0x138] sm:$0xff]  ;;  %v561_v28 = vld [vmem:[%s8097_s2 + $0x120] sm:$0xff]  ;;  %v570_v31 = vld [vmem:[%s8097_s2 + $0x168] sm:$0xff] }
  0x25   :  { %198 = vmatmul.mubr.f32.vlgmr.msra.gmra.mrb[0].mxu0 %v31_v46  ;;  %v6345_v32 = vpack.c.bf16 %v564_v24, %v560_v23  ;;  %v559_v33 = vld [vmem:[%s8097_s2 + $0x110] sm:$0xff]  ;;  %v35_v35 = vld [vmem:[%s8098_s0 + $0x20] sm:$0xff]  ;;  %v568_v36 = vld [vmem:[%s8097_s2 + $0x158] sm:$0xff]  ;;  %v6365_v39 = vpack.c.bf16 %v561_v28, %v557_v27  ;;  %v6368_v40 = vpack.c.bf16 %v570_v31, %v566_v29 }
  0x26   :  { %359 = vmatmul.mubr.f32.vlgmr.msra.gmra.mrb[0].mxu1 %v31_v46  ;;  %4523 = vmatpush1.bf16.msra.mxu0 %v6196_v47  ;;  %v563_v34 = vld [vmem:[%s8097_s2 + $0x130] sm:$0xff]  ;;  %v572_v37 = vld [vmem:[%s8097_s2 + $0x178] sm:$0xff]  ;;  %v565_v41 = vld [vmem:[%s8097_s2 + $0x140] sm:$0xff] }
  0x27   :  { %203 = vmatprep.mubr.f32.mxu0 %v5929_v3  ;;  %364 = vmatprep.mubr.f32.mxu1 %v5929_v3  ;;  %v569_v43 = vld [vmem:[%s8097_s2 + $0x160] sm:$0xff]  ;;  %v574_v44 = vld [vmem:[%s8097_s2 + $0x188] sm:$0xff]  ;;  %v6380_v45 = vpack.c.bf16 %v563_v34, %v559_v33  ;;  %v6386_v48 = vpack.c.bf16 %v572_v37, %v568_v36  ;;  %v567_v49 = vld [vmem:[%s8097_s2 + $0x150] sm:$0xff] }
  0x28   :  { %4525 = vmatprep.subr.bf16.mxu0 %v6205_v50  ;;  %4555 = vmatpush1.bf16.msra.mxu1 %v6217_v54  ;;  %v578_v46 = vld [vmem:[%s8097_s2 + $0x1a8] sm:$0xff]  ;;  %v571_v51 = vld [vmem:[%s8097_s2 + $0x170] sm:$0xff]  ;;  %v576_v53 = vld [vmem:[%s8097_s2 + $0x198] sm:$0xff]  ;;  %v6406_v57 = vpack.c.bf16 %v569_v43, %v565_v41  ;;  %v113_v43 = vlaneseq }
  0x29   :  { %204 = vmatmul.mubr.f32.gmra.mrb[2].mxu0 %v32_v59  ;;  %4557 = vmatprep.subr.bf16.mxu1 %v6222_v56  ;;  %v36_v52 = vld [vmem:[%s8098_s0 + $0x28] sm:$0xff]  ;;  %v580_v55 = vld [vmem:[%s8097_s2 + $0x1b8] sm:$0xff]  ;;  %v6409_v58 = vpack.c.bf16 %v578_v46, %v574_v44  ;;  %v577_v60 = vld [vmem:[%s8097_s2 + $0x1a0] sm:$0xff]  ;;  %v6418_v61 = vpack.c.bf16 %v571_v51, %v567_v49 }
  0x2a   :  { %365 = vmatmul.mubr.f32.gmra.mrb[2].mxu1 %v32_v59  ;;  %209 = vmatprep.mubr.f32.mxu0 %v5929_v3  ;;  %v573_v59 = vld [vmem:[%s8097_s2 + $0x180] sm:$0xff]  ;;  %v582_v0 = vld [vmem:[%s8097_s2 + $0x1c8] sm:$0xff]  ;;  %v6427_v2 = vpack.c.bf16 %v580_v55, %v576_v53  ;;  %v575_v5 = vld [vmem:[%s8097_s2 + $0x190] sm:$0xff]  ;;  %v114_v44 = vshrl.u32 %v113_v43, 7 }
  0x2b   :  { %370 = vmatprep.mubr.f32.mxu1 %v5929_v3  ;;  %4527 = vmatpush1.bf16.msra.mxu0 %v6242_v62  ;;  %v586_v1 = vld [vmem:[%s8097_s2 + $0x1e8] sm:$0xff]  ;;  %v579_v7 = vld [vmem:[%s8097_s2 + $0x1b0] sm:$0xff]  ;;  %v588_v10 = vld [vmem:[%s8097_s2 + $0x1f8] sm:$0xff]  ;;  %v6447_v11 = vpack.c.bf16 %v577_v60, %v573_v59 }
  0x2c   :  { %4529 = vmatprep.subr.bf16.mxu0 %v6245_v63  ;;  %4559 = vmatpush1.bf16.msra.mxu1 %v6257_v4  ;;  %v37_v8 = vld [vmem:[%s8098_s0 + $0x30] sm:$0xff]  ;;  %v6451_v14 = vpack.c.bf16 %v586_v1, %v582_v0  ;;  %v581_v15 = vld [vmem:[%s8097_s2 + $0x1c0] sm:$0xff]  ;;  %v6459_v18 = vpack.c.bf16 %v579_v7, %v575_v5  ;;  %v38_v23 = vld [vmem:[%s8098_s0 + $0x38] sm:$0xff]  ;;  %v115_v46 = vsub.s32 0, %v114_v44  ;;  %v119_v51 = vsub.s32 1, %v114_v44 }
  0x2d   :  { %210 = vmatmul.mubr.f32.gmra.mrb[4].mxu0 %v33_v9  ;;  %4561 = vmatprep.subr.bf16.mxu1 %v6263_v6  ;;  %v585_v16 = vld [vmem:[%s8097_s2 + $0x1e0] sm:$0xff]  ;;  %v583_v21 = vld [vmem:[%s8097_s2 + $0x1d0] sm:$0xff]  ;;  %v40_v29 = vld [vmem:[%s8098_s0 + $0x48] sm:$0xff]  ;;  %v123_v59 = vsub.s32 2, %v114_v44 }
  0x2e   :  { %371 = vmatmul.mubr.f32.gmra.mrb[4].mxu1 %v33_v9  ;;  %215 = vmatprep.mubr.f32.mxu0 %v5929_v3  ;;  %v584_v9 = vld [vmem:[%s8097_s2 + $0x1d8] sm:$0xff]  ;;  %v6476_v24 = vpack.c.bf16 %v585_v16, %v581_v15  ;;  %v39_v28 = vld [vmem:[%s8098_s0 + $0x40] sm:$0xff]  ;;  %v41_v31 = vld [vmem:[%s8098_s0 + $0x50] sm:$0xff] }
  0x2f   :  { %376 = vmatprep.mubr.f32.mxu1 %v5929_v3  ;;  %4531 = vmatpush1.bf16.msra.mxu0 %v6283_v12  ;;  %v6462_v20 = vpack.c.bf16 %v588_v10, %v584_v9  ;;  %v42_v33 = vld [vmem:[%s8098_s0 + $0x58] sm:$0xff]  ;;  %v43_v34 = vld [vmem:[%s8098_s0 + $0x60] sm:$0xff]  ;;  %v45_v36 = vld [vmem:[%s8098_s0 + $0x70] sm:$0xff]  ;;  %v127_v9 = vsub.s32 3, %v114_v44 }
  0x30   :  { %4533 = vmatprep.subr.bf16.mxu0 %v6286_v13  ;;  %4563 = vmatpush1.bf16.msra.mxu1 %v6298_v17  ;;  %v46_v37 = vld [vmem:[%s8098_s0 + $0x78] sm:$0xff]  ;;  %v26_v41 = vld [vmem:[%s8099_s4] sm:$0xff] }
  0x31   :  { %216 = vmatmul.mubr.f32.gmra.mrb[6].mxu0 %v34_v22  ;;  %4565 = vmatprep.subr.bf16.mxu1 %v6304_v19  ;;  %v111_v49 = vld [vmem:[%s8100_s3] sm:$0xf] }
  0x32   :  { %377 = vmatmul.mubr.f32.gmra.mrb[6].mxu1 %v34_v22  ;;  %221 = vmatprep.mubr.f32.mxu0 %v5929_v3  ;;  %v587_v22 = vld [vmem:[%s8097_s2 + $0x1f0] sm:$0xff]  ;;  %v6571_v53 = vrot.slane %v111_v49, %v119_v51  ;;  %v6575_v7 = vrot.slane %v111_v49, %v123_v59  ;;  %v6578_v15 = vrot.slane %v111_v49, %v127_v9  ;;  %v1252_v9 = vld [vmem:[%s8097_s2 + $0x28] sm:$0xff] }
  0x33   :  { %382 = vmatprep.mubr.f32.mxu1 %v5929_v3  ;;  %4535 = vmatpush1.bf16.msra.mxu0 %v6324_v25  ;;  %v6480_v27 = vpack.c.bf16 %v587_v22, %v583_v21 }
  0x34   :  { %4537 = vmatprep.subr.bf16.mxu0 %v6327_v26  ;;  %4567 = vmatpush1.bf16.msra.mxu1 %v6339_v30 }
  0x35   :  { %222 = vmatmul.mubr.f32.gmra.mrb[8].mxu0 %v35_v35  ;;  %4569 = vmatprep.subr.bf16.mxu1 %v6345_v32 }
  0x36   :  { %383 = vmatmul.mubr.f32.gmra.mrb[8].mxu1 %v35_v35  ;;  %227 = vmatprep.mubr.f32.mxu0 %v5929_v3  ;;  %v44_v35 = vld [vmem:[%s8098_s0 + $0x68] sm:$0xff] }
  0x37   :  { %388 = vmatprep.mubr.f32.mxu1 %v5929_v3  ;;  %4539 = vmatpush1.bf16.msra.mxu0 %v6365_v39 }
  0x38   :  { %4541 = vmatprep.subr.bf16.mxu0 %v6368_v40  ;;  %4571 = vmatpush1.bf16.msra.mxu1 %v6380_v45 }
  0x39   :  { %228 = vmatmul.mubr.f32.gmra.mrb[10].mxu0 %v36_v52  ;;  %4573 = vmatprep.subr.bf16.mxu1 %v6386_v48 }
  0x3a   :  { %389 = vmatmul.mubr.f32.gmra.mrb[10].mxu1 %v36_v52  ;;  %233 = vmatprep.mubr.f32.mxu0 %v5929_v3  ;;  %v6569_v52 = vrot.slane %v111_v49, %v115_v46 }
  0x3b   :  { %394 = vmatprep.mubr.f32.mxu1 %v5929_v3  ;;  %4543 = vmatpush1.bf16.msra.mxu0 %v6406_v57 }
  0x3c   :  { %4545 = vmatprep.subr.bf16.mxu0 %v6409_v58  ;;  %4575 = vmatpush1.bf16.msra.mxu1 %v6418_v61 }
  0x3d   :  { %234 = vmatmul.mubr.f32.gmra.mrb[12].mxu0 %v37_v8  ;;  %4577 = vmatprep.subr.bf16.mxu1 %v6427_v2 }
  0x3e   :  { %395 = vmatmul.mubr.f32.gmra.mrb[12].mxu1 %v37_v8  ;;  %239 = vmatprep.mubr.f32.mxu0 %v5929_v3 }
  0x3f   :  { %400 = vmatprep.mubr.f32.mxu1 %v5929_v3  ;;  %4547 = vmatpush1.bf16.msra.mxu0 %v6447_v11 }
  0x40   :  { %4549 = vmatprep.subr.bf16.mxu0 %v6451_v14  ;;  %4579 = vmatpush1.bf16.msra.mxu1 %v6459_v18 }
  0x41   :  { %240 = vmatmul.mubr.f32.gmra.mrb[14].mxu0 %v38_v23  ;;  %4581 = vmatprep.subr.bf16.mxu1 %v6462_v20 }
  0x42   :  { %401 = vmatmul.mubr.f32.gmra.mrb[14].mxu1 %v38_v23  ;;  %245 = vmatprep.mubr.f32.mxu0 %v5929_v3 }
  0x43   :  { %406 = vmatprep.mubr.f32.mxu1 %v5929_v3  ;;  %4551 = vmatpush1.bf16.msra.mxu0 %v6476_v24 }
  0x44   :  { %4583 = vmatpush1.bf16.msra.mxu1 %v6480_v27  ;;  %4585 = vmatprep.subr.bf16.mxu0 %v6171_v38 }
  0x45   :  { %246 = vmatmul.mubr.f32.gmra.mrb[16].mxu0 %v39_v28  ;;  %4617 = vmatprep.subr.bf16.mxu1 %v6182_v42 }
  0x46   :  { %407 = vmatmul.mubr.f32.gmra.mrb[16].mxu1 %v39_v28  ;;  %251 = vmatprep.mubr.f32.mxu0 %v5929_v3 }
  0x47   :  { %412 = vmatprep.mubr.f32.mxu1 %v5929_v3 }
  0x49   :  { %252 = vmatmul.mubr.f32.gmra.mrb[18].mxu0 %v40_v29 }
  0x4a   :  { %413 = vmatmul.mubr.f32.gmra.mrb[18].mxu1 %v40_v29  ;;  %257 = vmatprep.mubr.f32.mxu0 %v5929_v3 }
  0x4b   :  { %418 = vmatprep.mubr.f32.mxu1 %v5929_v3 }
  0x4d   :  { %258 = vmatmul.mubr.f32.gmra.mrb[20].mxu0 %v41_v31 }
  0x4e   :  { %419 = vmatmul.mubr.f32.gmra.mrb[20].mxu1 %v41_v31  ;;  %263 = vmatprep.mubr.f32.mxu0 %v5929_v3 }
  0x4f   :  { %424 = vmatprep.mubr.f32.mxu1 %v5929_v3 }
  0x51   :  { %264 = vmatmul.mubr.f32.gmra.mrb[22].mxu0 %v42_v33 }
  0x52   :  { %425 = vmatmul.mubr.f32.gmra.mrb[22].mxu1 %v42_v33  ;;  %269 = vmatprep.mubr.f32.mxu0 %v5929_v3 }
  0x53   :  { %430 = vmatprep.mubr.f32.mxu1 %v5929_v3 }
  0x55   :  { %270 = vmatmul.mubr.f32.gmra.mrb[24].mxu0 %v43_v34 }
  0x56   :  { %431 = vmatmul.mubr.f32.gmra.mrb[24].mxu1 %v43_v34  ;;  %275 = vmatprep.mubr.f32.mxu0 %v5929_v3 }
  0x57   :  { %436 = vmatprep.mubr.f32.mxu1 %v5929_v3 }
  0x59   :  { %276 = vmatmul.mubr.f32.gmra.mrb[26].mxu0 %v44_v35 }
  0x5a   :  { %437 = vmatmul.mubr.f32.gmra.mrb[26].mxu1 %v44_v35  ;;  %281 = vmatprep.mubr.f32.mxu0 %v5929_v3  ;;  %v4391_v35 = vld [vmem:[%s8099_s4 + $0x8] sm:$0xff] }
  0x5b   :  { %442 = vmatprep.mubr.f32.mxu1 %v5929_v3 }
  0x5d   :  { %282 = vmatmul.mubr.f32.gmra.mrb[28].mxu0 %v45_v36 }
  0x5e   :  { %443 = vmatmul.mubr.f32.gmra.mrb[28].mxu1 %v45_v36  ;;  %287 = vmatprep.mubr.f32.mxu0 %v5929_v3 }
  0x5f   :  { %448 = vmatprep.mubr.f32.mxu1 %v5929_v3 }
  0x61   :  { %288 = vmatmul.mubr.f32.gmra.mrb[30].mxu0 %v46_v37 }
  0x62   :  { %449 = vmatmul.mubr.f32.gmra.mrb[30].mxu1 %v46_v37  ;;  %653 = vmatprep.mubr.f32.mxu0 %v5929_v3 }
  0x63   :  { %724 = vmatprep.mubr.f32.mxu1 %v5929_v3 }
  0x65   :  { %654 = vmatmul.mubr.f32.vlgmr.msra.gmra.mrb[0].mxu0 %v26_v41 }
  0x66   :  { %725 = vmatmul.mubr.f32.vlgmr.msra.gmra.mrb[0].mxu1 %v26_v41  ;;  %4587 = vmatpush1.bf16.msra.mxu0 %v6196_v47 }
  0x67   :  { %4619 = vmatpush1.bf16.msra.mxu1 %v6217_v54  ;;  %4589 = vmatprep.subr.bf16.mxu0 %v6205_v50 }
  0x68   :  { %4621 = vmatprep.subr.bf16.mxu1 %v6222_v56  ;;  %893 = vmatprep.mubr.f32.mxu0 %v5929_v3 }
  0x69   :  { %964 = vmatprep.mubr.f32.mxu1 %v5929_v3 }
  0x6a   :  { %4591 = vmatpush1.bf16.msra.mxu0 %v6242_v62 }
  0x6b   :  { %4623 = vmatpush1.bf16.msra.mxu1 %v6257_v4  ;;  %4593 = vmatprep.subr.bf16.mxu0 %v6245_v63 }
  0x6c   :  { %4625 = vmatprep.subr.bf16.mxu1 %v6263_v6 }
  0x6e   :  { %4595 = vmatpush1.bf16.msra.mxu0 %v6283_v12 }
  0x6f   :  { %4627 = vmatpush1.bf16.msra.mxu1 %v6298_v17  ;;  %4597 = vmatprep.subr.bf16.mxu0 %v6286_v13 }
  0x70   :  { %4629 = vmatprep.subr.bf16.mxu1 %v6304_v19 }
  0x72   :  { %4599 = vmatpush1.bf16.msra.mxu0 %v6324_v25 }
  0x73   :  { %4631 = vmatpush1.bf16.msra.mxu1 %v6339_v30  ;;  %4601 = vmatprep.subr.bf16.mxu0 %v6327_v26 }
  0x74   :  { %4633 = vmatprep.subr.bf16.mxu1 %v6345_v32 }
  0x76   :  { %4603 = vmatpush1.bf16.msra.mxu0 %v6365_v39 }
  0x77   :  { %4635 = vmatpush1.bf16.msra.mxu1 %v6380_v45  ;;  %4605 = vmatprep.subr.bf16.mxu0 %v6368_v40 }
  0x78   :  { %4637 = vmatprep.subr.bf16.mxu1 %v6386_v48 }
  0x7a   :  { %4607 = vmatpush1.bf16.msra.mxu0 %v6406_v57 }
  0x7b   :  { %4639 = vmatpush1.bf16.msra.mxu1 %v6418_v61  ;;  %4609 = vmatprep.subr.bf16.mxu0 %v6409_v58 }
  0x7c   :  { %4641 = vmatprep.subr.bf16.mxu1 %v6427_v2 }
  0x7e   :  { %4611 = vmatpush1.bf16.msra.mxu0 %v6447_v11 }
  0x7f   :  { %4643 = vmatpush1.bf16.msra.mxu1 %v6459_v18  ;;  %4613 = vmatprep.subr.bf16.mxu0 %v6451_v14 }
  0x80   :  { %4645 = vmatprep.subr.bf16.mxu1 %v6462_v20 }
  0x82   :  { %4615 = vmatpush1.bf16.msra.mxu0 %v6476_v24 }
  0x83   :  { %4647 = vmatpush1.bf16.msra.mxu1 %v6480_v27  ;;  %4649 = vmatprep.subr.bf16.mxu0 %v6171_v38 }
  0x84   :  { %4681 = vmatprep.subr.bf16.mxu1 %v6182_v42 }
 0x138   :  { %v655_v55 = vpop.f32.mrb[0].mxu0 }
 0x139   :  { %v5544_v60 = vadd.f32 %v655_v55, %v6569_v52  ;;  %v726_v0 = vpop.f32.mrb[0].mxu1  ;;  %v657_v38 = vpop.f32.mrb[1].mxu0 }
 0x13a   :  { %v5545_v42 = vadd.f32 %v657_v38, %v6571_v53  ;;  %v728_v1 = vpop.f32.mrb[1].mxu1  ;;  %v5576_v10 = vadd.f32 %v726_v0, %v6575_v7 }
 0x13b   :  { %v4392_v5 = vmul.f32 -1.442695, %v5544_v60  ;;  %v5577_v21 = vadd.f32 %v728_v1, %v6578_v15 }
 0x13c   :  { %v4393_v8 = vmul.f32 -1.442695, %v5545_v42  ;;  %v4394_v16 = vmul.f32 -1.442695, %v5576_v10  ;;  %v1250_v10 = vld [vmem:[%s8097_s2 + $0x18] sm:$0xff] }
 0x13d   :  { %5673 = vpow2.f32 %v4392_v5 }
 0x13e   :  { %5675 = vpow2.f32 %v4393_v8  ;;  %v1248_v8 = vld [vmem:[%s8097_s2 + $0x8] sm:$0xff] }
 0x13f   :  { %5677 = vpow2.f32 %v4394_v16  ;;  %v6644_v16 = vpack.c.bf16 %v1252_v9, %v1248_v8  ;;  %v1292_v9 = vld [vmem:[%s8097_s2 + $0x168] sm:$0xff] }
 0x140   :  { %5679 = vtanh.f32 %v5577_v21  ;;  %v1254_v21 = vld [vmem:[%s8097_s2 + $0x38] sm:$0xff] }
 0x147   :  { %v5674_v22 = vpop.eup %5673 }
 0x148   :  { %v738_v23 = vadd.f32 1.0, %v5674_v22  ;;  %v5676_v28 = vpop.eup %5675  ;;  %v1247_v22 = vld [vmem:[%s8097_s2] sm:$0xff] }
 0x149   :  { %v744_v29 = vadd.f32 1.0, %v5676_v28  ;;  %v5678_v31 = vpop.eup %5677  ;;  %v6655_v28 = vpack.c.bf16 %v1254_v21, %v1250_v10  ;;  %v1291_v21 = vld [vmem:[%s8097_s2 + $0x160] sm:$0xff] }
 0x14a   :  { %5681 = vrcp.f32 %v738_v23  ;;  %v5680_v33 = vpop.eup %5679  ;;  %v750_v41 = vadd.f32 1.0, %v5678_v31  ;;  %v1251_v23 = vld [vmem:[%s8097_s2 + $0x20] sm:$0xff]  ;;  %v1249_v31 = vld [vmem:[%s8097_s2 + $0x10] sm:$0xff] }
 0x14b   :  { %5683 = vrcp.f32 %v744_v29  ;;  %v6657_v29 = vpack.c.bf16 %v1251_v23, %v1247_v22  ;;  %v1296_v22 = vld [vmem:[%s8097_s2 + $0x188] sm:$0xff] }
 0x14c   :  { %5685 = vrcp.f32 %v750_v41 }
 0x154   :  { %v5682_v34 = vpop.eup %5681 }
 0x155   :  { %v755_v36 = vmul.f32 %v5682_v34, %v5680_v33  ;;  %v5684_v37 = vpop.eup %5683  ;;  %v1253_v33 = vld [vmem:[%s8097_s2 + $0x30] sm:$0xff] }
 0x156   :  { %v754_v43 = vmul.f32 %v5684_v37, %v4391_v35  ;;  %v5686_v46 = vpop.eup %5685  ;;  %v6666_v34 = vpack.c.bf16 %v1253_v33, %v1249_v31  ;;  %v1256_v35 = vld [vmem:[%s8097_s2 + $0x48] sm:$0xff]  ;;  %v1258_v37 = vld [vmem:[%s8097_s2 + $0x58] sm:$0xff]  ;;  %v1295_v31 = vld [vmem:[%s8097_s2 + $0x180] sm:$0xff] }
 0x157   :  { %v1299_v33 = vld [vmem:[%s8097_s2 + $0x1a0] sm:$0xff] }
 0x158   :  { %v6584_v44 = vadd.f32 %v755_v36, %v754_v43  ;;  %v1260_v36 = vld [vmem:[%s8097_s2 + $0x68] sm:$0xff]  ;;  %v1262_v43 = vld [vmem:[%s8097_s2 + $0x78] sm:$0xff] }
 0x159   :  { %v6680_v41 = vpack.c.bf16 %v1260_v36, %v1256_v35 }
 0x15a   :  { %5687 = vtanh.f32 %v6584_v44 }
 0x164   :  { %v5688_v49 = vpop.eup %5687 }
 0x165   :  { %v758_v51 = vmul.f32 %v5688_v49, %v5686_v46  ;;  %v1259_v46 = vld [vmem:[%s8097_s2 + $0x60] sm:$0xff]  ;;  %v6691_v49 = vpack.c.bf16 %v1262_v43, %v1258_v37 }
 0x167   :  { %759 = vst [vmem:[%s8101_s5] sm:$0xff] %v758_v51  ;;  %894 = vmatmul.mubr.f32.vlgmr.msra.gmra.mrb[2].mxu0 %v758_v51  ;;  %965 = vmatmul.mubr.f32.vlgmr.msra.gmra.mrb[2].mxu1 %v758_v51 }
 0x168   :  { %4651 = vmatpush1.bf16.msra.mxu0 %v6196_v47  ;;  %4683 = vmatpush1.bf16.msra.mxu1 %v6217_v54 }
 0x169   :  { %4653 = vmatprep.subr.bf16.mxu0 %v6205_v50  ;;  %4685 = vmatprep.subr.bf16.mxu1 %v6222_v56 }
 0x16a   :  { %1134 = vmatprep.mubr.f32.mxu0 %v5929_v3  ;;  %1205 = vmatprep.mubr.f32.mxu1 %v5929_v3 }
 0x16c   :  { %4655 = vmatpush1.bf16.msra.mxu0 %v6242_v62  ;;  %4687 = vmatpush1.bf16.msra.mxu1 %v6257_v4 }
 0x16d   :  { %4657 = vmatprep.subr.bf16.mxu0 %v6245_v63  ;;  %4689 = vmatprep.subr.bf16.mxu1 %v6263_v6 }
 0x170   :  { %4659 = vmatpush1.bf16.msra.mxu0 %v6283_v12  ;;  %4691 = vmatpush1.bf16.msra.mxu1 %v6298_v17 }
 0x171   :  { %4661 = vmatprep.subr.bf16.mxu0 %v6286_v13  ;;  %4693 = vmatprep.subr.bf16.mxu1 %v6304_v19 }
 0x174   :  { %4663 = vmatpush1.bf16.msra.mxu0 %v6324_v25  ;;  %4695 = vmatpush1.bf16.msra.mxu1 %v6339_v30 }
 0x175   :  { %4665 = vmatprep.subr.bf16.mxu0 %v6327_v26  ;;  %4697 = vmatprep.subr.bf16.mxu1 %v6345_v32 }
 0x178   :  { %4667 = vmatpush1.bf16.msra.mxu0 %v6365_v39  ;;  %4699 = vmatpush1.bf16.msra.mxu1 %v6380_v45 }
 0x179   :  { %4669 = vmatprep.subr.bf16.mxu0 %v6368_v40  ;;  %4701 = vmatprep.subr.bf16.mxu1 %v6386_v48 }
 0x17c   :  { %4671 = vmatpush1.bf16.msra.mxu0 %v6406_v57  ;;  %4703 = vmatpush1.bf16.msra.mxu1 %v6418_v61 }
 0x17d   :  { %4673 = vmatprep.subr.bf16.mxu0 %v6409_v58  ;;  %4705 = vmatprep.subr.bf16.mxu1 %v6427_v2 }
 0x180   :  { %4675 = vmatpush1.bf16.msra.mxu0 %v6447_v11  ;;  %4707 = vmatpush1.bf16.msra.mxu1 %v6459_v18 }
 0x181   :  { %4677 = vmatprep.subr.bf16.mxu0 %v6451_v14  ;;  %4709 = vmatprep.subr.bf16.mxu1 %v6462_v20 }
 0x184   :  { %4679 = vmatpush1.bf16.msra.mxu0 %v6476_v24  ;;  %4711 = vmatpush1.bf16.msra.mxu1 %v6480_v27 }
 0x185   :  { %4713 = vmatprep.subr.bf16.mxu0 %v6644_v16  ;;  %4745 = vmatprep.subr.bf16.mxu1 %v6655_v28 }
 0x23a   :  { %v895_v47 = vpop.f32.mrb[2].mxu0  ;;  %v966_v50 = vpop.f32.mrb[2].mxu1 }
 0x23b   :  { %v5546_v54 = vadd.f32 %v895_v47, %v6569_v52  ;;  %v897_v56 = vpop.f32.mrb[3].mxu0  ;;  %v968_v62 = vpop.f32.mrb[3].mxu1  ;;  %v5578_v12 = vadd.f32 %v966_v50, %v6575_v7  ;;  %v1257_v47 = vld [vmem:[%s8097_s2 + $0x50] sm:$0xff] }
 0x23c   :  { %v5547_v63 = vadd.f32 %v897_v56, %v6571_v53  ;;  %v5579_v13 = vadd.f32 %v968_v62, %v6578_v15  ;;  %v1261_v50 = vld [vmem:[%s8097_s2 + $0x70] sm:$0xff]  ;;  %v1264_v56 = vld [vmem:[%s8097_s2 + $0x88] sm:$0xff] }
 0x23d   :  { %v4395_v4 = vmul.f32 -1.442695, %v5546_v54  ;;  %v4397_v17 = vmul.f32 -1.442695, %v5578_v12  ;;  %v6702_v54 = vpack.c.bf16 %v1261_v50, %v1257_v47  ;;  %v1268_v62 = vld [vmem:[%s8097_s2 + $0xa8] sm:$0xff]  ;;  %v1263_v12 = vld [vmem:[%s8097_s2 + $0x80] sm:$0xff] }
 0x23e   :  { %v4396_v6 = vmul.f32 -1.442695, %v5547_v63  ;;  %v1266_v63 = vld [vmem:[%s8097_s2 + $0x98] sm:$0xff] }
 0x23f   :  { %5689 = vpow2.f32 %v4395_v4  ;;  %v6716_v4 = vpack.c.bf16 %v1268_v62, %v1264_v56 }
 0x240   :  { %5691 = vpow2.f32 %v4396_v6  ;;  %v1270_v6 = vld [vmem:[%s8097_s2 + $0xb8] sm:$0xff] }
 0x241   :  { %5693 = vtanh.f32 %v5579_v13  ;;  %v1267_v13 = vld [vmem:[%s8097_s2 + $0xa0] sm:$0xff] }
 0x242   :  { %5695 = vpow2.f32 %v4397_v17  ;;  %v6727_v17 = vpack.c.bf16 %v1270_v6, %v1266_v63 }
 0x249   :  { %v5690_v25 = vpop.eup %5689 }
 0x24a   :  { %v978_v26 = vadd.f32 1.0, %v5690_v25  ;;  %v5692_v39 = vpop.eup %5691  ;;  %v6729_v25 = vpack.c.bf16 %v1267_v13, %v1263_v12 }
 0x24b   :  { %v984_v40 = vadd.f32 1.0, %v5692_v39  ;;  %v5694_v57 = vpop.eup %5693  ;;  %v1269_v39 = vld [vmem:[%s8097_s2 + $0xb0] sm:$0xff] }
 0x24c   :  { %5697 = vrcp.f32 %v978_v26  ;;  %v5696_v58 = vpop.eup %5695  ;;  %v1265_v26 = vld [vmem:[%s8097_s2 + $0x90] sm:$0xff] }
 0x24d   :  { %5699 = vrcp.f32 %v984_v40  ;;  %v990_v60 = vadd.f32 1.0, %v5696_v58  ;;  %v6738_v40 = vpack.c.bf16 %v1269_v39, %v1265_v26  ;;  %v1276_v58 = vld [vmem:[%s8097_s2 + $0xe8] sm:$0xff] }
 0x24f   :  { %5701 = vrcp.f32 %v990_v60 }
 0x256   :  { %v5698_v11 = vpop.eup %5697 }
 0x257   :  { %v995_v55 = vmul.f32 %v5698_v11, %v5694_v57  ;;  %v5700_v59 = vpop.eup %5699  ;;  %v1272_v57 = vld [vmem:[%s8097_s2 + $0xc8] sm:$0xff] }
 0x258   :  { %v994_v0 = vmul.f32 %v5700_v59, %v6584_v44  ;;  %v1255_v44 = vld [vmem:[%s8097_s2 + $0x40] sm:$0xff]  ;;  %v6749_v11 = vpack.c.bf16 %v1276_v58, %v1272_v57 }
 0x259   :  { %v5702_v42 = vpop.eup %5701  ;;  %v6693_v51 = vpack.c.bf16 %v1259_v46, %v1255_v44  ;;  %v1275_v59 = vld [vmem:[%s8097_s2 + $0xe0] sm:$0xff] }
 0x25a   :  { %v6627_v38 = vadd.f32 %v995_v55, %v994_v0  ;;  %v1271_v55 = vld [vmem:[%s8097_s2 + $0xc0] sm:$0xff]  ;;  %v1280_v0 = vld [vmem:[%s8097_s2 + $0x108] sm:$0xff] }
 0x25b   :  { %v6758_v60 = vpack.c.bf16 %v1275_v59, %v1271_v55 }
 0x25c   :  { %5703 = vtanh.f32 %v6627_v38 }
 0x266   :  { %v5704_v1 = vpop.eup %5703 }
 0x267   :  { %v998_v5 = vmul.f32 %v5704_v1, %v5702_v42  ;;  %v1284_v42 = vld [vmem:[%s8097_s2 + $0x128] sm:$0xff] }
 0x268   :  { %v6769_v1 = vpack.c.bf16 %v1284_v42, %v1280_v0  ;;  %v1519_v0 = vld [vmem:[%s8097_s2 + $0xf8] sm:$0xff] }
 0x269   :  { %4398 = vst [vmem:[%s8101_s5 + $0x8] sm:$0xff] %v998_v5  ;;  %1135 = vmatmul.mubr.f32.vlgmr.msra.gmra.mrb[4].mxu0 %v998_v5  ;;  %1206 = vmatmul.mubr.f32.vlgmr.msra.gmra.mrb[4].mxu1 %v998_v5  ;;  %v1283_v5 = vld [vmem:[%s8097_s2 + $0x120] sm:$0xff] }
 0x26a   :  { %1375 = vmatprep.mubr.f32.mxu0 %v5929_v3  ;;  %1446 = vmatprep.mubr.f32.mxu1 %v5929_v3 }
 0x26b   :  { %4715 = vmatpush1.bf16.msra.mxu0 %v6657_v29  ;;  %4747 = vmatpush1.bf16.msra.mxu1 %v6666_v34 }
 0x26c   :  { %4717 = vmatprep.subr.bf16.mxu0 %v6680_v41  ;;  %4749 = vmatprep.subr.bf16.mxu1 %v6691_v49 }
 0x26f   :  { %4719 = vmatpush1.bf16.msra.mxu0 %v6693_v51  ;;  %4751 = vmatpush1.bf16.msra.mxu1 %v6702_v54 }
 0x270   :  { %4721 = vmatprep.subr.bf16.mxu0 %v6716_v4  ;;  %4753 = vmatprep.subr.bf16.mxu1 %v6727_v17 }
 0x273   :  { %4723 = vmatpush1.bf16.msra.mxu0 %v6729_v25  ;;  %4755 = vmatpush1.bf16.msra.mxu1 %v6738_v40 }
 0x274   :  { %4757 = vmatprep.subr.bf16.mxu1 %v6304_v19  ;;  %4725 = vmatprep.subr.bf16.mxu0 %v6749_v11  ;;  %v1279_v19 = vld [vmem:[%s8097_s2 + $0x100] sm:$0xff] }
 0x275   :  { %v6778_v8 = vpack.c.bf16 %v1283_v5, %v1279_v19  ;;  %v1514_v19 = vld [vmem:[%s8097_s2 + $0xd0] sm:$0xff] }
 0x276   :  { %v1518_v5 = vld [vmem:[%s8097_s2 + $0xf0] sm:$0xff] }
 0x277   :  { %4727 = vmatpush1.bf16.msra.mxu0 %v6758_v60  ;;  %4759 = vmatpush1.bf16.msra.mxu1 %v6339_v30  ;;  %v1288_v30 = vld [vmem:[%s8097_s2 + $0x148] sm:$0xff] }
 0x278   :  { %4761 = vmatprep.subr.bf16.mxu1 %v6345_v32  ;;  %4729 = vmatprep.subr.bf16.mxu0 %v6769_v1  ;;  %v6789_v10 = vpack.c.bf16 %v1292_v9, %v1288_v30  ;;  %v1287_v32 = vld [vmem:[%s8097_s2 + $0x140] sm:$0xff]  ;;  %v6874_v30 = vpack.c.bf16 %v1518_v5, %v1514_v19  ;;  %v1523_v9 = vld [vmem:[%s8097_s2 + $0x118] sm:$0xff] }
 0x279   :  { %v6801_v23 = vpack.c.bf16 %v1291_v21, %v1287_v32  ;;  %v1527_v32 = vld [vmem:[%s8097_s2 + $0x138] sm:$0xff] }
 0x27a   :  { %v6884_v21 = vpack.c.bf16 %v1527_v32, %v1523_v9 }
 0x27b   :  { %4731 = vmatpush1.bf16.msra.mxu0 %v6778_v8  ;;  %4763 = vmatpush1.bf16.msra.mxu1 %v6380_v45  ;;  %v1300_v45 = vld [vmem:[%s8097_s2 + $0x1a8] sm:$0xff] }
 0x27c   :  { %4765 = vmatprep.subr.bf16.mxu1 %v6386_v48  ;;  %4733 = vmatprep.subr.bf16.mxu0 %v6789_v10  ;;  %v6813_v35 = vpack.c.bf16 %v1300_v45, %v1296_v22  ;;  %v6816_v48 = vpack.c.bf16 %v1299_v33, %v1295_v31  ;;  %v1522_v22 = vld [vmem:[%s8097_s2 + $0x110] sm:$0xff]  ;;  %v1531_v33 = vld [vmem:[%s8097_s2 + $0x158] sm:$0xff] }
 0x27d   :  { %v1526_v45 = vld [vmem:[%s8097_s2 + $0x130] sm:$0xff] }
 0x27e   :  { %v6892_v31 = vpack.c.bf16 %v1526_v45, %v1522_v22 }
 0x27f   :  { %4735 = vmatpush1.bf16.msra.mxu0 %v6801_v23  ;;  %4767 = vmatpush1.bf16.msra.mxu1 %v6418_v61 }
 0x280   :  { %4737 = vmatprep.subr.bf16.mxu0 %v6813_v35  ;;  %4769 = vmatprep.subr.bf16.mxu1 %v6427_v2 }
 0x283   :  { %4739 = vmatpush1.bf16.msra.mxu0 %v6816_v48  ;;  %4771 = vmatpush1.bf16.msra.mxu1 %v6459_v18 }
 0x284   :  { %4741 = vmatprep.subr.bf16.mxu0 %v6451_v14  ;;  %4773 = vmatprep.subr.bf16.mxu1 %v6462_v20 }
 0x287   :  { %4743 = vmatpush1.bf16.msra.mxu0 %v6476_v24  ;;  %4775 = vmatpush1.bf16.msra.mxu1 %v6480_v27 }
 0x288   :  { %4777 = vmatprep.subr.bf16.mxu0 %v6644_v16  ;;  %4809 = vmatprep.subr.bf16.mxu1 %v6655_v28 }
 0x33c   :  { %v1136_v61 = vpop.f32.mrb[4].mxu0  ;;  %v1207_v36 = vpop.f32.mrb[4].mxu1 }
 0x33d   :  { %v5548_v2 = vadd.f32 %v1136_v61, %v6569_v52  ;;  %v1138_v37 = vpop.f32.mrb[5].mxu0  ;;  %v1209_v43 = vpop.f32.mrb[5].mxu1  ;;  %v5580_v20 = vadd.f32 %v1207_v36, %v6575_v7  ;;  %v1535_v61 = vld [vmem:[%s8097_s2 + $0x178] sm:$0xff] }
 0x33e   :  { %v5549_v18 = vadd.f32 %v1138_v37, %v6571_v53  ;;  %v5581_v24 = vadd.f32 %v1209_v43, %v6578_v15  ;;  %v6902_v36 = vpack.c.bf16 %v1535_v61, %v1531_v33  ;;  %v1534_v37 = vld [vmem:[%s8097_s2 + $0x170] sm:$0xff] }
 0x33f   :  { %v4399_v44 = vmul.f32 -1.442695, %v5548_v2  ;;  %v4401_v27 = vmul.f32 -1.442695, %v5580_v20  ;;  %v1530_v2 = vld [vmem:[%s8097_s2 + $0x150] sm:$0xff] }
 0x340   :  { %v4400_v14 = vmul.f32 -1.442695, %v5549_v18  ;;  %v6910_v43 = vpack.c.bf16 %v1534_v37, %v1530_v2  ;;  %v1539_v18 = vld [vmem:[%s8097_s2 + $0x198] sm:$0xff] }
 0x341   :  { %5705 = vpow2.f32 %v4399_v44  ;;  %v1543_v44 = vld [vmem:[%s8097_s2 + $0x1b8] sm:$0xff] }
 0x342   :  { %5707 = vpow2.f32 %v4400_v14  ;;  %v1538_v14 = vld [vmem:[%s8097_s2 + $0x190] sm:$0xff]  ;;  %v6922_v20 = vpack.c.bf16 %v1543_v44, %v1539_v18 }
 0x343   :  { %5709 = vtanh.f32 %v5581_v24  ;;  %v1542_v24 = vld [vmem:[%s8097_s2 + $0x1b0] sm:$0xff] }
 0x344   :  { %5711 = vpow2.f32 %v4401_v27  ;;  %v1545_v27 = vld [vmem:[%s8097_s2 + $0x1c8] sm:$0xff] }
 0x34b   :  { %v5706_v46 = vpop.eup %5705 }
 0x34c   :  { %v1219_v47 = vadd.f32 1.0, %v5706_v46  ;;  %v5708_v50 = vpop.eup %5707  ;;  %v1549_v46 = vld [vmem:[%s8097_s2 + $0x1e8] sm:$0xff] }
 0x34d   :  { %v1225_v56 = vadd.f32 1.0, %v5708_v50  ;;  %v5710_v62 = vpop.eup %5709  ;;  %v6936_v50 = vpack.c.bf16 %v1549_v46, %v1545_v27 }
 0x34e   :  { %5713 = vrcp.f32 %v1219_v47  ;;  %v5712_v63 = vpop.eup %5711  ;;  %v6934_v47 = vpack.c.bf16 %v1542_v24, %v1538_v14 }
 0x34f   :  { %5715 = vrcp.f32 %v1225_v56  ;;  %v1231_v26 = vadd.f32 1.0, %v5712_v63  ;;  %v1547_v56 = vld [vmem:[%s8097_s2 + $0x1d8] sm:$0xff]  ;;  %v1544_v63 = vld [vmem:[%s8097_s2 + $0x1c0] sm:$0xff] }
 0x351   :  { %5717 = vrcp.f32 %v1231_v26  ;;  %v1550_v26 = vld [vmem:[%s8097_s2 + $0x1f0] sm:$0xff] }
 0x358   :  { %v5714_v6 = vpop.eup %5713 }
 0x359   :  { %v1236_v12 = vmul.f32 %v5714_v6, %v5710_v62  ;;  %v5716_v13 = vpop.eup %5715  ;;  %v1551_v62 = vld [vmem:[%s8097_s2 + $0x1f8] sm:$0xff] }
 0x35a   :  { %v1235_v39 = vmul.f32 %v5716_v13, %v6627_v38  ;;  %v1515_v38 = vld [vmem:[%s8097_s2 + $0xd8] sm:$0xff]  ;;  %v6948_v6 = vpack.c.bf16 %v1551_v62, %v1547_v56  ;;  %v1546_v13 = vld [vmem:[%s8097_s2 + $0x1d0] sm:$0xff] }
 0x35b   :  { %v5718_v58 = vpop.eup %5717  ;;  %v6866_v42 = vpack.c.bf16 %v1519_v0, %v1515_v38 }
 0x35c   :  { %v6834_v57 = vadd.f32 %v1236_v12, %v1235_v39  ;;  %v1548_v12 = vld [vmem:[%s8097_s2 + $0x1e0] sm:$0xff] }
 0x35d   :  { %v6960_v39 = vpack.c.bf16 %v1548_v12, %v1544_v63 }
 0x35e   :  { %5719 = vtanh.f32 %v6834_v57 }
 0x368   :  { %v5720_v55 = vpop.eup %5719 }
 0x369   :  { %v1239_v59 = vmul.f32 %v5720_v55, %v5718_v58  ;;  %v6964_v58 = vpack.c.bf16 %v1550_v26, %v1546_v13 }
 0x36b   :  { %4402 = vst [vmem:[%s8101_s5 + $0x10] sm:$0xff] %v1239_v59  ;;  %1376 = vmatmul.mubr.f32.vlgmr.msra.gmra.mrb[6].mxu0 %v1239_v59  ;;  %1447 = vmatmul.mubr.f32.vlgmr.msra.gmra.mrb[6].mxu1 %v1239_v59 }
 0x36c   :  { %4779 = vmatpush1.bf16.msra.mxu0 %v6657_v29  ;;  %4811 = vmatpush1.bf16.msra.mxu1 %v6666_v34 }
 0x36d   :  { %4781 = vmatprep.subr.bf16.mxu0 %v6680_v41  ;;  %4813 = vmatprep.subr.bf16.mxu1 %v6691_v49 }
 0x36e   :  { %1616 = vmatprep.mubr.f32.mxu0 %v5929_v3  ;;  %1687 = vmatprep.mubr.f32.mxu1 %v5929_v3 }
 0x370   :  { %4783 = vmatpush1.bf16.msra.mxu0 %v6693_v51  ;;  %4815 = vmatpush1.bf16.msra.mxu1 %v6702_v54 }
 0x371   :  { %4785 = vmatprep.subr.bf16.mxu0 %v6716_v4  ;;  %4817 = vmatprep.subr.bf16.mxu1 %v6727_v17 }
 0x374   :  { %4787 = vmatpush1.bf16.msra.mxu0 %v6729_v25  ;;  %4819 = vmatpush1.bf16.msra.mxu1 %v6738_v40 }
 0x375   :  { %4789 = vmatprep.subr.bf16.mxu0 %v6749_v11  ;;  %4821 = vmatprep.subr.bf16.mxu1 %v6866_v42 }
 0x378   :  { %4791 = vmatpush1.bf16.msra.mxu0 %v6758_v60  ;;  %4823 = vmatpush1.bf16.msra.mxu1 %v6874_v30 }
 0x379   :  { %4793 = vmatprep.subr.bf16.mxu0 %v6769_v1  ;;  %4825 = vmatprep.subr.bf16.mxu1 %v6884_v21 }
 0x37c   :  { %4795 = vmatpush1.bf16.msra.mxu0 %v6778_v8  ;;  %4827 = vmatpush1.bf16.msra.mxu1 %v6892_v31 }
 0x37d   :  { %4797 = vmatprep.subr.bf16.mxu0 %v6789_v10  ;;  %4829 = vmatprep.subr.bf16.mxu1 %v6902_v36 }
 0x380   :  { %4799 = vmatpush1.bf16.msra.mxu0 %v6801_v23  ;;  %4831 = vmatpush1.bf16.msra.mxu1 %v6910_v43 }
 0x381   :  { %4801 = vmatprep.subr.bf16.mxu0 %v6813_v35  ;;  %4833 = vmatprep.subr.bf16.mxu1 %v6922_v20 }
 0x384   :  { %4803 = vmatpush1.bf16.msra.mxu0 %v6816_v48  ;;  %4835 = vmatpush1.bf16.msra.mxu1 %v6934_v47 }
 0x385   :  { %4805 = vmatprep.subr.bf16.mxu0 %v6936_v50  ;;  %4837 = vmatprep.subr.bf16.mxu1 %v6948_v6 }
 0x388   :  { %4807 = vmatpush1.bf16.msra.mxu0 %v6960_v39  ;;  %4839 = vmatpush1.bf16.msra.mxu1 %v6964_v58 }
 0x389   :  { %4841 = vmatprep.subr.bf16.mxu0 %v6644_v16  ;;  %4873 = vmatprep.subr.bf16.mxu1 %v6655_v28 }
 0x43e   :  { %v1377_v55 = vpop.f32.mrb[6].mxu0  ;;  %v1448_v59 = vpop.f32.mrb[6].mxu1 }
 0x43f   :  { %v5550_v38 = vadd.f32 %v1377_v55, %v6569_v52  ;;  %v1379_v0 = vpop.f32.mrb[7].mxu0  ;;  %v1450_v19 = vpop.f32.mrb[7].mxu1  ;;  %v5582_v22 = vadd.f32 %v1448_v59, %v6575_v7 }
 0x440   :  { %v5551_v5 = vadd.f32 %v1379_v0, %v6571_v53  ;;  %v5583_v45 = vadd.f32 %v1450_v19, %v6578_v15 }
 0x441   :  { %v4403_v9 = vmul.f32 -1.442695, %v5550_v38  ;;  %v4405_v33 = vmul.f32 -1.442695, %v5582_v22 }
 0x442   :  { %v4404_v32 = vmul.f32 -1.442695, %v5551_v5 }
 0x443   :  { %5721 = vpow2.f32 %v4403_v9 }
 0x444   :  { %5723 = vpow2.f32 %v4404_v32 }
 0x445   :  { %5725 = vtanh.f32 %v5583_v45 }
 0x446   :  { %5727 = vpow2.f32 %v4405_v33 }
 0x44d   :  { %v5722_v61 = vpop.eup %5721 }
 0x44e   :  { %v1460_v2 = vadd.f32 1.0, %v5722_v61  ;;  %v5724_v37 = vpop.eup %5723 }
 0x44f   :  { %v1466_v18 = vadd.f32 1.0, %v5724_v37  ;;  %v5726_v44 = vpop.eup %5725 }
 0x450   :  { %5729 = vrcp.f32 %v1460_v2  ;;  %v5728_v14 = vpop.eup %5727 }
 0x451   :  { %5731 = vrcp.f32 %v1466_v18  ;;  %v1472_v56 = vadd.f32 1.0, %v5728_v14 }
 0x453   :  { %5733 = vrcp.f32 %v1472_v56 }
 0x45a   :  { %v5730_v24 = vpop.eup %5729 }
 0x45b   :  { %v1477_v27 = vmul.f32 %v5730_v24, %v5726_v44  ;;  %v5732_v46 = vpop.eup %5731 }
 0x45c   :  { %v1476_v62 = vmul.f32 %v5732_v46, %v6834_v57 }
 0x45d   :  { %v5734_v12 = vpop.eup %5733 }
 0x45e   :  { %v6975_v63 = vadd.f32 %v1477_v27, %v1476_v62 }
 0x460   :  { %5735 = vtanh.f32 %v6975_v63 }
 0x46a   :  { %v5736_v13 = vpop.eup %5735 }
 0x46b   :  { %v1480_v26 = vmul.f32 %v5736_v13, %v5734_v12 }
 0x46d   :  { %4406 = vst [vmem:[%s8101_s5 + $0x18] sm:$0xff] %v1480_v26  ;;  %1617 = vmatmul.mubr.f32.vlgmr.msra.gmra.mrb[8].mxu0 %v1480_v26  ;;  %1688 = vmatmul.mubr.f32.vlgmr.msra.gmra.mrb[8].mxu1 %v1480_v26 }
 0x46e   :  { %4843 = vmatpush1.bf16.msra.mxu0 %v6657_v29  ;;  %4875 = vmatpush1.bf16.msra.mxu1 %v6666_v34 }
 0x46f   :  { %4845 = vmatprep.subr.bf16.mxu0 %v6680_v41  ;;  %4877 = vmatprep.subr.bf16.mxu1 %v6691_v49 }
 0x470   :  { %1857 = vmatprep.mubr.f32.mxu0 %v5929_v3  ;;  %1928 = vmatprep.mubr.f32.mxu1 %v5929_v3 }
 0x472   :  { %4847 = vmatpush1.bf16.msra.mxu0 %v6693_v51  ;;  %4879 = vmatpush1.bf16.msra.mxu1 %v6702_v54 }
 0x473   :  { %4849 = vmatprep.subr.bf16.mxu0 %v6716_v4  ;;  %4881 = vmatprep.subr.bf16.mxu1 %v6727_v17 }
 0x476   :  { %4851 = vmatpush1.bf16.msra.mxu0 %v6729_v25  ;;  %4883 = vmatpush1.bf16.msra.mxu1 %v6738_v40 }
 0x477   :  { %4853 = vmatprep.subr.bf16.mxu0 %v6749_v11  ;;  %4885 = vmatprep.subr.bf16.mxu1 %v6866_v42 }
 0x47a   :  { %4855 = vmatpush1.bf16.msra.mxu0 %v6758_v60  ;;  %4887 = vmatpush1.bf16.msra.mxu1 %v6874_v30 }
 0x47b   :  { %4857 = vmatprep.subr.bf16.mxu0 %v6769_v1  ;;  %4889 = vmatprep.subr.bf16.mxu1 %v6884_v21 }
 0x47e   :  { %4859 = vmatpush1.bf16.msra.mxu0 %v6778_v8  ;;  %4891 = vmatpush1.bf16.msra.mxu1 %v6892_v31 }
 0x47f   :  { %4861 = vmatprep.subr.bf16.mxu0 %v6789_v10  ;;  %4893 = vmatprep.subr.bf16.mxu1 %v6902_v36 }
 0x482   :  { %4863 = vmatpush1.bf16.msra.mxu0 %v6801_v23  ;;  %4895 = vmatpush1.bf16.msra.mxu1 %v6910_v43 }
 0x483   :  { %4865 = vmatprep.subr.bf16.mxu0 %v6813_v35  ;;  %4897 = vmatprep.subr.bf16.mxu1 %v6922_v20 }
 0x486   :  { %4867 = vmatpush1.bf16.msra.mxu0 %v6816_v48  ;;  %4899 = vmatpush1.bf16.msra.mxu1 %v6934_v47 }
 0x487   :  { %4869 = vmatprep.subr.bf16.mxu0 %v6936_v50  ;;  %4901 = vmatprep.subr.bf16.mxu1 %v6948_v6 }
 0x48a   :  { %4871 = vmatpush1.bf16.msra.mxu0 %v6960_v39  ;;  %4903 = vmatpush1.bf16.msra.mxu1 %v6964_v58 }
 0x48b   :  { %4905 = vmatprep.subr.bf16.mxu0 %v6644_v16  ;;  %4937 = vmatprep.subr.bf16.mxu1 %v6655_v28 }
 0x540   :  { %v1618_v57 = vpop.f32.mrb[8].mxu0  ;;  %v1689_v55 = vpop.f32.mrb[8].mxu1 }
 0x541   :  { %v5552_v59 = vadd.f32 %v1618_v57, %v6569_v52  ;;  %v1620_v38 = vpop.f32.mrb[9].mxu0  ;;  %v1691_v0 = vpop.f32.mrb[9].mxu1  ;;  %v5584_v32 = vadd.f32 %v1689_v55, %v6575_v7 }
 0x542   :  { %v5553_v19 = vadd.f32 %v1620_v38, %v6571_v53  ;;  %v5585_v22 = vadd.f32 %v1691_v0, %v6578_v15 }
 0x543   :  { %v4407_v5 = vmul.f32 -1.442695, %v5552_v59  ;;  %v4409_v45 = vmul.f32 -1.442695, %v5584_v32 }
 0x544   :  { %v4408_v9 = vmul.f32 -1.442695, %v5553_v19  ;;  %v2212_v19 = vld [vmem:[%s8097_s2 + $0x8] sm:$0xff] }
 0x545   :  { %5737 = vpow2.f32 %v4407_v5  ;;  %v2216_v5 = vld [vmem:[%s8097_s2 + $0x28] sm:$0xff] }
 0x546   :  { %5739 = vpow2.f32 %v4408_v9  ;;  %v2214_v9 = vld [vmem:[%s8097_s2 + $0x18] sm:$0xff]  ;;  %v7080_v32 = vpack.c.bf16 %v2216_v5, %v2212_v19  ;;  %v2256_v5 = vld [vmem:[%s8097_s2 + $0x168] sm:$0xff] }
 0x547   :  { %5741 = vtanh.f32 %v5585_v22  ;;  %v2218_v22 = vld [vmem:[%s8097_s2 + $0x38] sm:$0xff] }
 0x548   :  { %5743 = vpow2.f32 %v4409_v45  ;;  %v2211_v45 = vld [vmem:[%s8097_s2] sm:$0xff] }
 0x54f   :  { %v5738_v16 = vpop.eup %5737 }
 0x550   :  { %v1701_v33 = vadd.f32 1.0, %v5738_v16  ;;  %v5740_v28 = vpop.eup %5739  ;;  %v2215_v16 = vld [vmem:[%s8097_s2 + $0x20] sm:$0xff] }
 0x551   :  { %v1707_v61 = vadd.f32 1.0, %v5740_v28  ;;  %v5742_v2 = vpop.eup %5741  ;;  %v7093_v28 = vpack.c.bf16 %v2215_v16, %v2211_v45  ;;  %v2260_v16 = vld [vmem:[%s8097_s2 + $0x188] sm:$0xff] }
 0x552   :  { %5745 = vrcp.f32 %v1701_v33  ;;  %v5744_v37 = vpop.eup %5743  ;;  %v7091_v33 = vpack.c.bf16 %v2218_v22, %v2214_v9  ;;  %v2255_v22 = vld [vmem:[%s8097_s2 + $0x160] sm:$0xff] }
 0x553   :  { %5747 = vrcp.f32 %v1707_v61  ;;  %v1713_v24 = vadd.f32 1.0, %v5744_v37  ;;  %v2213_v61 = vld [vmem:[%s8097_s2 + $0x10] sm:$0xff] }
 0x555   :  { %5749 = vrcp.f32 %v1713_v24 }
 0x55c   :  { %v5746_v18 = vpop.eup %5745 }
 0x55d   :  { %v1718_v44 = vmul.f32 %v5746_v18, %v5742_v2  ;;  %v5748_v14 = vpop.eup %5747  ;;  %v2217_v2 = vld [vmem:[%s8097_s2 + $0x30] sm:$0xff]  ;;  %v2220_v18 = vld [vmem:[%s8097_s2 + $0x48] sm:$0xff] }
 0x55e   :  { %v1717_v27 = vmul.f32 %v5748_v14, %v6975_v63  ;;  %v7102_v37 = vpack.c.bf16 %v2217_v2, %v2213_v61  ;;  %v2222_v14 = vld [vmem:[%s8097_s2 + $0x58] sm:$0xff]  ;;  %v2259_v61 = vld [vmem:[%s8097_s2 + $0x180] sm:$0xff] }
 0x55f   :  { %v5750_v56 = vpop.eup %5749 }
 0x560   :  { %v7020_v46 = vadd.f32 %v1718_v44, %v1717_v27  ;;  %v2224_v44 = vld [vmem:[%s8097_s2 + $0x68] sm:$0xff]  ;;  %v2226_v27 = vld [vmem:[%s8097_s2 + $0x78] sm:$0xff] }
 0x561   :  { %v7116_v24 = vpack.c.bf16 %v2224_v44, %v2220_v18 }
 0x562   :  { %5751 = vtanh.f32 %v7020_v46 }
 0x56c   :  { %v5752_v62 = vpop.eup %5751 }
 0x56d   :  { %v1721_v12 = vmul.f32 %v5752_v62, %v5750_v56  ;;  %v2223_v56 = vld [vmem:[%s8097_s2 + $0x60] sm:$0xff]  ;;  %v7127_v62 = vpack.c.bf16 %v2226_v27, %v2222_v14 }
 0x56f   :  { %4410 = vst [vmem:[%s8101_s5 + $0x20] sm:$0xff] %v1721_v12  ;;  %1858 = vmatmul.mubr.f32.vlgmr.msra.gmra.mrb[10].mxu0 %v1721_v12  ;;  %1929 = vmatmul.mubr.f32.vlgmr.msra.gmra.mrb[10].mxu1 %v1721_v12 }
 0x570   :  { %4907 = vmatpush1.bf16.msra.mxu0 %v6657_v29  ;;  %4939 = vmatpush1.bf16.msra.mxu1 %v6666_v34 }
 0x571   :  { %4909 = vmatprep.subr.bf16.mxu0 %v6680_v41  ;;  %4941 = vmatprep.subr.bf16.mxu1 %v6691_v49 }
 0x572   :  { %2098 = vmatprep.mubr.f32.mxu0 %v5929_v3  ;;  %2169 = vmatprep.mubr.f32.mxu1 %v5929_v3 }
 0x574   :  { %4911 = vmatpush1.bf16.msra.mxu0 %v6693_v51  ;;  %4943 = vmatpush1.bf16.msra.mxu1 %v6702_v54 }
 0x575   :  { %4913 = vmatprep.subr.bf16.mxu0 %v6716_v4  ;;  %4945 = vmatprep.subr.bf16.mxu1 %v6727_v17 }
 0x578   :  { %4915 = vmatpush1.bf16.msra.mxu0 %v6729_v25  ;;  %4947 = vmatpush1.bf16.msra.mxu1 %v6738_v40 }
 0x579   :  { %4917 = vmatprep.subr.bf16.mxu0 %v6749_v11  ;;  %4949 = vmatprep.subr.bf16.mxu1 %v6866_v42 }
 0x57c   :  { %4919 = vmatpush1.bf16.msra.mxu0 %v6758_v60  ;;  %4951 = vmatpush1.bf16.msra.mxu1 %v6874_v30 }
 0x57d   :  { %4921 = vmatprep.subr.bf16.mxu0 %v6769_v1  ;;  %4953 = vmatprep.subr.bf16.mxu1 %v6884_v21 }
 0x580   :  { %4923 = vmatpush1.bf16.msra.mxu0 %v6778_v8  ;;  %4955 = vmatpush1.bf16.msra.mxu1 %v6892_v31 }
 0x581   :  { %4925 = vmatprep.subr.bf16.mxu0 %v6789_v10  ;;  %4957 = vmatprep.subr.bf16.mxu1 %v6902_v36 }
 0x584   :  { %4927 = vmatpush1.bf16.msra.mxu0 %v6801_v23  ;;  %4959 = vmatpush1.bf16.msra.mxu1 %v6910_v43 }
 0x585   :  { %4929 = vmatprep.subr.bf16.mxu0 %v6813_v35  ;;  %4961 = vmatprep.subr.bf16.mxu1 %v6922_v20 }
 0x588   :  { %4931 = vmatpush1.bf16.msra.mxu0 %v6816_v48  ;;  %4963 = vmatpush1.bf16.msra.mxu1 %v6934_v47 }
 0x589   :  { %4933 = vmatprep.subr.bf16.mxu0 %v6936_v50  ;;  %4965 = vmatprep.subr.bf16.mxu1 %v6948_v6 }
 0x58c   :  { %4935 = vmatpush1.bf16.msra.mxu0 %v6960_v39  ;;  %4967 = vmatpush1.bf16.msra.mxu1 %v6964_v58 }
 0x58d   :  { %4969 = vmatprep.subr.bf16.mxu0 %v7080_v32  ;;  %5001 = vmatprep.subr.bf16.mxu1 %v7091_v33 }
 0x642   :  { %v1859_v29 = vpop.f32.mrb[10].mxu0  ;;  %v1930_v34 = vpop.f32.mrb[10].mxu1 }
 0x643   :  { %v5554_v41 = vadd.f32 %v1859_v29, %v6569_v52  ;;  %v1861_v49 = vpop.f32.mrb[11].mxu0  ;;  %v1932_v51 = vpop.f32.mrb[11].mxu1  ;;  %v5586_v25 = vadd.f32 %v1930_v34, %v6575_v7  ;;  %v2221_v29 = vld [vmem:[%s8097_s2 + $0x50] sm:$0xff] }
 0x644   :  { %v5555_v54 = vadd.f32 %v1861_v49, %v6571_v53  ;;  %v5587_v40 = vadd.f32 %v1932_v51, %v6578_v15  ;;  %v2225_v34 = vld [vmem:[%s8097_s2 + $0x70] sm:$0xff]  ;;  %v2228_v49 = vld [vmem:[%s8097_s2 + $0x88] sm:$0xff] }
 0x645   :  { %v4411_v4 = vmul.f32 -1.442695, %v5554_v41  ;;  %v4413_v11 = vmul.f32 -1.442695, %v5586_v25  ;;  %v7138_v41 = vpack.c.bf16 %v2225_v34, %v2221_v29  ;;  %v2232_v51 = vld [vmem:[%s8097_s2 + $0xa8] sm:$0xff]  ;;  %v2227_v25 = vld [vmem:[%s8097_s2 + $0x80] sm:$0xff] }
 0x646   :  { %v4412_v17 = vmul.f32 -1.442695, %v5555_v54  ;;  %v2230_v54 = vld [vmem:[%s8097_s2 + $0x98] sm:$0xff] }
 0x647   :  { %5753 = vpow2.f32 %v4411_v4  ;;  %v7152_v4 = vpack.c.bf16 %v2232_v51, %v2228_v49 }
 0x648   :  { %5755 = vpow2.f32 %v4412_v17  ;;  %v2234_v17 = vld [vmem:[%s8097_s2 + $0xb8] sm:$0xff] }
 0x649   :  { %5757 = vtanh.f32 %v5587_v40  ;;  %v2231_v40 = vld [vmem:[%s8097_s2 + $0xa0] sm:$0xff] }
 0x64a   :  { %5759 = vpow2.f32 %v4413_v11  ;;  %v7163_v11 = vpack.c.bf16 %v2234_v17, %v2230_v54 }
 0x651   :  { %v5754_v60 = vpop.eup %5753 }
 0x652   :  { %v1942_v1 = vadd.f32 1.0, %v5754_v60  ;;  %v5756_v8 = vpop.eup %5755  ;;  %v7165_v60 = vpack.c.bf16 %v2231_v40, %v2227_v25 }
 0x653   :  { %v1948_v10 = vadd.f32 1.0, %v5756_v8  ;;  %v5758_v23 = vpop.eup %5757  ;;  %v2233_v8 = vld [vmem:[%s8097_s2 + $0xb0] sm:$0xff] }
 0x654   :  { %5761 = vrcp.f32 %v1942_v1  ;;  %v5760_v35 = vpop.eup %5759  ;;  %v2229_v1 = vld [vmem:[%s8097_s2 + $0x90] sm:$0xff] }
 0x655   :  { %5763 = vrcp.f32 %v1948_v10  ;;  %v1954_v26 = vadd.f32 1.0, %v5760_v35  ;;  %v7174_v10 = vpack.c.bf16 %v2233_v8, %v2229_v1  ;;  %v2240_v35 = vld [vmem:[%s8097_s2 + $0xe8] sm:$0xff] }
 0x657   :  { %5765 = vrcp.f32 %v1954_v26 }
 0x65e   :  { %v5762_v48 = vpop.eup %5761 }
 0x65f   :  { %v1959_v63 = vmul.f32 %v5762_v48, %v5758_v23  ;;  %v5764_v13 = vpop.eup %5763  ;;  %v2236_v23 = vld [vmem:[%s8097_s2 + $0xc8] sm:$0xff] }
 0x660   :  { %v1958_v57 = vmul.f32 %v5764_v13, %v7020_v46  ;;  %v2219_v46 = vld [vmem:[%s8097_s2 + $0x40] sm:$0xff]  ;;  %v7185_v48 = vpack.c.bf16 %v2240_v35, %v2236_v23 }
 0x661   :  { %v5766_v59 = vpop.eup %5765  ;;  %v7129_v12 = vpack.c.bf16 %v2223_v56, %v2219_v46  ;;  %v2239_v13 = vld [vmem:[%s8097_s2 + $0xe0] sm:$0xff] }
 0x662   :  { %v7063_v55 = vadd.f32 %v1959_v63, %v1958_v57  ;;  %v2235_v63 = vld [vmem:[%s8097_s2 + $0xc0] sm:$0xff]  ;;  %v2244_v57 = vld [vmem:[%s8097_s2 + $0x108] sm:$0xff] }
 0x663   :  { %v7194_v26 = vpack.c.bf16 %v2239_v13, %v2235_v63 }
 0x664   :  { %5767 = vtanh.f32 %v7063_v55 }
 0x66e   :  { %v5768_v38 = vpop.eup %5767 }
 0x66f   :  { %v1962_v0 = vmul.f32 %v5768_v38, %v5766_v59  ;;  %v2248_v59 = vld [vmem:[%s8097_s2 + $0x128] sm:$0xff] }
 0x670   :  { %v7205_v38 = vpack.c.bf16 %v2248_v59, %v2244_v57  ;;  %v2483_v57 = vld [vmem:[%s8097_s2 + $0xf8] sm:$0xff] }
 0x671   :  { %4414 = vst [vmem:[%s8101_s5 + $0x28] sm:$0xff] %v1962_v0  ;;  %2099 = vmatmul.mubr.f32.vlgmr.msra.gmra.mrb[12].mxu0 %v1962_v0  ;;  %2170 = vmatmul.mubr.f32.vlgmr.msra.gmra.mrb[12].mxu1 %v1962_v0  ;;  %v2247_v0 = vld [vmem:[%s8097_s2 + $0x120] sm:$0xff] }
 0x672   :  { %2339 = vmatprep.mubr.f32.mxu0 %v5929_v3  ;;  %2410 = vmatprep.mubr.f32.mxu1 %v5929_v3 }
 0x673   :  { %4971 = vmatpush1.bf16.msra.mxu0 %v7093_v28  ;;  %5003 = vmatpush1.bf16.msra.mxu1 %v7102_v37 }
 0x674   :  { %4973 = vmatprep.subr.bf16.mxu0 %v7116_v24  ;;  %5005 = vmatprep.subr.bf16.mxu1 %v7127_v62 }
 0x677   :  { %4975 = vmatpush1.bf16.msra.mxu0 %v7129_v12  ;;  %5007 = vmatpush1.bf16.msra.mxu1 %v7138_v41 }
 0x678   :  { %4977 = vmatprep.subr.bf16.mxu0 %v7152_v4  ;;  %5009 = vmatprep.subr.bf16.mxu1 %v7163_v11 }
 0x67b   :  { %4979 = vmatpush1.bf16.msra.mxu0 %v7165_v60  ;;  %5011 = vmatpush1.bf16.msra.mxu1 %v7174_v10 }
 0x67c   :  { %5013 = vmatprep.subr.bf16.mxu1 %v6866_v42  ;;  %4981 = vmatprep.subr.bf16.mxu0 %v7185_v48  ;;  %v2243_v42 = vld [vmem:[%s8097_s2 + $0x100] sm:$0xff] }
 0x67d   :  { %v7214_v19 = vpack.c.bf16 %v2247_v0, %v2243_v42  ;;  %v2478_v42 = vld [vmem:[%s8097_s2 + $0xd0] sm:$0xff] }
 0x67e   :  { %v2482_v0 = vld [vmem:[%s8097_s2 + $0xf0] sm:$0xff] }
 0x67f   :  { %4983 = vmatpush1.bf16.msra.mxu0 %v7194_v26  ;;  %5015 = vmatpush1.bf16.msra.mxu1 %v6874_v30  ;;  %v2252_v30 = vld [vmem:[%s8097_s2 + $0x148] sm:$0xff] }
 0x680   :  { %5017 = vmatprep.subr.bf16.mxu1 %v6884_v21  ;;  %4985 = vmatprep.subr.bf16.mxu0 %v7205_v38  ;;  %v7225_v9 = vpack.c.bf16 %v2256_v5, %v2252_v30  ;;  %v2251_v21 = vld [vmem:[%s8097_s2 + $0x140] sm:$0xff]  ;;  %v7310_v30 = vpack.c.bf16 %v2482_v0, %v2478_v42  ;;  %v2487_v5 = vld [vmem:[%s8097_s2 + $0x118] sm:$0xff] }
 0x681   :  { %v7234_v45 = vpack.c.bf16 %v2255_v22, %v2251_v21  ;;  %v2491_v21 = vld [vmem:[%s8097_s2 + $0x138] sm:$0xff] }
 0x682   :  { %v7320_v22 = vpack.c.bf16 %v2491_v21, %v2487_v5 }
 0x683   :  { %4987 = vmatpush1.bf16.msra.mxu0 %v7214_v19  ;;  %5019 = vmatpush1.bf16.msra.mxu1 %v6892_v31  ;;  %v2264_v31 = vld [vmem:[%s8097_s2 + $0x1a8] sm:$0xff] }
 0x684   :  { %5021 = vmatprep.subr.bf16.mxu1 %v6902_v36  ;;  %4989 = vmatprep.subr.bf16.mxu0 %v7225_v9  ;;  %v7246_v2 = vpack.c.bf16 %v2264_v31, %v2260_v16  ;;  %v2263_v36 = vld [vmem:[%s8097_s2 + $0x1a0] sm:$0xff]  ;;  %v2486_v16 = vld [vmem:[%s8097_s2 + $0x110] sm:$0xff] }
 0x685   :  { %v7252_v18 = vpack.c.bf16 %v2263_v36, %v2259_v61  ;;  %v2490_v31 = vld [vmem:[%s8097_s2 + $0x130] sm:$0xff]  ;;  %v2495_v36 = vld [vmem:[%s8097_s2 + $0x158] sm:$0xff] }
 0x686   :  { %v7328_v61 = vpack.c.bf16 %v2490_v31, %v2486_v16 }
 0x687   :  { %4991 = vmatpush1.bf16.msra.mxu0 %v7234_v45  ;;  %5023 = vmatpush1.bf16.msra.mxu1 %v6910_v43 }
 0x688   :  { %4993 = vmatprep.subr.bf16.mxu0 %v7246_v2  ;;  %5025 = vmatprep.subr.bf16.mxu1 %v6922_v20 }
 0x68b   :  { %4995 = vmatpush1.bf16.msra.mxu0 %v7252_v18  ;;  %5027 = vmatpush1.bf16.msra.mxu1 %v6934_v47 }
 0x68c   :  { %4997 = vmatprep.subr.bf16.mxu0 %v6936_v50  ;;  %5029 = vmatprep.subr.bf16.mxu1 %v6948_v6 }
 0x68f   :  { %4999 = vmatpush1.bf16.msra.mxu0 %v6960_v39  ;;  %5031 = vmatpush1.bf16.msra.mxu1 %v6964_v58 }
 0x690   :  { %5033 = vmatprep.subr.bf16.mxu0 %v7080_v32  ;;  %5065 = vmatprep.subr.bf16.mxu1 %v7091_v33 }
 0x744   :  { %v2100_v43 = vpop.f32.mrb[12].mxu0  ;;  %v2171_v44 = vpop.f32.mrb[12].mxu1 }
 0x745   :  { %v5556_v20 = vadd.f32 %v2100_v43, %v6569_v52  ;;  %v2102_v14 = vpop.f32.mrb[13].mxu0  ;;  %v2173_v27 = vpop.f32.mrb[13].mxu1  ;;  %v5588_v6 = vadd.f32 %v2171_v44, %v6575_v7  ;;  %v2499_v43 = vld [vmem:[%s8097_s2 + $0x178] sm:$0xff] }
 0x746   :  { %v5557_v47 = vadd.f32 %v2102_v14, %v6571_v53  ;;  %v5589_v39 = vadd.f32 %v2173_v27, %v6578_v15  ;;  %v7338_v44 = vpack.c.bf16 %v2499_v43, %v2495_v36  ;;  %v2498_v14 = vld [vmem:[%s8097_s2 + $0x170] sm:$0xff] }
 0x747   :  { %v4415_v46 = vmul.f32 -1.442695, %v5556_v20  ;;  %v4417_v58 = vmul.f32 -1.442695, %v5588_v6  ;;  %v2494_v20 = vld [vmem:[%s8097_s2 + $0x150] sm:$0xff] }
 0x748   :  { %v4416_v50 = vmul.f32 -1.442695, %v5557_v47  ;;  %v7346_v27 = vpack.c.bf16 %v2498_v14, %v2494_v20  ;;  %v2503_v47 = vld [vmem:[%s8097_s2 + $0x198] sm:$0xff] }
 0x749   :  { %5769 = vpow2.f32 %v4415_v46  ;;  %v2507_v46 = vld [vmem:[%s8097_s2 + $0x1b8] sm:$0xff] }
 0x74a   :  { %5771 = vpow2.f32 %v4416_v50  ;;  %v2502_v50 = vld [vmem:[%s8097_s2 + $0x190] sm:$0xff]  ;;  %v7358_v6 = vpack.c.bf16 %v2507_v46, %v2503_v47 }
 0x74b   :  { %5773 = vtanh.f32 %v5589_v39  ;;  %v2506_v39 = vld [vmem:[%s8097_s2 + $0x1b0] sm:$0xff] }
 0x74c   :  { %5775 = vpow2.f32 %v4417_v58  ;;  %v2509_v58 = vld [vmem:[%s8097_s2 + $0x1c8] sm:$0xff] }
 0x753   :  { %v5770_v56 = vpop.eup %5769 }
 0x754   :  { %v2183_v29 = vadd.f32 1.0, %v5770_v56  ;;  %v5772_v34 = vpop.eup %5771  ;;  %v2513_v56 = vld [vmem:[%s8097_s2 + $0x1e8] sm:$0xff] }
 0x755   :  { %v2189_v49 = vadd.f32 1.0, %v5772_v34  ;;  %v5774_v51 = vpop.eup %5773  ;;  %v7372_v34 = vpack.c.bf16 %v2513_v56, %v2509_v58 }
 0x756   :  { %5777 = vrcp.f32 %v2183_v29  ;;  %v5776_v54 = vpop.eup %5775  ;;  %v7370_v29 = vpack.c.bf16 %v2506_v39, %v2502_v50 }
 0x757   :  { %5779 = vrcp.f32 %v2189_v49  ;;  %v2195_v1 = vadd.f32 1.0, %v5776_v54  ;;  %v2511_v49 = vld [vmem:[%s8097_s2 + $0x1d8] sm:$0xff]  ;;  %v2508_v54 = vld [vmem:[%s8097_s2 + $0x1c0] sm:$0xff] }
 0x759   :  { %5781 = vrcp.f32 %v2195_v1  ;;  %v2514_v1 = vld [vmem:[%s8097_s2 + $0x1f0] sm:$0xff] }
 0x760   :  { %v5778_v17 = vpop.eup %5777 }
 0x761   :  { %v2200_v25 = vmul.f32 %v5778_v17, %v5774_v51  ;;  %v5780_v40 = vpop.eup %5779  ;;  %v2515_v51 = vld [vmem:[%s8097_s2 + $0x1f8] sm:$0xff] }
 0x762   :  { %v2199_v8 = vmul.f32 %v5780_v40, %v7063_v55  ;;  %v2479_v55 = vld [vmem:[%s8097_s2 + $0xd8] sm:$0xff]  ;;  %v7384_v17 = vpack.c.bf16 %v2515_v51, %v2511_v49  ;;  %v2510_v40 = vld [vmem:[%s8097_s2 + $0x1d0] sm:$0xff] }
 0x763   :  { %v5782_v35 = vpop.eup %5781  ;;  %v7302_v59 = vpack.c.bf16 %v2483_v57, %v2479_v55 }
 0x764   :  { %v7270_v23 = vadd.f32 %v2200_v25, %v2199_v8  ;;  %v2512_v25 = vld [vmem:[%s8097_s2 + $0x1e0] sm:$0xff] }
 0x765   :  { %v7396_v8 = vpack.c.bf16 %v2512_v25, %v2508_v54 }
 0x766   :  { %5783 = vtanh.f32 %v7270_v23 }
 0x770   :  { %v5784_v63 = vpop.eup %5783 }
 0x771   :  { %v2203_v13 = vmul.f32 %v5784_v63, %v5782_v35  ;;  %v7400_v35 = vpack.c.bf16 %v2514_v1, %v2510_v40 }
 0x773   :  { %4418 = vst [vmem:[%s8101_s5 + $0x30] sm:$0xff] %v2203_v13  ;;  %2340 = vmatmul.mubr.f32.vlgmr.msra.gmra.mrb[14].mxu0 %v2203_v13  ;;  %2411 = vmatmul.mubr.f32.vlgmr.msra.gmra.mrb[14].mxu1 %v2203_v13 }
 0x774   :  { %5035 = vmatpush1.bf16.msra.mxu0 %v7093_v28  ;;  %5067 = vmatpush1.bf16.msra.mxu1 %v7102_v37 }
 0x775   :  { %5037 = vmatprep.subr.bf16.mxu0 %v7116_v24  ;;  %5069 = vmatprep.subr.bf16.mxu1 %v7127_v62 }
 0x776   :  { %2580 = vmatprep.mubr.f32.mxu0 %v5929_v3  ;;  %2651 = vmatprep.mubr.f32.mxu1 %v5929_v3 }
 0x778   :  { %5039 = vmatpush1.bf16.msra.mxu0 %v7129_v12  ;;  %5071 = vmatpush1.bf16.msra.mxu1 %v7138_v41 }
 0x779   :  { %5041 = vmatprep.subr.bf16.mxu0 %v7152_v4  ;;  %5073 = vmatprep.subr.bf16.mxu1 %v7163_v11 }
 0x77c   :  { %5043 = vmatpush1.bf16.msra.mxu0 %v7165_v60  ;;  %5075 = vmatpush1.bf16.msra.mxu1 %v7174_v10 }
 0x77d   :  { %5045 = vmatprep.subr.bf16.mxu0 %v7185_v48  ;;  %5077 = vmatprep.subr.bf16.mxu1 %v7302_v59 }
 0x780   :  { %5047 = vmatpush1.bf16.msra.mxu0 %v7194_v26  ;;  %5079 = vmatpush1.bf16.msra.mxu1 %v7310_v30 }
 0x781   :  { %5049 = vmatprep.subr.bf16.mxu0 %v7205_v38  ;;  %5081 = vmatprep.subr.bf16.mxu1 %v7320_v22 }
 0x784   :  { %5051 = vmatpush1.bf16.msra.mxu0 %v7214_v19  ;;  %5083 = vmatpush1.bf16.msra.mxu1 %v7328_v61 }
 0x785   :  { %5053 = vmatprep.subr.bf16.mxu0 %v7225_v9  ;;  %5085 = vmatprep.subr.bf16.mxu1 %v7338_v44 }
 0x788   :  { %5055 = vmatpush1.bf16.msra.mxu0 %v7234_v45  ;;  %5087 = vmatpush1.bf16.msra.mxu1 %v7346_v27 }
 0x789   :  { %5057 = vmatprep.subr.bf16.mxu0 %v7246_v2  ;;  %5089 = vmatprep.subr.bf16.mxu1 %v7358_v6 }
 0x78c   :  { %5059 = vmatpush1.bf16.msra.mxu0 %v7252_v18  ;;  %5091 = vmatpush1.bf16.msra.mxu1 %v7370_v29 }
 0x78d   :  { %5061 = vmatprep.subr.bf16.mxu0 %v7372_v34  ;;  %5093 = vmatprep.subr.bf16.mxu1 %v7384_v17 }
 0x790   :  { %5063 = vmatpush1.bf16.msra.mxu0 %v7396_v8  ;;  %5095 = vmatpush1.bf16.msra.mxu1 %v7400_v35 }
 0x791   :  { %5097 = vmatprep.subr.bf16.mxu0 %v7080_v32  ;;  %5129 = vmatprep.subr.bf16.mxu1 %v7091_v33 }
 0x846   :  { %v2341_v63 = vpop.f32.mrb[14].mxu0  ;;  %v2412_v13 = vpop.f32.mrb[14].mxu1 }
 0x847   :  { %v5558_v55 = vadd.f32 %v2341_v63, %v6569_v52  ;;  %v2343_v57 = vpop.f32.mrb[15].mxu0  ;;  %v2414_v42 = vpop.f32.mrb[15].mxu1  ;;  %v5590_v16 = vadd.f32 %v2412_v13, %v6575_v7 }
 0x848   :  { %v5559_v0 = vadd.f32 %v2343_v57, %v6571_v53  ;;  %v5591_v31 = vadd.f32 %v2414_v42, %v6578_v15 }
 0x849   :  { %v4419_v5 = vmul.f32 -1.442695, %v5558_v55  ;;  %v4421_v36 = vmul.f32 -1.442695, %v5590_v16 }
 0x84a   :  { %v4420_v21 = vmul.f32 -1.442695, %v5559_v0 }
 0x84b   :  { %5785 = vpow2.f32 %v4419_v5 }
 0x84c   :  { %5787 = vpow2.f32 %v4420_v21 }
 0x84d   :  { %5789 = vtanh.f32 %v5591_v31 }
 0x84e   :  { %5791 = vpow2.f32 %v4421_v36 }
 0x855   :  { %v5786_v43 = vpop.eup %5785 }
 0x856   :  { %v2424_v20 = vadd.f32 1.0, %v5786_v43  ;;  %v5788_v14 = vpop.eup %5787 }
 0x857   :  { %v2430_v47 = vadd.f32 1.0, %v5788_v14  ;;  %v5790_v46 = vpop.eup %5789 }
 0x858   :  { %5793 = vrcp.f32 %v2424_v20  ;;  %v5792_v50 = vpop.eup %5791 }
 0x859   :  { %5795 = vrcp.f32 %v2430_v47  ;;  %v2436_v49 = vadd.f32 1.0, %v5792_v50 }
 0x85b   :  { %5797 = vrcp.f32 %v2436_v49 }
 0x862   :  { %v5794_v39 = vpop.eup %5793 }
 0x863   :  { %v2441_v58 = vmul.f32 %v5794_v39, %v5790_v46  ;;  %v5796_v56 = vpop.eup %5795 }
 0x864   :  { %v2440_v51 = vmul.f32 %v5796_v56, %v7270_v23 }
 0x865   :  { %v5798_v25 = vpop.eup %5797 }
 0x866   :  { %v7411_v54 = vadd.f32 %v2441_v58, %v2440_v51 }
 0x868   :  { %5799 = vtanh.f32 %v7411_v54 }
 0x872   :  { %v5800_v40 = vpop.eup %5799 }
 0x873   :  { %v2444_v1 = vmul.f32 %v5800_v40, %v5798_v25 }
 0x875   :  { %4422 = vst [vmem:[%s8101_s5 + $0x38] sm:$0xff] %v2444_v1  ;;  %2581 = vmatmul.mubr.f32.vlgmr.msra.gmra.mrb[16].mxu0 %v2444_v1  ;;  %2652 = vmatmul.mubr.f32.vlgmr.msra.gmra.mrb[16].mxu1 %v2444_v1 }
 0x876   :  { %5099 = vmatpush1.bf16.msra.mxu0 %v7093_v28  ;;  %5131 = vmatpush1.bf16.msra.mxu1 %v7102_v37 }
 0x877   :  { %5101 = vmatprep.subr.bf16.mxu0 %v7116_v24  ;;  %5133 = vmatprep.subr.bf16.mxu1 %v7127_v62 }
 0x878   :  { %2821 = vmatprep.mubr.f32.mxu0 %v5929_v3  ;;  %2892 = vmatprep.mubr.f32.mxu1 %v5929_v3 }
 0x87a   :  { %5103 = vmatpush1.bf16.msra.mxu0 %v7129_v12  ;;  %5135 = vmatpush1.bf16.msra.mxu1 %v7138_v41 }
 0x87b   :  { %5105 = vmatprep.subr.bf16.mxu0 %v7152_v4  ;;  %5137 = vmatprep.subr.bf16.mxu1 %v7163_v11 }
 0x87e   :  { %5107 = vmatpush1.bf16.msra.mxu0 %v7165_v60  ;;  %5139 = vmatpush1.bf16.msra.mxu1 %v7174_v10 }
 0x87f   :  { %5109 = vmatprep.subr.bf16.mxu0 %v7185_v48  ;;  %5141 = vmatprep.subr.bf16.mxu1 %v7302_v59 }
 0x882   :  { %5111 = vmatpush1.bf16.msra.mxu0 %v7194_v26  ;;  %5143 = vmatpush1.bf16.msra.mxu1 %v7310_v30 }
 0x883   :  { %5113 = vmatprep.subr.bf16.mxu0 %v7205_v38  ;;  %5145 = vmatprep.subr.bf16.mxu1 %v7320_v22 }
 0x886   :  { %5115 = vmatpush1.bf16.msra.mxu0 %v7214_v19  ;;  %5147 = vmatpush1.bf16.msra.mxu1 %v7328_v61 }
 0x887   :  { %5117 = vmatprep.subr.bf16.mxu0 %v7225_v9  ;;  %5149 = vmatprep.subr.bf16.mxu1 %v7338_v44 }
 0x88a   :  { %5119 = vmatpush1.bf16.msra.mxu0 %v7234_v45  ;;  %5151 = vmatpush1.bf16.msra.mxu1 %v7346_v27 }
 0x88b   :  { %5121 = vmatprep.subr.bf16.mxu0 %v7246_v2  ;;  %5153 = vmatprep.subr.bf16.mxu1 %v7358_v6 }
 0x88e   :  { %5123 = vmatpush1.bf16.msra.mxu0 %v7252_v18  ;;  %5155 = vmatpush1.bf16.msra.mxu1 %v7370_v29 }
 0x88f   :  { %5125 = vmatprep.subr.bf16.mxu0 %v7372_v34  ;;  %5157 = vmatprep.subr.bf16.mxu1 %v7384_v17 }
 0x892   :  { %5127 = vmatpush1.bf16.msra.mxu0 %v7396_v8  ;;  %5159 = vmatpush1.bf16.msra.mxu1 %v7400_v35 }
 0x893   :  { %5161 = vmatprep.subr.bf16.mxu0 %v7080_v32  ;;  %5193 = vmatprep.subr.bf16.mxu1 %v7091_v33 }
 0x948   :  { %v2582_v23 = vpop.f32.mrb[16].mxu0  ;;  %v2653_v63 = vpop.f32.mrb[16].mxu1 }
 0x949   :  { %v5560_v13 = vadd.f32 %v2582_v23, %v6569_v52  ;;  %v2584_v55 = vpop.f32.mrb[17].mxu0  ;;  %v2655_v57 = vpop.f32.mrb[17].mxu1  ;;  %v5592_v21 = vadd.f32 %v2653_v63, %v6575_v7 }
 0x94a   :  { %v5561_v42 = vadd.f32 %v2584_v55, %v6571_v53  ;;  %v5593_v16 = vadd.f32 %v2655_v57, %v6578_v15 }
 0x94b   :  { %v4423_v0 = vmul.f32 -1.442695, %v5560_v13  ;;  %v4425_v31 = vmul.f32 -1.442695, %v5592_v21 }
 0x94c   :  { %v4424_v5 = vmul.f32 -1.442695, %v5561_v42  ;;  %v3176_v42 = vld [vmem:[%s8097_s2 + $0x8] sm:$0xff] }
 0x94d   :  { %5801 = vpow2.f32 %v4423_v0  ;;  %v3180_v0 = vld [vmem:[%s8097_s2 + $0x28] sm:$0xff] }
 0x94e   :  { %5803 = vpow2.f32 %v4424_v5  ;;  %v3178_v5 = vld [vmem:[%s8097_s2 + $0x18] sm:$0xff]  ;;  %v7516_v21 = vpack.c.bf16 %v3180_v0, %v3176_v42  ;;  %v3220_v0 = vld [vmem:[%s8097_s2 + $0x168] sm:$0xff] }
 0x94f   :  { %5805 = vtanh.f32 %v5593_v16  ;;  %v3182_v16 = vld [vmem:[%s8097_s2 + $0x38] sm:$0xff] }
 0x950   :  { %5807 = vpow2.f32 %v4425_v31  ;;  %v3175_v31 = vld [vmem:[%s8097_s2] sm:$0xff] }
 0x957   :  { %v5802_v32 = vpop.eup %5801 }
 0x958   :  { %v2665_v36 = vadd.f32 1.0, %v5802_v32  ;;  %v5804_v33 = vpop.eup %5803  ;;  %v3179_v32 = vld [vmem:[%s8097_s2 + $0x20] sm:$0xff] }
 0x959   :  { %v2671_v43 = vadd.f32 1.0, %v5804_v33  ;;  %v5806_v20 = vpop.eup %5805  ;;  %v7529_v33 = vpack.c.bf16 %v3179_v32, %v3175_v31  ;;  %v3224_v32 = vld [vmem:[%s8097_s2 + $0x188] sm:$0xff] }
 0x95a   :  { %5809 = vrcp.f32 %v2665_v36  ;;  %v5808_v14 = vpop.eup %5807  ;;  %v7527_v36 = vpack.c.bf16 %v3182_v16, %v3178_v5  ;;  %v3219_v16 = vld [vmem:[%s8097_s2 + $0x160] sm:$0xff] }
 0x95b   :  { %5811 = vrcp.f32 %v2671_v43  ;;  %v2677_v39 = vadd.f32 1.0, %v5808_v14  ;;  %v3177_v43 = vld [vmem:[%s8097_s2 + $0x10] sm:$0xff] }
 0x95d   :  { %5813 = vrcp.f32 %v2677_v39 }
 0x964   :  { %v5810_v47 = vpop.eup %5809 }
 0x965   :  { %v2682_v46 = vmul.f32 %v5810_v47, %v5806_v20  ;;  %v5812_v50 = vpop.eup %5811  ;;  %v3181_v20 = vld [vmem:[%s8097_s2 + $0x30] sm:$0xff]  ;;  %v3184_v47 = vld [vmem:[%s8097_s2 + $0x48] sm:$0xff] }
 0x966   :  { %v2681_v58 = vmul.f32 %v5812_v50, %v7411_v54  ;;  %v7538_v14 = vpack.c.bf16 %v3181_v20, %v3177_v43  ;;  %v3186_v50 = vld [vmem:[%s8097_s2 + $0x58] sm:$0xff]  ;;  %v3223_v43 = vld [vmem:[%s8097_s2 + $0x180] sm:$0xff] }
 0x967   :  { %v5814_v49 = vpop.eup %5813 }
 0x968   :  { %v7456_v56 = vadd.f32 %v2682_v46, %v2681_v58  ;;  %v3188_v46 = vld [vmem:[%s8097_s2 + $0x68] sm:$0xff]  ;;  %v3190_v58 = vld [vmem:[%s8097_s2 + $0x78] sm:$0xff] }
 0x969   :  { %v7552_v39 = vpack.c.bf16 %v3188_v46, %v3184_v47 }
 0x96a   :  { %5815 = vtanh.f32 %v7456_v56 }
 0x974   :  { %v5816_v51 = vpop.eup %5815 }
 0x975   :  { %v2685_v25 = vmul.f32 %v5816_v51, %v5814_v49  ;;  %v3187_v49 = vld [vmem:[%s8097_s2 + $0x60] sm:$0xff]  ;;  %v7563_v51 = vpack.c.bf16 %v3190_v58, %v3186_v50 }
 0x977   :  { %4426 = vst [vmem:[%s8101_s5 + $0x40] sm:$0xff] %v2685_v25  ;;  %2822 = vmatmul.mubr.f32.vlgmr.msra.gmra.mrb[18].mxu0 %v2685_v25  ;;  %2893 = vmatmul.mubr.f32.vlgmr.msra.gmra.mrb[18].mxu1 %v2685_v25 }
 0x978   :  { %5163 = vmatpush1.bf16.msra.mxu0 %v7093_v28  ;;  %5195 = vmatpush1.bf16.msra.mxu1 %v7102_v37 }
 0x979   :  { %5165 = vmatprep.subr.bf16.mxu0 %v7116_v24  ;;  %5197 = vmatprep.subr.bf16.mxu1 %v7127_v62 }
 0x97a   :  { %3062 = vmatprep.mubr.f32.mxu0 %v5929_v3  ;;  %3133 = vmatprep.mubr.f32.mxu1 %v5929_v3 }
 0x97c   :  { %5167 = vmatpush1.bf16.msra.mxu0 %v7129_v12  ;;  %5199 = vmatpush1.bf16.msra.mxu1 %v7138_v41 }
 0x97d   :  { %5169 = vmatprep.subr.bf16.mxu0 %v7152_v4  ;;  %5201 = vmatprep.subr.bf16.mxu1 %v7163_v11 }
 0x980   :  { %5171 = vmatpush1.bf16.msra.mxu0 %v7165_v60  ;;  %5203 = vmatpush1.bf16.msra.mxu1 %v7174_v10 }
 0x981   :  { %5173 = vmatprep.subr.bf16.mxu0 %v7185_v48  ;;  %5205 = vmatprep.subr.bf16.mxu1 %v7302_v59 }
 0x984   :  { %5175 = vmatpush1.bf16.msra.mxu0 %v7194_v26  ;;  %5207 = vmatpush1.bf16.msra.mxu1 %v7310_v30 }
 0x985   :  { %5177 = vmatprep.subr.bf16.mxu0 %v7205_v38  ;;  %5209 = vmatprep.subr.bf16.mxu1 %v7320_v22 }
 0x988   :  { %5179 = vmatpush1.bf16.msra.mxu0 %v7214_v19  ;;  %5211 = vmatpush1.bf16.msra.mxu1 %v7328_v61 }
 0x989   :  { %5181 = vmatprep.subr.bf16.mxu0 %v7225_v9  ;;  %5213 = vmatprep.subr.bf16.mxu1 %v7338_v44 }
 0x98c   :  { %5183 = vmatpush1.bf16.msra.mxu0 %v7234_v45  ;;  %5215 = vmatpush1.bf16.msra.mxu1 %v7346_v27 }
 0x98d   :  { %5185 = vmatprep.subr.bf16.mxu0 %v7246_v2  ;;  %5217 = vmatprep.subr.bf16.mxu1 %v7358_v6 }
 0x990   :  { %5187 = vmatpush1.bf16.msra.mxu0 %v7252_v18  ;;  %5219 = vmatpush1.bf16.msra.mxu1 %v7370_v29 }
 0x991   :  { %5189 = vmatprep.subr.bf16.mxu0 %v7372_v34  ;;  %5221 = vmatprep.subr.bf16.mxu1 %v7384_v17 }
 0x994   :  { %5191 = vmatpush1.bf16.msra.mxu0 %v7396_v8  ;;  %5223 = vmatpush1.bf16.msra.mxu1 %v7400_v35 }
 0x995   :  { %5225 = vmatprep.subr.bf16.mxu0 %v7516_v21  ;;  %5257 = vmatprep.subr.bf16.mxu1 %v7527_v36 }
 0xa4a   :  { %v2823_v28 = vpop.f32.mrb[18].mxu0  ;;  %v2894_v37 = vpop.f32.mrb[18].mxu1 }
 0xa4b   :  { %v5562_v24 = vadd.f32 %v2823_v28, %v6569_v52  ;;  %v2825_v62 = vpop.f32.mrb[19].mxu0  ;;  %v2896_v12 = vpop.f32.mrb[19].mxu1  ;;  %v5594_v60 = vadd.f32 %v2894_v37, %v6575_v7  ;;  %v3185_v28 = vld [vmem:[%s8097_s2 + $0x50] sm:$0xff] }
 0xa4c   :  { %v5563_v41 = vadd.f32 %v2825_v62, %v6571_v53  ;;  %v5595_v10 = vadd.f32 %v2896_v12, %v6578_v15  ;;  %v3189_v37 = vld [vmem:[%s8097_s2 + $0x70] sm:$0xff]  ;;  %v3192_v62 = vld [vmem:[%s8097_s2 + $0x88] sm:$0xff] }
 0xa4d   :  { %v4427_v4 = vmul.f32 -1.442695, %v5562_v24  ;;  %v4429_v48 = vmul.f32 -1.442695, %v5594_v60  ;;  %v7574_v24 = vpack.c.bf16 %v3189_v37, %v3185_v28  ;;  %v3196_v12 = vld [vmem:[%s8097_s2 + $0xa8] sm:$0xff]  ;;  %v3191_v60 = vld [vmem:[%s8097_s2 + $0x80] sm:$0xff] }
 0xa4e   :  { %v4428_v11 = vmul.f32 -1.442695, %v5563_v41  ;;  %v3194_v41 = vld [vmem:[%s8097_s2 + $0x98] sm:$0xff] }
 0xa4f   :  { %5817 = vpow2.f32 %v4427_v4  ;;  %v7588_v4 = vpack.c.bf16 %v3196_v12, %v3192_v62 }
 0xa50   :  { %5819 = vpow2.f32 %v4428_v11  ;;  %v3198_v11 = vld [vmem:[%s8097_s2 + $0xb8] sm:$0xff] }
 0xa51   :  { %5821 = vtanh.f32 %v5595_v10  ;;  %v3195_v10 = vld [vmem:[%s8097_s2 + $0xa0] sm:$0xff] }
 0xa52   :  { %5823 = vpow2.f32 %v4429_v48  ;;  %v7599_v48 = vpack.c.bf16 %v3198_v11, %v3194_v41 }
 0xa59   :  { %v5818_v26 = vpop.eup %5817 }
 0xa5a   :  { %v2906_v38 = vadd.f32 1.0, %v5818_v26  ;;  %v5820_v19 = vpop.eup %5819  ;;  %v7601_v26 = vpack.c.bf16 %v3195_v10, %v3191_v60 }
 0xa5b   :  { %v2912_v9 = vadd.f32 1.0, %v5820_v19  ;;  %v5822_v45 = vpop.eup %5821  ;;  %v3197_v19 = vld [vmem:[%s8097_s2 + $0xb0] sm:$0xff] }
 0xa5c   :  { %5825 = vrcp.f32 %v2906_v38  ;;  %v5824_v2 = vpop.eup %5823  ;;  %v3193_v38 = vld [vmem:[%s8097_s2 + $0x90] sm:$0xff] }
 0xa5d   :  { %5827 = vrcp.f32 %v2912_v9  ;;  %v2918_v1 = vadd.f32 1.0, %v5824_v2  ;;  %v7610_v9 = vpack.c.bf16 %v3197_v19, %v3193_v38  ;;  %v3204_v2 = vld [vmem:[%s8097_s2 + $0xe8] sm:$0xff] }
 0xa5f   :  { %5829 = vrcp.f32 %v2918_v1 }
 0xa66   :  { %v5826_v18 = vpop.eup %5825 }
 0xa67   :  { %v2923_v54 = vmul.f32 %v5826_v18, %v5822_v45  ;;  %v5828_v40 = vpop.eup %5827  ;;  %v3200_v45 = vld [vmem:[%s8097_s2 + $0xc8] sm:$0xff] }
 0xa68   :  { %v2922_v23 = vmul.f32 %v5828_v40, %v7456_v56  ;;  %v3183_v56 = vld [vmem:[%s8097_s2 + $0x40] sm:$0xff]  ;;  %v7621_v18 = vpack.c.bf16 %v3204_v2, %v3200_v45 }
 0xa69   :  { %v5830_v13 = vpop.eup %5829  ;;  %v7565_v25 = vpack.c.bf16 %v3187_v49, %v3183_v56  ;;  %v3203_v40 = vld [vmem:[%s8097_s2 + $0xe0] sm:$0xff] }
 0xa6a   :  { %v7499_v63 = vadd.f32 %v2923_v54, %v2922_v23  ;;  %v3199_v54 = vld [vmem:[%s8097_s2 + $0xc0] sm:$0xff]  ;;  %v3208_v23 = vld [vmem:[%s8097_s2 + $0x108] sm:$0xff] }
 0xa6b   :  { %v7630_v1 = vpack.c.bf16 %v3203_v40, %v3199_v54 }
 0xa6c   :  { %5831 = vtanh.f32 %v7499_v63 }
 0xa76   :  { %v5832_v55 = vpop.eup %5831 }
 0xa77   :  { %v2926_v57 = vmul.f32 %v5832_v55, %v5830_v13  ;;  %v3212_v13 = vld [vmem:[%s8097_s2 + $0x128] sm:$0xff] }
 0xa78   :  { %v7641_v55 = vpack.c.bf16 %v3212_v13, %v3208_v23  ;;  %v3447_v23 = vld [vmem:[%s8097_s2 + $0xf8] sm:$0xff] }
 0xa79   :  { %4430 = vst [vmem:[%s8101_s5 + $0x48] sm:$0xff] %v2926_v57  ;;  %3063 = vmatmul.mubr.f32.vlgmr.msra.gmra.mrb[20].mxu0 %v2926_v57  ;;  %3134 = vmatmul.mubr.f32.vlgmr.msra.gmra.mrb[20].mxu1 %v2926_v57  ;;  %v3211_v57 = vld [vmem:[%s8097_s2 + $0x120] sm:$0xff] }
 0xa7a   :  { %3303 = vmatprep.mubr.f32.mxu0 %v5929_v3  ;;  %3374 = vmatprep.mubr.f32.mxu1 %v5929_v3 }
 0xa7b   :  { %5227 = vmatpush1.bf16.msra.mxu0 %v7529_v33  ;;  %5259 = vmatpush1.bf16.msra.mxu1 %v7538_v14 }
 0xa7c   :  { %5229 = vmatprep.subr.bf16.mxu0 %v7552_v39  ;;  %5261 = vmatprep.subr.bf16.mxu1 %v7563_v51 }
 0xa7f   :  { %5231 = vmatpush1.bf16.msra.mxu0 %v7565_v25  ;;  %5263 = vmatpush1.bf16.msra.mxu1 %v7574_v24 }
 0xa80   :  { %5233 = vmatprep.subr.bf16.mxu0 %v7588_v4  ;;  %5265 = vmatprep.subr.bf16.mxu1 %v7599_v48 }
 0xa83   :  { %5235 = vmatpush1.bf16.msra.mxu0 %v7601_v26  ;;  %5267 = vmatpush1.bf16.msra.mxu1 %v7610_v9 }
 0xa84   :  { %5269 = vmatprep.subr.bf16.mxu1 %v7302_v59  ;;  %5237 = vmatprep.subr.bf16.mxu0 %v7621_v18  ;;  %v3207_v59 = vld [vmem:[%s8097_s2 + $0x100] sm:$0xff] }
 0xa85   :  { %v7650_v42 = vpack.c.bf16 %v3211_v57, %v3207_v59  ;;  %v3442_v59 = vld [vmem:[%s8097_s2 + $0xd0] sm:$0xff] }
 0xa86   :  { %v3446_v57 = vld [vmem:[%s8097_s2 + $0xf0] sm:$0xff] }
 0xa87   :  { %5239 = vmatpush1.bf16.msra.mxu0 %v7630_v1  ;;  %5271 = vmatpush1.bf16.msra.mxu1 %v7310_v30  ;;  %v3216_v30 = vld [vmem:[%s8097_s2 + $0x148] sm:$0xff] }
 0xa88   :  { %5273 = vmatprep.subr.bf16.mxu1 %v7320_v22  ;;  %5241 = vmatprep.subr.bf16.mxu0 %v7641_v55  ;;  %v7661_v5 = vpack.c.bf16 %v3220_v0, %v3216_v30  ;;  %v3215_v22 = vld [vmem:[%s8097_s2 + $0x140] sm:$0xff]  ;;  %v7746_v30 = vpack.c.bf16 %v3446_v57, %v3442_v59  ;;  %v3451_v0 = vld [vmem:[%s8097_s2 + $0x118] sm:$0xff] }
 0xa89   :  { %v7670_v31 = vpack.c.bf16 %v3219_v16, %v3215_v22  ;;  %v3455_v22 = vld [vmem:[%s8097_s2 + $0x138] sm:$0xff] }
 0xa8a   :  { %v7756_v16 = vpack.c.bf16 %v3455_v22, %v3451_v0 }
 0xa8b   :  { %5243 = vmatpush1.bf16.msra.mxu0 %v7650_v42  ;;  %5275 = vmatpush1.bf16.msra.mxu1 %v7328_v61  ;;  %v3228_v61 = vld [vmem:[%s8097_s2 + $0x1a8] sm:$0xff] }
 0xa8c   :  { %5277 = vmatprep.subr.bf16.mxu1 %v7338_v44  ;;  %5245 = vmatprep.subr.bf16.mxu0 %v7661_v5  ;;  %v7682_v20 = vpack.c.bf16 %v3228_v61, %v3224_v32  ;;  %v3227_v44 = vld [vmem:[%s8097_s2 + $0x1a0] sm:$0xff]  ;;  %v3450_v32 = vld [vmem:[%s8097_s2 + $0x110] sm:$0xff] }
 0xa8d   :  { %v7688_v47 = vpack.c.bf16 %v3227_v44, %v3223_v43  ;;  %v3454_v61 = vld [vmem:[%s8097_s2 + $0x130] sm:$0xff]  ;;  %v3459_v44 = vld [vmem:[%s8097_s2 + $0x158] sm:$0xff] }
 0xa8e   :  { %v7764_v43 = vpack.c.bf16 %v3454_v61, %v3450_v32 }
 0xa8f   :  { %5247 = vmatpush1.bf16.msra.mxu0 %v7670_v31  ;;  %5279 = vmatpush1.bf16.msra.mxu1 %v7346_v27 }
 0xa90   :  { %5249 = vmatprep.subr.bf16.mxu0 %v7682_v20  ;;  %5281 = vmatprep.subr.bf16.mxu1 %v7358_v6 }
 0xa93   :  { %5251 = vmatpush1.bf16.msra.mxu0 %v7688_v47  ;;  %5283 = vmatpush1.bf16.msra.mxu1 %v7370_v29 }
 0xa94   :  { %5253 = vmatprep.subr.bf16.mxu0 %v7372_v34  ;;  %5285 = vmatprep.subr.bf16.mxu1 %v7384_v17 }
 0xa97   :  { %5255 = vmatpush1.bf16.msra.mxu0 %v7396_v8  ;;  %5287 = vmatpush1.bf16.msra.mxu1 %v7400_v35 }
 0xa98   :  { %5289 = vmatprep.subr.bf16.mxu0 %v7516_v21  ;;  %5321 = vmatprep.subr.bf16.mxu1 %v7527_v36 }
 0xb4c   :  { %v3064_v27 = vpop.f32.mrb[20].mxu0  ;;  %v3135_v46 = vpop.f32.mrb[20].mxu1 }
 0xb4d   :  { %v5564_v6 = vadd.f32 %v3064_v27, %v6569_v52  ;;  %v3066_v50 = vpop.f32.mrb[21].mxu0  ;;  %v3137_v58 = vpop.f32.mrb[21].mxu1  ;;  %v5596_v17 = vadd.f32 %v3135_v46, %v6575_v7  ;;  %v3463_v27 = vld [vmem:[%s8097_s2 + $0x178] sm:$0xff] }
 0xb4e   :  { %v5565_v29 = vadd.f32 %v3066_v50, %v6571_v53  ;;  %v5597_v8 = vadd.f32 %v3137_v58, %v6578_v15  ;;  %v7774_v46 = vpack.c.bf16 %v3463_v27, %v3459_v44  ;;  %v3462_v50 = vld [vmem:[%s8097_s2 + $0x170] sm:$0xff] }
 0xb4f   :  { %v4431_v56 = vmul.f32 -1.442695, %v5564_v6  ;;  %v4433_v35 = vmul.f32 -1.442695, %v5596_v17  ;;  %v3458_v6 = vld [vmem:[%s8097_s2 + $0x150] sm:$0xff] }
 0xb50   :  { %v4432_v34 = vmul.f32 -1.442695, %v5565_v29  ;;  %v7782_v58 = vpack.c.bf16 %v3462_v50, %v3458_v6  ;;  %v3467_v29 = vld [vmem:[%s8097_s2 + $0x198] sm:$0xff] }
 0xb51   :  { %5833 = vpow2.f32 %v4431_v56  ;;  %v3471_v56 = vld [vmem:[%s8097_s2 + $0x1b8] sm:$0xff] }
 0xb52   :  { %5835 = vpow2.f32 %v4432_v34  ;;  %v3466_v34 = vld [vmem:[%s8097_s2 + $0x190] sm:$0xff]  ;;  %v7794_v17 = vpack.c.bf16 %v3471_v56, %v3467_v29 }
 0xb53   :  { %5837 = vtanh.f32 %v5597_v8  ;;  %v3470_v8 = vld [vmem:[%s8097_s2 + $0x1b0] sm:$0xff] }
 0xb54   :  { %5839 = vpow2.f32 %v4433_v35  ;;  %v3473_v35 = vld [vmem:[%s8097_s2 + $0x1c8] sm:$0xff] }
 0xb5b   :  { %v5834_v49 = vpop.eup %5833 }
 0xb5c   :  { %v3147_v28 = vadd.f32 1.0, %v5834_v49  ;;  %v5836_v37 = vpop.eup %5835  ;;  %v3477_v49 = vld [vmem:[%s8097_s2 + $0x1e8] sm:$0xff] }
 0xb5d   :  { %v3153_v62 = vadd.f32 1.0, %v5836_v37  ;;  %v5838_v12 = vpop.eup %5837  ;;  %v7808_v37 = vpack.c.bf16 %v3477_v49, %v3473_v35 }
 0xb5e   :  { %5841 = vrcp.f32 %v3147_v28  ;;  %v5840_v41 = vpop.eup %5839  ;;  %v7806_v28 = vpack.c.bf16 %v3470_v8, %v3466_v34 }
 0xb5f   :  { %5843 = vrcp.f32 %v3153_v62  ;;  %v3159_v38 = vadd.f32 1.0, %v5840_v41  ;;  %v3475_v62 = vld [vmem:[%s8097_s2 + $0x1d8] sm:$0xff]  ;;  %v3472_v41 = vld [vmem:[%s8097_s2 + $0x1c0] sm:$0xff] }
 0xb61   :  { %5845 = vrcp.f32 %v3159_v38  ;;  %v3478_v38 = vld [vmem:[%s8097_s2 + $0x1f0] sm:$0xff] }
 0xb68   :  { %v5842_v11 = vpop.eup %5841 }
 0xb69   :  { %v3164_v60 = vmul.f32 %v5842_v11, %v5838_v12  ;;  %v5844_v10 = vpop.eup %5843  ;;  %v3479_v12 = vld [vmem:[%s8097_s2 + $0x1f8] sm:$0xff] }
 0xb6a   :  { %v3163_v19 = vmul.f32 %v5844_v10, %v7499_v63  ;;  %v3443_v63 = vld [vmem:[%s8097_s2 + $0xd8] sm:$0xff]  ;;  %v7820_v11 = vpack.c.bf16 %v3479_v12, %v3475_v62  ;;  %v3474_v10 = vld [vmem:[%s8097_s2 + $0x1d0] sm:$0xff] }
 0xb6b   :  { %v5846_v2 = vpop.eup %5845  ;;  %v7738_v13 = vpack.c.bf16 %v3447_v23, %v3443_v63 }
 0xb6c   :  { %v7706_v45 = vadd.f32 %v3164_v60, %v3163_v19  ;;  %v3476_v60 = vld [vmem:[%s8097_s2 + $0x1e0] sm:$0xff] }
 0xb6d   :  { %v7832_v19 = vpack.c.bf16 %v3476_v60, %v3472_v41 }
 0xb6e   :  { %5847 = vtanh.f32 %v7706_v45 }
 0xb78   :  { %v5848_v54 = vpop.eup %5847 }
 0xb79   :  { %v3167_v40 = vmul.f32 %v5848_v54, %v5846_v2  ;;  %v7836_v2 = vpack.c.bf16 %v3478_v38, %v3474_v10 }
 0xb7b   :  { %4434 = vst [vmem:[%s8101_s5 + $0x50] sm:$0xff] %v3167_v40  ;;  %3304 = vmatmul.mubr.f32.vlgmr.msra.gmra.mrb[22].mxu0 %v3167_v40  ;;  %3375 = vmatmul.mubr.f32.vlgmr.msra.gmra.mrb[22].mxu1 %v3167_v40 }
 0xb7c   :  { %5291 = vmatpush1.bf16.msra.mxu0 %v7529_v33  ;;  %5323 = vmatpush1.bf16.msra.mxu1 %v7538_v14 }
 0xb7d   :  { %5293 = vmatprep.subr.bf16.mxu0 %v7552_v39  ;;  %5325 = vmatprep.subr.bf16.mxu1 %v7563_v51 }
 0xb7e   :  { %3544 = vmatprep.mubr.f32.mxu0 %v5929_v3  ;;  %3615 = vmatprep.mubr.f32.mxu1 %v5929_v3 }
 0xb80   :  { %5295 = vmatpush1.bf16.msra.mxu0 %v7565_v25  ;;  %5327 = vmatpush1.bf16.msra.mxu1 %v7574_v24 }
 0xb81   :  { %5297 = vmatprep.subr.bf16.mxu0 %v7588_v4  ;;  %5329 = vmatprep.subr.bf16.mxu1 %v7599_v48 }
 0xb84   :  { %5299 = vmatpush1.bf16.msra.mxu0 %v7601_v26  ;;  %5331 = vmatpush1.bf16.msra.mxu1 %v7610_v9 }
 0xb85   :  { %5301 = vmatprep.subr.bf16.mxu0 %v7621_v18  ;;  %5333 = vmatprep.subr.bf16.mxu1 %v7738_v13 }
 0xb88   :  { %5303 = vmatpush1.bf16.msra.mxu0 %v7630_v1  ;;  %5335 = vmatpush1.bf16.msra.mxu1 %v7746_v30 }
 0xb89   :  { %5305 = vmatprep.subr.bf16.mxu0 %v7641_v55  ;;  %5337 = vmatprep.subr.bf16.mxu1 %v7756_v16 }
 0xb8c   :  { %5307 = vmatpush1.bf16.msra.mxu0 %v7650_v42  ;;  %5339 = vmatpush1.bf16.msra.mxu1 %v7764_v43 }
 0xb8d   :  { %5309 = vmatprep.subr.bf16.mxu0 %v7661_v5  ;;  %5341 = vmatprep.subr.bf16.mxu1 %v7774_v46 }
 0xb90   :  { %5311 = vmatpush1.bf16.msra.mxu0 %v7670_v31  ;;  %5343 = vmatpush1.bf16.msra.mxu1 %v7782_v58 }
 0xb91   :  { %5313 = vmatprep.subr.bf16.mxu0 %v7682_v20  ;;  %5345 = vmatprep.subr.bf16.mxu1 %v7794_v17 }
 0xb94   :  { %5315 = vmatpush1.bf16.msra.mxu0 %v7688_v47  ;;  %5347 = vmatpush1.bf16.msra.mxu1 %v7806_v28 }
 0xb95   :  { %5317 = vmatprep.subr.bf16.mxu0 %v7808_v37  ;;  %5349 = vmatprep.subr.bf16.mxu1 %v7820_v11 }
 0xb98   :  { %5319 = vmatpush1.bf16.msra.mxu0 %v7832_v19  ;;  %5351 = vmatpush1.bf16.msra.mxu1 %v7836_v2 }
 0xb99   :  { %5353 = vmatprep.subr.bf16.mxu0 %v7516_v21  ;;  %5385 = vmatprep.subr.bf16.mxu1 %v7527_v36 }
 0xc4e   :  { %v3305_v54 = vpop.f32.mrb[22].mxu0  ;;  %v3376_v40 = vpop.f32.mrb[22].mxu1 }
 0xc4f   :  { %v5566_v63 = vadd.f32 %v3305_v54, %v6569_v52  ;;  %v3307_v23 = vpop.f32.mrb[23].mxu0  ;;  %v3378_v59 = vpop.f32.mrb[23].mxu1  ;;  %v5598_v32 = vadd.f32 %v3376_v40, %v6575_v7 }
 0xc50   :  { %v5567_v57 = vadd.f32 %v3307_v23, %v6571_v53  ;;  %v5599_v61 = vadd.f32 %v3378_v59, %v6578_v15 }
 0xc51   :  { %v4435_v0 = vmul.f32 -1.442695, %v5566_v63  ;;  %v4437_v44 = vmul.f32 -1.442695, %v5598_v32 }
 0xc52   :  { %v4436_v22 = vmul.f32 -1.442695, %v5567_v57 }
 0xc53   :  { %5849 = vpow2.f32 %v4435_v0 }
 0xc54   :  { %5851 = vpow2.f32 %v4436_v22 }
 0xc55   :  { %5853 = vtanh.f32 %v5599_v61 }
 0xc56   :  { %5855 = vpow2.f32 %v4437_v44 }
 0xc5d   :  { %v5850_v27 = vpop.eup %5849 }
 0xc5e   :  { %v3388_v6 = vadd.f32 1.0, %v5850_v27  ;;  %v5852_v50 = vpop.eup %5851 }
 0xc5f   :  { %v3394_v29 = vadd.f32 1.0, %v5852_v50  ;;  %v5854_v56 = vpop.eup %5853 }
 0xc60   :  { %5857 = vrcp.f32 %v3388_v6  ;;  %v5856_v34 = vpop.eup %5855 }
 0xc61   :  { %5859 = vrcp.f32 %v3394_v29  ;;  %v3400_v62 = vadd.f32 1.0, %v5856_v34 }
 0xc63   :  { %5861 = vrcp.f32 %v3400_v62 }
 0xc6a   :  { %v5858_v8 = vpop.eup %5857 }
 0xc6b   :  { %v3405_v35 = vmul.f32 %v5858_v8, %v5854_v56  ;;  %v5860_v49 = vpop.eup %5859 }
 0xc6c   :  { %v3404_v12 = vmul.f32 %v5860_v49, %v7706_v45 }
 0xc6d   :  { %v5862_v60 = vpop.eup %5861 }
 0xc6e   :  { %v7847_v41 = vadd.f32 %v3405_v35, %v3404_v12 }
 0xc70   :  { %5863 = vtanh.f32 %v7847_v41 }
 0xc7a   :  { %v5864_v10 = vpop.eup %5863 }
 0xc7b   :  { %v3408_v38 = vmul.f32 %v5864_v10, %v5862_v60 }
 0xc7d   :  { %4438 = vst [vmem:[%s8101_s5 + $0x58] sm:$0xff] %v3408_v38  ;;  %3545 = vmatmul.mubr.f32.vlgmr.msra.gmra.mrb[24].mxu0 %v3408_v38  ;;  %3616 = vmatmul.mubr.f32.vlgmr.msra.gmra.mrb[24].mxu1 %v3408_v38 }
 0xc7e   :  { %5355 = vmatpush1.bf16.msra.mxu0 %v7529_v33  ;;  %5387 = vmatpush1.bf16.msra.mxu1 %v7538_v14 }
 0xc7f   :  { %5357 = vmatprep.subr.bf16.mxu0 %v7552_v39  ;;  %5389 = vmatprep.subr.bf16.mxu1 %v7563_v51 }
 0xc80   :  { %3785 = vmatprep.mubr.f32.mxu0 %v5929_v3  ;;  %3856 = vmatprep.mubr.f32.mxu1 %v5929_v3 }
 0xc82   :  { %5359 = vmatpush1.bf16.msra.mxu0 %v7565_v25  ;;  %5391 = vmatpush1.bf16.msra.mxu1 %v7574_v24 }
 0xc83   :  { %5361 = vmatprep.subr.bf16.mxu0 %v7588_v4  ;;  %5393 = vmatprep.subr.bf16.mxu1 %v7599_v48 }
 0xc86   :  { %5363 = vmatpush1.bf16.msra.mxu0 %v7601_v26  ;;  %5395 = vmatpush1.bf16.msra.mxu1 %v7610_v9 }
 0xc87   :  { %5365 = vmatprep.subr.bf16.mxu0 %v7621_v18  ;;  %5397 = vmatprep.subr.bf16.mxu1 %v7738_v13 }
 0xc8a   :  { %5367 = vmatpush1.bf16.msra.mxu0 %v7630_v1  ;;  %5399 = vmatpush1.bf16.msra.mxu1 %v7746_v30 }
 0xc8b   :  { %5369 = vmatprep.subr.bf16.mxu0 %v7641_v55  ;;  %5401 = vmatprep.subr.bf16.mxu1 %v7756_v16 }
 0xc8e   :  { %5371 = vmatpush1.bf16.msra.mxu0 %v7650_v42  ;;  %5403 = vmatpush1.bf16.msra.mxu1 %v7764_v43 }
 0xc8f   :  { %5373 = vmatprep.subr.bf16.mxu0 %v7661_v5  ;;  %5405 = vmatprep.subr.bf16.mxu1 %v7774_v46 }
 0xc92   :  { %5375 = vmatpush1.bf16.msra.mxu0 %v7670_v31  ;;  %5407 = vmatpush1.bf16.msra.mxu1 %v7782_v58 }
 0xc93   :  { %5377 = vmatprep.subr.bf16.mxu0 %v7682_v20  ;;  %5409 = vmatprep.subr.bf16.mxu1 %v7794_v17 }
 0xc96   :  { %5379 = vmatpush1.bf16.msra.mxu0 %v7688_v47  ;;  %5411 = vmatpush1.bf16.msra.mxu1 %v7806_v28 }
 0xc97   :  { %5381 = vmatprep.subr.bf16.mxu0 %v7808_v37  ;;  %5413 = vmatprep.subr.bf16.mxu1 %v7820_v11 }
 0xc9a   :  { %5383 = vmatpush1.bf16.msra.mxu0 %v7832_v19  ;;  %5415 = vmatpush1.bf16.msra.mxu1 %v7836_v2 }
 0xc9b   :  { %5417 = vmatprep.subr.bf16.mxu0 %v7516_v21  ;;  %5449 = vmatprep.subr.bf16.mxu1 %v7527_v36 }
 0xd50   :  { %v3546_v45 = vpop.f32.mrb[24].mxu0  ;;  %v3617_v54 = vpop.f32.mrb[24].mxu1 }
 0xd51   :  { %v5568_v40 = vadd.f32 %v3546_v45, %v6569_v52  ;;  %v3548_v63 = vpop.f32.mrb[25].mxu0  ;;  %v3619_v23 = vpop.f32.mrb[25].mxu1  ;;  %v5600_v22 = vadd.f32 %v3617_v54, %v6575_v7 }
 0xd52   :  { %v5569_v59 = vadd.f32 %v3548_v63, %v6571_v53  ;;  %v5601_v32 = vadd.f32 %v3619_v23, %v6578_v15 }
 0xd53   :  { %v4439_v57 = vmul.f32 -1.442695, %v5568_v40  ;;  %v4441_v61 = vmul.f32 -1.442695, %v5600_v22 }
 0xd54   :  { %v4440_v0 = vmul.f32 -1.442695, %v5569_v59  ;;  %v4140_v59 = vld [vmem:[%s8097_s2 + $0x8] sm:$0xff] }
 0xd55   :  { %5865 = vpow2.f32 %v4439_v57  ;;  %v4144_v57 = vld [vmem:[%s8097_s2 + $0x28] sm:$0xff] }
 0xd56   :  { %5867 = vpow2.f32 %v4440_v0  ;;  %v4142_v0 = vld [vmem:[%s8097_s2 + $0x18] sm:$0xff]  ;;  %v5480_v22 = vpack.c.bf16 %v4144_v57, %v4140_v59  ;;  %v4180_v59 = vld [vmem:[%s8097_s2 + $0x148] sm:$0xff] }
 0xd57   :  { %5869 = vtanh.f32 %v5601_v32  ;;  %v4146_v32 = vld [vmem:[%s8097_s2 + $0x38] sm:$0xff] }
 0xd58   :  { %5871 = vpow2.f32 %v4441_v61  ;;  %v4143_v61 = vld [vmem:[%s8097_s2 + $0x20] sm:$0xff] }
 0xd5f   :  { %v5866_v21 = vpop.eup %5865 }
 0xd60   :  { %v3629_v44 = vadd.f32 1.0, %v5866_v21  ;;  %v5868_v36 = vpop.eup %5867  ;;  %v5512_v21 = vpack.c.bf16 %v4146_v32, %v4142_v0  ;;  %v4179_v0 = vld [vmem:[%s8097_s2 + $0x140] sm:$0xff]  ;;  %v4188_v32 = vld [vmem:[%s8097_s2 + $0x188] sm:$0xff] }
 0xd61   :  { %v3635_v27 = vadd.f32 1.0, %v5868_v36  ;;  %v5870_v6 = vpop.eup %5869  ;;  %v4141_v36 = vld [vmem:[%s8097_s2 + $0x10] sm:$0xff] }
 0xd62   :  { %5873 = vrcp.f32 %v3629_v44  ;;  %v5872_v50 = vpop.eup %5871 }
 0xd63   :  { %5875 = vrcp.f32 %v3635_v27  ;;  %v3641_v8 = vadd.f32 1.0, %v5872_v50  ;;  %v4145_v27 = vld [vmem:[%s8097_s2 + $0x30] sm:$0xff]  ;;  %v4148_v50 = vld [vmem:[%s8097_s2 + $0x48] sm:$0xff] }
 0xd65   :  { %5877 = vrcp.f32 %v3641_v8  ;;  %v4154_v8 = vld [vmem:[%s8097_s2 + $0x78] sm:$0xff] }
 0xd6c   :  { %v5874_v29 = vpop.eup %5873 }
 0xd6d   :  { %v3646_v56 = vmul.f32 %v5874_v29, %v5870_v6  ;;  %v5876_v34 = vpop.eup %5875  ;;  %v5514_v6 = vpack.c.bf16 %v4145_v27, %v4141_v36  ;;  %v4152_v29 = vld [vmem:[%s8097_s2 + $0x68] sm:$0xff] }
 0xd6e   :  { %v3645_v35 = vmul.f32 %v5876_v34, %v7847_v41  ;;  %v5484_v34 = vpack.c.bf16 %v4152_v29, %v4148_v50 }
 0xd6f   :  { %v5878_v62 = vpop.eup %5877 }
 0xd70   :  { %v7892_v49 = vadd.f32 %v3646_v56, %v3645_v35  ;;  %v4150_v56 = vld [vmem:[%s8097_s2 + $0x58] sm:$0xff]  ;;  %v4147_v35 = vld [vmem:[%s8097_s2 + $0x40] sm:$0xff] }
 0xd72   :  { %5879 = vtanh.f32 %v7892_v49 }
 0xd7c   :  { %v5880_v12 = vpop.eup %5879 }
 0xd7d   :  { %v3649_v60 = vmul.f32 %v5880_v12, %v5878_v62  ;;  %v5516_v62 = vpack.c.bf16 %v4154_v8, %v4150_v56 }
 0xd7f   :  { %4442 = vst [vmem:[%s8101_s5 + $0x60] sm:$0xff] %v3649_v60  ;;  %3786 = vmatmul.mubr.f32.vlgmr.msra.gmra.mrb[26].mxu0 %v3649_v60  ;;  %3857 = vmatmul.mubr.f32.vlgmr.msra.gmra.mrb[26].mxu1 %v3649_v60  ;;  %v4149_v60 = vld [vmem:[%s8097_s2 + $0x50] sm:$0xff] }
 0xd80   :  { %5419 = vmatpush1.bf16.msra.mxu0 %v7529_v33  ;;  %5451 = vmatpush1.bf16.msra.mxu1 %v7538_v14 }
 0xd81   :  { %5421 = vmatprep.subr.bf16.mxu0 %v7552_v39  ;;  %5453 = vmatprep.subr.bf16.mxu1 %v7563_v51 }
 0xd82   :  { %4026 = vmatprep.mubr.f32.mxu0 %v5929_v3  ;;  %4097 = vmatprep.mubr.f32.mxu1 %v5929_v3 }
 0xd84   :  { %5423 = vmatpush1.bf16.msra.mxu0 %v7565_v25  ;;  %5455 = vmatpush1.bf16.msra.mxu1 %v7574_v24 }
 0xd85   :  { %5425 = vmatprep.subr.bf16.mxu0 %v7588_v4  ;;  %5457 = vmatprep.subr.bf16.mxu1 %v7599_v48 }
 0xd88   :  { %5427 = vmatpush1.bf16.msra.mxu0 %v7601_v26  ;;  %5459 = vmatpush1.bf16.msra.mxu1 %v7610_v9 }
 0xd89   :  { %5429 = vmatprep.subr.bf16.mxu0 %v7621_v18  ;;  %5461 = vmatprep.subr.bf16.mxu1 %v7738_v13 }
 0xd8c   :  { %5431 = vmatpush1.bf16.msra.mxu0 %v7630_v1  ;;  %5463 = vmatpush1.bf16.msra.mxu1 %v7746_v30 }
 0xd8d   :  { %5433 = vmatprep.subr.bf16.mxu0 %v7641_v55  ;;  %5465 = vmatprep.subr.bf16.mxu1 %v7756_v16 }
 0xd90   :  { %5435 = vmatpush1.bf16.msra.mxu0 %v7650_v42  ;;  %5467 = vmatpush1.bf16.msra.mxu1 %v7764_v43 }
 0xd91   :  { %5437 = vmatprep.subr.bf16.mxu0 %v7661_v5  ;;  %5469 = vmatprep.subr.bf16.mxu1 %v7774_v46 }
 0xd94   :  { %5439 = vmatpush1.bf16.msra.mxu0 %v7670_v31  ;;  %5471 = vmatpush1.bf16.msra.mxu1 %v7782_v58 }
 0xd95   :  { %5441 = vmatprep.subr.bf16.mxu0 %v7682_v20  ;;  %5473 = vmatprep.subr.bf16.mxu1 %v7794_v17 }
 0xd98   :  { %5443 = vmatpush1.bf16.msra.mxu0 %v7688_v47  ;;  %5475 = vmatpush1.bf16.msra.mxu1 %v7806_v28 }
 0xd99   :  { %5445 = vmatprep.subr.bf16.mxu0 %v7808_v37  ;;  %5477 = vmatprep.subr.bf16.mxu1 %v7820_v11 }
 0xd9c   :  { %5447 = vmatpush1.bf16.msra.mxu0 %v7832_v19  ;;  %5479 = vmatpush1.bf16.msra.mxu1 %v7836_v2 }
 0xd9d   :  { %5481 = vmatprep.subr.bf16.mxu0 %v5480_v22  ;;  %5513 = vmatprep.subr.bf16.mxu1 %v5512_v21  ;;  %v4191_v21 = vld [vmem:[%s8097_s2 + $0x1a0] sm:$0xff] }
 0xe52   :  { %v3787_v33 = vpop.f32.mrb[26].mxu0  ;;  %v3858_v14 = vpop.f32.mrb[26].mxu1 }
 0xe53   :  { %v5570_v39 = vadd.f32 %v3787_v33, %v6569_v52  ;;  %v3789_v51 = vpop.f32.mrb[27].mxu0  ;;  %v3860_v25 = vpop.f32.mrb[27].mxu1  ;;  %v5602_v26 = vadd.f32 %v3858_v14, %v6575_v7  ;;  %v4153_v33 = vld [vmem:[%s8097_s2 + $0x70] sm:$0xff] }
 0xe54   :  { %v5571_v24 = vadd.f32 %v3789_v51, %v6571_v53  ;;  %v5603_v9 = vadd.f32 %v3860_v25, %v6578_v15  ;;  %v5518_v14 = vpack.c.bf16 %v4153_v33, %v4149_v60  ;;  %v4160_v51 = vld [vmem:[%s8097_s2 + $0xa8] sm:$0xff]  ;;  %v4158_v25 = vld [vmem:[%s8097_s2 + $0x98] sm:$0xff] }
 0xe55   :  { %v4443_v4 = vmul.f32 -1.442695, %v5570_v39  ;;  %v4445_v18 = vmul.f32 -1.442695, %v5602_v26  ;;  %v4156_v39 = vld [vmem:[%s8097_s2 + $0x88] sm:$0xff]  ;;  %v4159_v26 = vld [vmem:[%s8097_s2 + $0xa0] sm:$0xff] }
 0xe56   :  { %v4444_v48 = vmul.f32 -1.442695, %v5571_v24  ;;  %v5488_v24 = vpack.c.bf16 %v4160_v51, %v4156_v39 }
 0xe57   :  { %5881 = vpow2.f32 %v4443_v4  ;;  %v4162_v4 = vld [vmem:[%s8097_s2 + $0xb8] sm:$0xff] }
 0xe58   :  { %5883 = vpow2.f32 %v4444_v48  ;;  %v4155_v48 = vld [vmem:[%s8097_s2 + $0x80] sm:$0xff] }
 0xe59   :  { %5885 = vtanh.f32 %v5603_v9  ;;  %v5520_v9 = vpack.c.bf16 %v4162_v4, %v4158_v25 }
 0xe5a   :  { %5887 = vpow2.f32 %v4445_v18  ;;  %v5490_v18 = vpack.c.bf16 %v4159_v26, %v4155_v48 }
 0xe61   :  { %v5882_v1 = vpop.eup %5881 }
 0xe62   :  { %v3870_v55 = vadd.f32 1.0, %v5882_v1  ;;  %v5884_v42 = vpop.eup %5883  ;;  %v4157_v1 = vld [vmem:[%s8097_s2 + $0x90] sm:$0xff] }
 0xe63   :  { %v3876_v5 = vadd.f32 1.0, %v5884_v42  ;;  %v5886_v31 = vpop.eup %5885 }
 0xe64   :  { %5889 = vrcp.f32 %v3870_v55  ;;  %v5888_v20 = vpop.eup %5887  ;;  %v4161_v55 = vld [vmem:[%s8097_s2 + $0xb0] sm:$0xff] }
 0xe65   :  { %5891 = vrcp.f32 %v3876_v5  ;;  %v3882_v38 = vadd.f32 1.0, %v5888_v20  ;;  %v5522_v42 = vpack.c.bf16 %v4161_v55, %v4157_v1  ;;  %v4164_v5 = vld [vmem:[%s8097_s2 + $0xc8] sm:$0xff] }
 0xe67   :  { %5893 = vrcp.f32 %v3882_v38  ;;  %v4172_v38 = vld [vmem:[%s8097_s2 + $0x108] sm:$0xff] }
 0xe6e   :  { %v5890_v47 = vpop.eup %5889 }
 0xe6f   :  { %v3887_v41 = vmul.f32 %v5890_v47, %v5886_v31  ;;  %v5892_v10 = vpop.eup %5891  ;;  %v4168_v31 = vld [vmem:[%s8097_s2 + $0xe8] sm:$0xff]  ;;  %v4163_v47 = vld [vmem:[%s8097_s2 + $0xc0] sm:$0xff] }
 0xe70   :  { %v3886_v45 = vmul.f32 %v5892_v10, %v7892_v49  ;;  %v4151_v49 = vld [vmem:[%s8097_s2 + $0x60] sm:$0xff]  ;;  %v5492_v20 = vpack.c.bf16 %v4168_v31, %v4164_v5 }
 0xe71   :  { %v5894_v40 = vpop.eup %5893  ;;  %v5486_v12 = vpack.c.bf16 %v4151_v49, %v4147_v35 }
 0xe72   :  { %v7935_v54 = vadd.f32 %v3887_v41, %v3886_v45  ;;  %v4167_v41 = vld [vmem:[%s8097_s2 + $0xe0] sm:$0xff]  ;;  %v4176_v45 = vld [vmem:[%s8097_s2 + $0x128] sm:$0xff] }
 0xe73   :  { %v5494_v10 = vpack.c.bf16 %v4167_v41, %v4163_v47 }
 0xe74   :  { %5895 = vtanh.f32 %v7935_v54 }
 0xe7e   :  { %v5896_v63 = vpop.eup %5895 }
 0xe7f   :  { %v3890_v23 = vmul.f32 %v5896_v63, %v5894_v40  ;;  %v5496_v40 = vpack.c.bf16 %v4176_v45, %v4172_v38  ;;  %v4171_v63 = vld [vmem:[%s8097_s2 + $0x100] sm:$0xff] }
 0xe81   :  { %4446 = vst [vmem:[%s8101_s5 + $0x68] sm:$0xff] %v3890_v23  ;;  %4027 = vmatmul.mubr.f32.vlgmr.msra.gmra.mrb[28].mxu0 %v3890_v23  ;;  %4098 = vmatmul.mubr.f32.vlgmr.msra.gmra.mrb[28].mxu1 %v3890_v23 }
 0xe82   :  { %4267 = vmatprep.mubr.f32.mxu0 %v5929_v3  ;;  %4338 = vmatprep.mubr.f32.mxu1 %v5929_v3  ;;  %v4139_v3 = vld [vmem:[%s8097_s2] sm:$0xff] }
 0xe83   :  { %v5482_v44 = vpack.c.bf16 %v4143_v61, %v4139_v3  ;;  %5515 = vmatpush1.bf16.msra.mxu1 %v5514_v6  ;;  %v4187_v3 = vld [vmem:[%s8097_s2 + $0x180] sm:$0xff] }
 0xe84   :  { %5517 = vmatprep.subr.bf16.mxu1 %v5516_v62 }
 0xe85   :  { %5483 = vmatpush1.bf16.msra.mxu0 %v5482_v44 }
 0xe86   :  { %5485 = vmatprep.subr.bf16.mxu0 %v5484_v34 }
 0xe87   :  { %5519 = vmatpush1.bf16.msra.mxu1 %v5518_v14 }
 0xe88   :  { %5521 = vmatprep.subr.bf16.mxu1 %v5520_v9 }
 0xe89   :  { %5487 = vmatpush1.bf16.msra.mxu0 %v5486_v12 }
 0xe8a   :  { %5489 = vmatprep.subr.bf16.mxu0 %v5488_v24 }
 0xe8b   :  { %5523 = vmatpush1.bf16.msra.mxu1 %v5522_v42 }
 0xe8c   :  { %5525 = vmatprep.subr.bf16.mxu1 %v7738_v13  ;;  %v4175_v13 = vld [vmem:[%s8097_s2 + $0x120] sm:$0xff] }
 0xe8d   :  { %5491 = vmatpush1.bf16.msra.mxu0 %v5490_v18  ;;  %v5498_v23 = vpack.c.bf16 %v4175_v13, %v4171_v63 }
 0xe8e   :  { %5493 = vmatprep.subr.bf16.mxu0 %v5492_v20 }
 0xe8f   :  { %5527 = vmatpush1.bf16.msra.mxu1 %v7746_v30  ;;  %v4184_v30 = vld [vmem:[%s8097_s2 + $0x168] sm:$0xff] }
 0xe90   :  { %5529 = vmatprep.subr.bf16.mxu1 %v7756_v16  ;;  %v5500_v57 = vpack.c.bf16 %v4184_v30, %v4180_v59  ;;  %v4183_v16 = vld [vmem:[%s8097_s2 + $0x160] sm:$0xff] }
 0xe91   :  { %5495 = vmatpush1.bf16.msra.mxu0 %v5494_v10  ;;  %v5502_v22 = vpack.c.bf16 %v4183_v16, %v4179_v0 }
 0xe92   :  { %5497 = vmatprep.subr.bf16.mxu0 %v5496_v40 }
 0xe93   :  { %5531 = vmatpush1.bf16.msra.mxu1 %v7764_v43  ;;  %v4192_v43 = vld [vmem:[%s8097_s2 + $0x1a8] sm:$0xff] }
 0xe94   :  { %5533 = vmatprep.subr.bf16.mxu1 %v7774_v46  ;;  %v5504_v61 = vpack.c.bf16 %v4192_v43, %v4188_v32  ;;  %v5506_v46 = vpack.c.bf16 %v4191_v21, %v4187_v3 }
 0xe95   :  { %5499 = vmatpush1.bf16.msra.mxu0 %v5498_v23 }
 0xe96   :  { %5501 = vmatprep.subr.bf16.mxu0 %v5500_v57 }
 0xe97   :  { %5535 = vmatpush1.bf16.msra.mxu1 %v7782_v58 }
 0xe98   :  { %5537 = vmatprep.subr.bf16.mxu1 %v7794_v17 }
 0xe99   :  { %5503 = vmatpush1.bf16.msra.mxu0 %v5502_v22 }
 0xe9a   :  { %5505 = vmatprep.subr.bf16.mxu0 %v5504_v61 }
 0xe9b   :  { %5539 = vmatpush1.bf16.msra.mxu1 %v7806_v28 }
 0xe9c   :  { %5541 = vmatprep.subr.bf16.mxu1 %v7820_v11 }
 0xe9d   :  { %5507 = vmatpush1.bf16.msra.mxu0 %v5506_v46 }
 0xe9e   :  { %5509 = vmatprep.subr.bf16.mxu0 %v7808_v37 }
 0xe9f   :  { %5543 = vmatpush1.bf16.msra.mxu1 %v7836_v2 }
 0xea1   :  { %5511 = vmatpush1.bf16.msra.mxu0 %v7832_v19 }
 0xf54   :  { %v4028_v44 = vpop.f32.mrb[28].mxu0  ;;  %v4099_v36 = vpop.f32.mrb[28].mxu1 }
 0xf55   :  { %v5572_v27 = vadd.f32 %v4028_v44, %v6569_v52  ;;  %v4030_v6 = vpop.f32.mrb[29].mxu0  ;;  %v4101_v58 = vpop.f32.mrb[29].mxu1  ;;  %v5604_v28 = vadd.f32 %v4099_v36, %v6575_v7 }
 0xf56   :  { %v5573_v50 = vadd.f32 %v4030_v6, %v6571_v53  ;;  %v5605_v37 = vadd.f32 %v4101_v58, %v6578_v15 }
 0xf57   :  { %v4447_v17 = vmul.f32 -1.442695, %v5572_v27  ;;  %v4449_v11 = vmul.f32 -1.442695, %v5604_v28 }
 0xf58   :  { %v4448_v29 = vmul.f32 -1.442695, %v5573_v50 }
 0xf59   :  { %5897 = vpow2.f32 %v4447_v17 }
 0xf5a   :  { %5899 = vpow2.f32 %v4448_v29 }
 0xf5b   :  { %5901 = vtanh.f32 %v5605_v37 }
 0xf5c   :  { %5903 = vpow2.f32 %v4449_v11 }
 0xf63   :  { %v5898_v19 = vpop.eup %5897 }
 0xf64   :  { %v4111_v56 = vadd.f32 1.0, %v5898_v19  ;;  %v5900_v2 = vpop.eup %5899 }
 0xf65   :  { %v4117_v34 = vadd.f32 1.0, %v5900_v2  ;;  %v5902_v8 = vpop.eup %5901 }
 0xf66   :  { %5905 = vrcp.f32 %v4111_v56  ;;  %v5904_v35 = vpop.eup %5903 }
 0xf67   :  { %5907 = vrcp.f32 %v4117_v34  ;;  %v4123_v60 = vadd.f32 1.0, %v5904_v35 }
 0xf69   :  { %5909 = vrcp.f32 %v4123_v60 }
 0xf70   :  { %v5906_v49 = vpop.eup %5905 }
 0xf71   :  { %v4128_v62 = vmul.f32 %v5906_v49, %v5902_v8  ;;  %v5908_v12 = vpop.eup %5907 }
 0xf72   :  { %v4127_v33 = vmul.f32 %v5908_v12, %v7935_v54 }
 0xf73   :  { %v5910_v39 = vpop.eup %5909 }
 0xf74   :  { %v4129_v14 = vadd.f32 %v4128_v62, %v4127_v33 }
 0xf76   :  { %5911 = vtanh.f32 %v4129_v14 }
 0xf80   :  { %v5912_v51 = vpop.eup %5911 }
 0xf81   :  { %v4131_v25 = vmul.f32 %v5912_v51, %v5910_v39 }
 0xf83   :  { %4450 = vst [vmem:[%s8101_s5 + $0x70] sm:$0xff] %v4131_v25  ;;  %4268 = vmatmul.mubr.f32.vlgmr.msra.gmra.mrb[30].mxu0 %v4131_v25  ;;  %4339 = vmatmul.mubr.f32.vlgmr.msra.gmra.mrb[30].mxu1 %v4131_v25 }
0x1056   :  { %v4269_v24 = vpop.f32.mrb[30].mxu0  ;;  %v4340_v4 = vpop.f32.mrb[30].mxu1 }
0x1057   :  { %v5574_v48 = vadd.f32 %v4269_v24, %v6569_v52  ;;  %v4271_v26 = vpop.f32.mrb[31].mxu0  ;;  %v4342_v9 = vpop.f32.mrb[31].mxu1  ;;  %v5606_v55 = vadd.f32 %v4340_v4, %v6575_v7 }
0x1058   :  { %v5575_v54 = vadd.f32 %v4271_v26, %v6571_v53  ;;  %v5607_v42 = vadd.f32 %v4342_v9, %v6578_v15 }
0x1059   :  { %v4451_v18 = vmul.f32 -1.442695, %v5574_v48  ;;  %v4453_v5 = vmul.f32 -1.442695, %v5606_v55 }
0x105a   :  { %v4452_v1 = vmul.f32 -1.442695, %v5575_v54 }
0x105b   :  { %5913 = vpow2.f32 %v4451_v18 }
0x105c   :  { %5915 = vpow2.f32 %v4452_v1 }
0x105d   :  { %5917 = vtanh.f32 %v5607_v42 }
0x105e   :  { %5919 = vpow2.f32 %v4453_v5 }
0x1065   :  { %v5914_v31 = vpop.eup %5913 }
0x1066   :  { %v4352_v20 = vadd.f32 1.0, %v5914_v31  ;;  %v5916_v47 = vpop.eup %5915 }
0x1067   :  { %v4358_v52 = vadd.f32 1.0, %v5916_v47  ;;  %v5918_v41 = vpop.eup %5917 }
0x1068   :  { %5921 = vrcp.f32 %v4352_v20  ;;  %v5920_v10 = vpop.eup %5919 }
0x1069   :  { %5923 = vrcp.f32 %v4358_v52  ;;  %v4364_v40 = vadd.f32 1.0, %v5920_v10 }
0x106b   :  { %5925 = vrcp.f32 %v4364_v40 }
0x1072   :  { %v5922_v53 = vpop.eup %5921 }
0x1073   :  { %v4369_v38 = vmul.f32 %v5922_v53, %v5918_v41  ;;  %v5924_v45 = vpop.eup %5923 }
0x1074   :  { %v4368_v63 = vmul.f32 %v5924_v45, %v4129_v14 }
0x1075   :  { %v5926_v7 = vpop.eup %5925 }
0x1076   :  { %v4370_v13 = vadd.f32 %v4369_v38, %v4368_v63 }
0x1078   :  { %5927 = vtanh.f32 %v4370_v13  ;;  %4455 = vst [vmem:[%s8102_s6 + $0x8] sm:$0xff] %v4370_v13 }
0x1082   :  { %v5928_v15 = vpop.eup %5927 }
0x1083   :  { %v4372_v23 = vmul.f32 %v5928_v15, %v5926_v7 }
0x1085   :  { %4454 = vst [vmem:[%s8101_s5 + $0x78] sm:$0xff] %v4372_v23  ;;  %4380 = vst [vmem:[%s8102_s6] sm:$0xff] %v4372_v23 }

</bundles_post_ra>
